<compile_context>
chip_gen: v5e
topology: v5e:2x2
jax: 0.10.0
libtpu: 0.0.40
codegen_flags: <defaults>
</compile_context>

<pallas_src>
import jax
import jax.numpy as jnp
from jax import lax
from jax.experimental import pallas as pl
from jax.experimental.pallas import tpu as pltpu

EMB_DIM = 16


def _decoder_kernel(emb_ref, H_ref, xn0_ref,
                    w_x_ref, W_e_ref, W_h_ref, b_i_ref, b_h_ref,
                    wa_h_ref, wa_hn_ref, b_a_ref, v_ref, w_out_ref, b_out_ref,
                    pred_ref,
                    e1_ref, gi_ref):
    T, TR, D = H_ref.shape
    F, _, E = emb_ref.shape
    D3 = W_h_ref.shape[1]

    # ---- hoisted, step-invariant work (one MXU call each) -----------------
    # e1[t] = H[t] @ Wa_h + b_a   -> VMEM scratch, reused by every step.
    e1 = jnp.dot(H_ref[...].reshape(T * TR, D).astype(jnp.float32),
                 wa_h_ref[...], preferred_element_type=jnp.float32)
    e1_ref[...] = (e1 + b_a_ref[...]).reshape(T, TR, D)

    # gi_emb[i] = emb[i] @ W_e + b_i  (embedding part of the GRU input gates),
    # hoisted out of the serial recurrence as one larger matmul.
    gi = jnp.dot(emb_ref[...].reshape(F * TR, E).astype(jnp.float32),
                 W_e_ref[...], preferred_element_type=jnp.float32)
    gi_ref[...] = (gi + b_i_ref[...]).reshape(F, TR, D3)

    # Small step-invariant parameters, loaded once.
    w_x = w_x_ref[...]          # (1, 3D)  weight of the scalar xn input feature
    W_h = W_h_ref[...]          # (D, 3D)  hidden -> gates
    b_h = b_h_ref[...]          # (1, 3D)
    wa_hn = wa_hn_ref[...]      # (D, D)
    v_col = v_ref[...]          # (D, 1)
    w_out = w_out_ref[...]      # (D, 1)
    b_out = b_out_ref[...]      # (1, 1)

    h0 = H_ref[T - 1].astype(jnp.float32)      # hn = H[:, -1]      (TR, D)
    x0 = xn0_ref[...]                           # initial xn          (TR, 1)

    def step(i, carry):
        h, xcur = carry

        # ---- GRU cell on x = cat(xn, emb) --------------------------------
        gi_i = xcur * w_x + gi_ref[i]                                     # (TR, 3D)
        gh = jnp.dot(h, W_h, preferred_element_type=jnp.float32) + b_h    # (TR, 3D)
        r = jax.nn.sigmoid(gi_i[:, :D] + gh[:, :D])
        z = jax.nn.sigmoid(gi_i[:, D:2 * D] + gh[:, D:2 * D])
        n = jnp.tanh(gi_i[:, 2 * D:] + r * gh[:, 2 * D:])
        h_gru = (1.0 - z) * n + z * h                                     # (TR, D)

        # ---- additive attention over the encoder history (e1 reused) -----
        e2 = jnp.dot(h_gru, wa_hn, preferred_element_type=jnp.float32)    # (TR, D)
        energy = jnp.tanh(e1_ref[...] + e2[None, :, :])                   # (T, TR, D)
        # D-reduction on the MXU; the (T*TR,1) result splits leading dims
        # back to (T, TR, 1) with no lane relayout (stays sublane-major).
        score = jnp.dot(energy.reshape(T * TR, D), v_col,
                        preferred_element_type=jnp.float32).reshape(T, TR, 1)
        # Softmax over T: T is the leading axis -> cross-vreg VPU max/sum.
        m = jnp.max(score, axis=0, keepdims=True)                         # (1, TR, 1)
        ex = jnp.exp(score - m)                                           # (T, TR, 1)
        denom = jnp.sum(ex, axis=0, keepdims=True)                        # (1, TR, 1)
        inv = pl.reciprocal(denom, approx=True)                           # EUP slot
        inv = inv * (2.0 - denom * inv)                                   # one Newton step
        alpha = ex * inv                                                  # (T, TR, 1)
        # Context sum over the leading T axis -> cross-vreg VPU adds.
        context = jnp.sum(alpha * H_ref[...], axis=0)                     # (TR, D)

        # ---- fc_out : Linear(hid_dim, 1) ----------------------------------
        x_next = jnp.dot(context, w_out,
                         preferred_element_type=jnp.float32) + b_out      # (TR, 1)
        # Lane-dense output: row i of the (F, R) slab (R on lanes).
        pred_ref[pl.ds(i, 1), :] = x_next.reshape(1, TR)
        return context, x_next

    # Short static horizon -> fully unrolled, bounded live ranges via fori_loop.
    lax.fori_loop(0, F, step, (h0, x0), unroll=True)


def _choose_row_tile(R, T, D, F_len, E):
    """Largest lane-dense (multiple-of-128) row tile dividing R that fits well
    under the universal 32 MiB scoped-VMEM default (v7x has only 64 MiB
    physical); otherwise take all rows in one tile."""
    per_row = 4 * (6 * T * D + F_len * (2 * E + 3 * D + 2) + 8)
    budget = 16 * 2 ** 20
    for tr in (512, 384, 256, 128):
        if R % tr == 0 and tr * per_row <= budget:
            return tr
    # TODO(synk): pad R up to a multiple of 128 for production shapes where R
    # is large but not 128-divisible (small toy shapes just use one tile).
    return R


def decoder_forward(X, H, xn, params, forecast_len, storage_dtype=jnp.float32):
    """X: [B, hist+forecast, C, F_feat]  H: [B, hist, C, D]  xn: [B, C, 1].
    storage_dtype: keep f32 on v5e; bf16 halves HBM/VMEM for H/emb on v6e/v7x."""
    B, _, C, _ = X.shape
    T, D = H.shape[1], H.shape[-1]
    E = params["emb_table"].shape[1]
    F_len = int(forecast_len)
    R = B * C
    D3 = 3 * D

    # Embedding gather outside the kernel (tiny XLA gather).  NOTE: jnp.take
    # clamps out-of-range ids (PyTorch would raise) -- validate upstream.
    idx = X[:, :F_len, :, -1].astype(jnp.int32)                   # (B, F, C)
    idx = jnp.transpose(idx, (1, 0, 2)).reshape(F_len, R)         # (F, R)
    emb_all = jnp.take(params["emb_table"], idx, axis=0).astype(storage_dtype)

    # T-leading (T, R, D) layout so in-kernel T reductions are VPU adds.
    H_t = jnp.transpose(H, (1, 0, 2, 3)).reshape(T, R, D).astype(storage_dtype)
    xn0 = xn.reshape(R, 1).astype(jnp.float32)

    # Fuse the per-gate GRU weights/biases into lane-dense (., 3D) matrices.
    w_x = jnp.concatenate([params["w_xr"], params["w_xz"], params["w_xn"]], axis=1)
    W_e = jnp.concatenate([params["w_er"], params["w_ez"], params["w_en"]], axis=1)
    W_h = jnp.concatenate([params["w_hr"], params["w_hz"], params["w_hn"]], axis=1)
    b_i = jnp.concatenate([params["b_ir"], params["b_iz"], params["b_in"]], axis=1)
    b_h = jnp.concatenate([params["b_hr"], params["b_hz"], params["b_hn"]], axis=1)
    v_col = params["v"].reshape(D, 1)
    w_out_col = params["w_out"].reshape(D, 1)

    TR = _choose_row_tile(R, T, D, F_len, E)
    grid = (R // TR,)

    def full(shape):
        return pl.BlockSpec(shape, lambda r: (0,) * len(shape))

    in_specs = [
        pl.BlockSpec((F_len, TR, E), lambda r: (0, r, 0)),    # emb_all (F, R, E)
        pl.BlockSpec((T, TR, D), lambda r: (0, r, 0)),        # H_t     (T, R, D)
        pl.BlockSpec((TR, 1), lambda r: (r, 0)),              # xn0     (R, 1)
        full((1, D3)), full((E, D3)), full((D, D3)),          # w_x, W_e, W_h
        full((1, D3)), full((1, D3)),                         # b_i, b_h
        full((D, D)), full((D, D)), full((1, D)),             # wa_h, wa_hn, b_a
        full((D, 1)), full((D, 1)), full((1, 1)),             # v, w_out, b_out
    ]
    out_specs = pl.BlockSpec((F_len, TR), lambda r: (0, r))   # lane-dense (F, R)
    scratch_shapes = [
        pltpu.VMEM((T, TR, D), jnp.float32),        # e1
        pltpu.VMEM((F_len, TR, D3), jnp.float32),   # gi_emb
    ]

    # VMEM budget: double-buffered input blocks + scratch + temporaries,
    # with headroom; capped so it also fits v7x's 64 MiB physical VMEM.
    itemsize = jnp.dtype(storage_dtype).itemsize
    vmem_est = (
        2 * itemsize * (T * TR * D + F_len * TR * E)           # pipelined inputs
        + 4 * (2 * TR + 2 * F_len * TR)                        # xn0 + output blocks
        + 4 * (T * TR * D + F_len * TR * D3)                   # scratches
        + 4 * 3 * T * TR * D                                   # energy/alpha temporaries
        + 4 * (D3 * (2 + E + D) + 2 * D * D + 3 * D + 1))      # parameters
    vmem_limit = int(min(48 * 2 ** 20, max(2 * vmem_est, 16 * 2 ** 20)))

    # Advisory cost estimate (XLA's default model undercounts the EUP tanh/exp).
    flops = int(
        2 * R * T * D * D + 2 * F_len * R * E * D3
        + F_len * (2 * R * D * D3 + 2 * R * D * D + 2 * R * T * D
                   + 3 * R * T * D + 2 * R * D + 12 * R * D))
    transcendentals = int(F_len * (R * T * D + R * T + 3 * R * D))
    bytes_accessed = int(
        itemsize * (T * R * D + F_len * R * E)
        + 4 * (R + F_len * R + D3 * (2 + E + D) + 2 * D * D + 3 * D + 1))

    out = pl.pallas_call(
        _decoder_kernel,
        out_shape=jax.ShapeDtypeStruct((F_len, R), jnp.float32),
        grid_spec=pltpu.PrefetchScalarGridSpec(
            num_scalar_prefetch=0,
            grid=grid,
            in_specs=in_specs,
            out_specs=out_specs,
            scratch_shapes=scratch_shapes),
        compiler_params=pltpu.CompilerParams(
            dimension_semantics=("parallel",),       # row tiles shard across TCs (v7x)
            vmem_limit_bytes=vmem_limit),
        cost_estimate=pl.CostEstimate(flops=flops,
                                      transcendentals=transcendentals,
                                      bytes_accessed=bytes_accessed),
    )(emb_all, H_t, xn0,
      w_x, W_e, W_h, b_i, b_h,
      params["wa_h"], params["wa_hn"], params["b_a"], v_col, w_out_col,
      params["b_out"])

    # (F, R) -> (B, F, C, 1)   (matches torch.stack(preds, dim=1))
    return jnp.transpose(out.reshape(F_len, B, C), (1, 0, 2))[..., None]


def init_params(key, hid_dim, num_embeddings, emb_dim=EMB_DIM):
    D, E = hid_dim, emb_dim
    names_shapes = [
        ("emb_table", (num_embeddings, E)),
        ("w_xr", (1, D)), ("w_xz", (1, D)), ("w_xn", (1, D)),
        ("w_er", (E, D)), ("w_ez", (E, D)), ("w_en", (E, D)),
        ("w_hr", (D, D)), ("w_hz", (D, D)), ("w_hn", (D, D)),
        ("b_ir", (1, D)), ("b_iz", (1, D)), ("b_in", (1, D)),
        ("b_hr", (1, D)), ("b_hz", (1, D)), ("b_hn", (1, D)),
        ("wa_h", (D, D)), ("wa_hn", (D, D)), ("b_a", (1, D)), ("v", (1, D)),
        ("w_out", (1, D)), ("b_out", (1, 1)),
    ]
    keys = jax.random.split(key, len(names_shapes))
    return {name: 0.2 * jax.random.normal(k, shape, jnp.float32)
            for (name, shape), k in zip(names_shapes, keys)}


def decoder_reference(X, H, xn, params, forecast_len):
    """Pure-JAX reference mirroring the assumed PyTorch semantics."""
    B, _, C, _ = X.shape
    D = H.shape[-1]
    R = B * C
    hn = H[:, -1].reshape(R, D)
    xcur = xn.reshape(R, 1)
    preds = []
    for i in range(forecast_len):
        idx = X[:, i, :, -1].astype(jnp.int32).reshape(R)
        emb = params["emb_table"][idx]
        gi_r = xcur * params["w_xr"] + emb @ params["w_er"] + params["b_ir"]
        gi_z = xcur * params["w_xz"] + emb @ params["w_ez"] + params["b_iz"]
        gi_n = xcur * params["w_xn"] + emb @ params["w_en"] + params["b_in"]
        gh_r = hn @ params["w_hr"] + params["b_hr"]
        gh_z = hn @ params["w_hz"] + params["b_hz"]
        gh_n = hn @ params["w_hn"] + params["b_hn"]
        r = jax.nn.sigmoid(gi_r + gh_r)
        z = jax.nn.sigmoid(gi_z + gh_z)
        n = jnp.tanh(gi_n + r * gh_n)
        h_new = (1.0 - z) * n + z * hn
        hBC = h_new.reshape(B, C, D)
        e1 = jnp.einsum("btcd,de->btce", H, params["wa_h"])
        e2 = jnp.einsum("bcd,de->bce", hBC, params["wa_hn"])
        energy = jnp.tanh(e1 + e2[:, None] + params["b_a"].reshape(1, 1, 1, D))
        score = jnp.sum(energy * params["v"].reshape(1, 1, 1, D), axis=-1)
        alpha = jax.nn.softmax(score, axis=1)
        context = jnp.sum(alpha[..., None] * H, axis=1)
        hn = context.reshape(R, D)
        xcur = jnp.sum(hn * params["w_out"], axis=-1, keepdims=True) + params["b_out"]
        preds.append(xcur.reshape(B, C, 1))
    return jnp.stack(preds, axis=1)


if __name__ == "__main__":
    B, C, HIST, F_LEN, D, FEAT = 2, 8, 8, 4, 32, 4
    NUM_EMB = 24

    key = jax.random.PRNGKey(0)
    kx, kh, kxn, kidx, kp = jax.random.split(key, 5)

    params = init_params(kp, hid_dim=D, num_embeddings=NUM_EMB)

    X = jax.random.normal(kx, (B, HIST + F_LEN, C, FEAT), jnp.float32)
    idx_feat = jax.random.randint(kidx, (B, HIST + F_LEN, C), 0, NUM_EMB)
    X = X.at[..., -1].set(idx_feat.astype(jnp.float32))   # last feature = embedding id
    H = jax.random.normal(kh, (B, HIST, C, D), jnp.float32)
    xn = jax.random.normal(kxn, (B, C, 1), jnp.float32)

    out = decoder_forward(X, H, xn, params, F_LEN)
    out = jax.block_until_ready(out)

    ref = decoder_reference(X, H, xn, params, F_LEN)
    assert out.shape == (B, F_LEN, C, 1), out.shape
    err = float(jnp.max(jnp.abs(out - ref)))
    assert err < 1e-3, f"max abs error {err}"
    print("KERNEL_OK")
</pallas_src>

<mosaic_0001>
module attributes {stable_mosaic.version = 11 : i64} {
  func.func @_decoder_kernel(%arg0: i32, %arg1: memref<4x16x16xf32, #tpu.memory_space<vmem>>, %arg2: memref<8x16x32xf32, #tpu.memory_space<vmem>>, %arg3: memref<16x1xf32, #tpu.memory_space<vmem>>, %arg4: memref<1x96xf32, #tpu.memory_space<vmem>>, %arg5: memref<16x96xf32, #tpu.memory_space<vmem>>, %arg6: memref<32x96xf32, #tpu.memory_space<vmem>>, %arg7: memref<1x96xf32, #tpu.memory_space<vmem>>, %arg8: memref<1x96xf32, #tpu.memory_space<vmem>>, %arg9: memref<32x32xf32, #tpu.memory_space<vmem>>, %arg10: memref<32x32xf32, #tpu.memory_space<vmem>>, %arg11: memref<1x32xf32, #tpu.memory_space<vmem>>, %arg12: memref<32x1xf32, #tpu.memory_space<vmem>>, %arg13: memref<32x1xf32, #tpu.memory_space<vmem>>, %arg14: memref<1x1xf32, #tpu.memory_space<vmem>>, %arg15: memref<4x16xf32, #tpu.memory_space<vmem>>, %arg16: memref<8x16x32xf32, #tpu.memory_space<vmem>>, %arg17: memref<4x16x96xf32, #tpu.memory_space<vmem>>) attributes {dimension_semantics = [#tpu.dimension_semantics<parallel>], iteration_bounds = array<i64: 1>, scalar_prefetch = 0 : i64, scratch_operands = 2 : i64, tpu.core_type = #tpu.core_type<tc>, window_params = [{transform_indices = @transform_0, window_bounds = array<i64: 4, 16, 16>}, {transform_indices = @transform_1, window_bounds = array<i64: 8, 16, 32>}, {transform_indices = @transform_2, window_bounds = array<i64: 16, 1>}, {pipeline_mode = #tpu.pipeline_mode<synchronous>, transform_indices = @transform_3, window_bounds = array<i64: 1, 96>}, {pipeline_mode = #tpu.pipeline_mode<synchronous>, transform_indices = @transform_4, window_bounds = array<i64: 16, 96>}, {pipeline_mode = #tpu.pipeline_mode<synchronous>, transform_indices = @transform_5, window_bounds = array<i64: 32, 96>}, {pipeline_mode = #tpu.pipeline_mode<synchronous>, transform_indices = @transform_6, window_bounds = array<i64: 1, 96>}, {pipeline_mode = #tpu.pipeline_mode<synchronous>, transform_indices = @transform_7, window_bounds = array<i64: 1, 96>}, {pipeline_mode = #tpu.pipeline_mode<synchronous>, transform_indices = @transform_8, window_bounds = array<i64: 32, 32>}, {pipeline_mode = #tpu.pipeline_mode<synchronous>, transform_indices = @transform_9, window_bounds = array<i64: 32, 32>}, {pipeline_mode = #tpu.pipeline_mode<synchronous>, transform_indices = @transform_10, window_bounds = array<i64: 1, 32>}, {pipeline_mode = #tpu.pipeline_mode<synchronous>, transform_indices = @transform_11, window_bounds = array<i64: 32, 1>}, {pipeline_mode = #tpu.pipeline_mode<synchronous>, transform_indices = @transform_12, window_bounds = array<i64: 32, 1>}, {pipeline_mode = #tpu.pipeline_mode<synchronous>, transform_indices = @transform_13, window_bounds = array<i64: 1, 1>}, {transform_indices = @transform_14, window_bounds = array<i64: 4, 16>}]} {
    %c0 = arith.constant 0 : index
    %c0_0 = arith.constant 0 : index
    %c0_1 = arith.constant 0 : index
    %0 = vector.load %arg2[%c0, %c0_0, %c0_1] : memref<8x16x32xf32, #tpu.memory_space<vmem>>, vector<8x16x32xf32>
    %1 = vector.shape_cast %0 : vector<8x16x32xf32> to vector<128x32xf32>
    %c0_2 = arith.constant 0 : index
    %c0_3 = arith.constant 0 : index
    %2 = vector.load %arg9[%c0_2, %c0_3] : memref<32x32xf32, #tpu.memory_space<vmem>>, vector<32x32xf32>
    %cst = arith.constant dense<0.000000e+00> : vector<128x32xf32>
    %3 = tpu.matmul %1, %2, %cst {dimension_numbers = #tpu.dot_dimension_numbers<[1], [0], [0], [1], [0, 0, 1, 1], [], []>} : vector<128x32xf32>, vector<32x32xf32>, vector<128x32xf32> -> vector<128x32xf32>
    %c0_4 = arith.constant 0 : index
    %c0_5 = arith.constant 0 : index
    %4 = vector.load %arg11[%c0_4, %c0_5] : memref<1x32xf32, #tpu.memory_space<vmem>>, vector<1x32xf32>
    %5 = vector.broadcast %4 : vector<1x32xf32> to vector<128x32xf32>
    %6 = arith.addf %3, %5 : vector<128x32xf32>
    %7 = vector.shape_cast %6 : vector<128x32xf32> to vector<8x16x32xf32>
    %c0_6 = arith.constant 0 : index
    %c0_7 = arith.constant 0 : index
    %c0_8 = arith.constant 0 : index
    %8 = vector.load %arg16[%c0_6, %c0_7, %c0_8] : memref<8x16x32xf32, #tpu.memory_space<vmem>>, vector<8x16x32xf32>
    tpu.vector_store %arg16[%c0_6, %c0_7, %c0_8], %7 {strides = array<i32>} : memref<8x16x32xf32, #tpu.memory_space<vmem>>, vector<8x16x32xf32>,
    %c0_9 = arith.constant 0 : index
    %c0_10 = arith.constant 0 : index
    %c0_11 = arith.constant 0 : index
    %9 = vector.load %arg1[%c0_9, %c0_10, %c0_11] : memref<4x16x16xf32, #tpu.memory_space<vmem>>, vector<4x16x16xf32>
    %10 = vector.shape_cast %9 : vector<4x16x16xf32> to vector<64x16xf32>
    %c0_12 = arith.constant 0 : index
    %c0_13 = arith.constant 0 : index
    %11 = vector.load %arg5[%c0_12, %c0_13] : memref<16x96xf32, #tpu.memory_space<vmem>>, vector<16x96xf32>
    %cst_14 = arith.constant dense<0.000000e+00> : vector<64x96xf32>
    %12 = tpu.matmul %10, %11, %cst_14 {dimension_numbers = #tpu.dot_dimension_numbers<[1], [0], [0], [1], [0, 0, 1, 1], [], []>} : vector<64x16xf32>, vector<16x96xf32>, vector<64x96xf32> -> vector<64x96xf32>
    %c0_15 = arith.constant 0 : index
    %c0_16 = arith.constant 0 : index
    %13 = vector.load %arg7[%c0_15, %c0_16] : memref<1x96xf32, #tpu.memory_space<vmem>>, vector<1x96xf32>
    %14 = vector.broadcast %13 : vector<1x96xf32> to vector<64x96xf32>
    %15 = arith.addf %12, %14 : vector<64x96xf32>
    %16 = vector.shape_cast %15 : vector<64x96xf32> to vector<4x16x96xf32>
    %c0_17 = arith.constant 0 : index
    %c0_18 = arith.constant 0 : index
    %c0_19 = arith.constant 0 : index
    %17 = vector.load %arg17[%c0_17, %c0_18, %c0_19] : memref<4x16x96xf32, #tpu.memory_space<vmem>>, vector<4x16x96xf32>
    tpu.vector_store %arg17[%c0_17, %c0_18, %c0_19], %16 {strides = array<i32>} : memref<4x16x96xf32, #tpu.memory_space<vmem>>, vector<4x16x96xf32>,
    %c0_20 = arith.constant 0 : index
    %c0_21 = arith.constant 0 : index
    %18 = vector.load %arg4[%c0_20, %c0_21] : memref<1x96xf32, #tpu.memory_space<vmem>>, vector<1x96xf32>
    %c0_22 = arith.constant 0 : index
    %c0_23 = arith.constant 0 : index
    %19 = vector.load %arg6[%c0_22, %c0_23] : memref<32x96xf32, #tpu.memory_space<vmem>>, vector<32x96xf32>
    %c0_24 = arith.constant 0 : index
    %c0_25 = arith.constant 0 : index
    %20 = vector.load %arg8[%c0_24, %c0_25] : memref<1x96xf32, #tpu.memory_space<vmem>>, vector<1x96xf32>
    %c0_26 = arith.constant 0 : index
    %c0_27 = arith.constant 0 : index
    %21 = vector.load %arg10[%c0_26, %c0_27] : memref<32x32xf32, #tpu.memory_space<vmem>>, vector<32x32xf32>
    %c0_28 = arith.constant 0 : index
    %c0_29 = arith.constant 0 : index
    %22 = vector.load %arg12[%c0_28, %c0_29] : memref<32x1xf32, #tpu.memory_space<vmem>>, vector<32x1xf32>
    %c0_30 = arith.constant 0 : index
    %c0_31 = arith.constant 0 : index
    %23 = vector.load %arg13[%c0_30, %c0_31] : memref<32x1xf32, #tpu.memory_space<vmem>>, vector<32x1xf32>
    %c0_32 = arith.constant 0 : index
    %c0_33 = arith.constant 0 : index
    %24 = vector.load %arg14[%c0_32, %c0_33] : memref<1x1xf32, #tpu.memory_space<vmem>>, vector<1x1xf32>
    %c7 = arith.constant 7 : index
    %c0_34 = arith.constant 0 : index
    %c0_35 = arith.constant 0 : index
    %25 = vector.load %arg2[%c7, %c0_34, %c0_35] : memref<8x16x32xf32, #tpu.memory_space<vmem>>, vector<1x16x32xf32>
    %26 = vector.shape_cast %25 : vector<1x16x32xf32> to vector<16x32xf32>
    %c0_36 = arith.constant 0 : index
    %c0_37 = arith.constant 0 : index
    %27 = vector.load %arg3[%c0_36, %c0_37] : memref<16x1xf32, #tpu.memory_space<vmem>>, vector<16x1xf32>
    %c0_i32 = arith.constant 0 : i32
    %28 = vector.broadcast %27 : vector<16x1xf32> to vector<16x96xf32>
    %29 = vector.broadcast %18 : vector<1x96xf32> to vector<16x96xf32>
    %30 = arith.mulf %28, %29 : vector<16x96xf32>
    %31 = arith.index_cast %c0_i32 : i32 to index
    %c0_38 = arith.constant 0 : index
    %c0_39 = arith.constant 0 : index
    %32 = vector.load %arg17[%31, %c0_38, %c0_39] : memref<4x16x96xf32, #tpu.memory_space<vmem>>, vector<1x16x96xf32>
    %33 = vector.shape_cast %32 : vector<1x16x96xf32> to vector<16x96xf32>
    %34 = arith.addf %30, %33 : vector<16x96xf32>
    %cst_40 = arith.constant dense<0.000000e+00> : vector<16x96xf32>
    %35 = tpu.matmul %26, %19, %cst_40 {dimension_numbers = #tpu.dot_dimension_numbers<[1], [0], [0], [1], [0, 0, 1, 1], [], []>} : vector<16x32xf32>, vector<32x96xf32>, vector<16x96xf32> -> vector<16x96xf32>
    %36 = vector.broadcast %20 : vector<1x96xf32> to vector<16x96xf32>
    %37 = arith.addf %35, %36 : vector<16x96xf32>
    %38 = vector.extract_strided_slice %34 {offsets = [0, 0], sizes = [16, 32], strides = [1, 1]} : vector<16x96xf32> to vector<16x32xf32>
    %39 = vector.extract_strided_slice %37 {offsets = [0, 0], sizes = [16, 32], strides = [1, 1]} : vector<16x96xf32> to vector<16x32xf32>
    %40 = arith.addf %38, %39 : vector<16x32xf32>
    %41 = arith.negf %40 : vector<16x32xf32>
    %42 = math.exp %41 : vector<16x32xf32>
    %cst_41 = arith.constant 1.000000e+00 : f32
    %43 = vector.broadcast %cst_41 : f32 to vector<16x32xf32>
    %44 = arith.addf %43, %42 : vector<16x32xf32>
    %45 = arith.divf %43, %44 : vector<16x32xf32>
    %46 = vector.extract_strided_slice %34 {offsets = [0, 32], sizes = [16, 32], strides = [1, 1]} : vector<16x96xf32> to vector<16x32xf32>
    %47 = vector.extract_strided_slice %37 {offsets = [0, 32], sizes = [16, 32], strides = [1, 1]} : vector<16x96xf32> to vector<16x32xf32>
    %48 = arith.addf %46, %47 : vector<16x32xf32>
    %49 = arith.negf %48 : vector<16x32xf32>
    %50 = math.exp %49 : vector<16x32xf32>
    %cst_42 = arith.constant 1.000000e+00 : f32
    %51 = vector.broadcast %cst_42 : f32 to vector<16x32xf32>
    %52 = arith.addf %51, %50 : vector<16x32xf32>
    %53 = arith.divf %51, %52 : vector<16x32xf32>
    %54 = vector.extract_strided_slice %34 {offsets = [0, 64], sizes = [16, 32], strides = [1, 1]} : vector<16x96xf32> to vector<16x32xf32>
    %55 = vector.extract_strided_slice %37 {offsets = [0, 64], sizes = [16, 32], strides = [1, 1]} : vector<16x96xf32> to vector<16x32xf32>
    %56 = arith.mulf %45, %55 : vector<16x32xf32>
    %57 = arith.addf %54, %56 : vector<16x32xf32>
    %58 = math.tanh %57 : vector<16x32xf32>
    %cst_43 = arith.constant 1.000000e+00 : f32
    %59 = vector.broadcast %cst_43 : f32 to vector<16x32xf32>
    %60 = arith.subf %59, %53 : vector<16x32xf32>
    %61 = arith.mulf %60, %58 : vector<16x32xf32>
    %62 = arith.mulf %53, %26 : vector<16x32xf32>
    %63 = arith.addf %61, %62 : vector<16x32xf32>
    %cst_44 = arith.constant dense<0.000000e+00> : vector<16x32xf32>
    %64 = tpu.matmul %63, %21, %cst_44 {dimension_numbers = #tpu.dot_dimension_numbers<[1], [0], [0], [1], [0, 0, 1, 1], [], []>} : vector<16x32xf32>, vector<32x32xf32>, vector<16x32xf32> -> vector<16x32xf32>
    %c0_45 = arith.constant 0 : index
    %c0_46 = arith.constant 0 : index
    %c0_47 = arith.constant 0 : index
    %65 = vector.load %arg16[%c0_45, %c0_46, %c0_47] : memref<8x16x32xf32, #tpu.memory_space<vmem>>, vector<8x16x32xf32>
    %66 = vector.shape_cast %64 : vector<16x32xf32> to vector<1x16x32xf32>
    %67 = vector.broadcast %66 : vector<1x16x32xf32> to vector<8x16x32xf32>
    %68 = arith.addf %65, %67 : vector<8x16x32xf32>
    %69 = math.tanh %68 : vector<8x16x32xf32>
    %70 = vector.shape_cast %69 : vector<8x16x32xf32> to vector<128x32xf32>
    %cst_48 = arith.constant dense<0.000000e+00> : vector<128x1xf32>
    %71 = tpu.matmul %70, %22, %cst_48 {dimension_numbers = #tpu.dot_dimension_numbers<[1], [0], [0], [1], [0, 0, 1, 1], [], []>} : vector<128x32xf32>, vector<32x1xf32>, vector<128x1xf32> -> vector<128x1xf32>
    %72 = vector.shape_cast %71 : vector<128x1xf32> to vector<8x16x1xf32>
    %cst_49 = arith.constant dense<0xFF800000> : vector<16x1xf32>
    %73 = vector.multi_reduction <maximumf>, %72, %cst_49 [0] : vector<8x16x1xf32> to vector<16x1xf32>
    %74 = vector.shape_cast %73 : vector<16x1xf32> to vector<1x16x1xf32>
    %75 = vector.broadcast %74 : vector<1x16x1xf32> to vector<8x16x1xf32>
    %76 = arith.subf %72, %75 : vector<8x16x1xf32>
    %77 = math.exp %76 : vector<8x16x1xf32>
    %cst_50 = arith.constant dense<0.000000e+00> : vector<16x1xf32>
    %78 = vector.multi_reduction <add>, %77, %cst_50 [0] : vector<8x16x1xf32> to vector<16x1xf32>
    %79 = vector.shape_cast %78 : vector<16x1xf32> to vector<1x16x1xf32>
    %80 = tpu.reciprocal %79 {approx = true} : vector<1x16x1xf32> -> vector<1x16x1xf32>
    %81 = arith.mulf %79, %80 : vector<1x16x1xf32>
    %cst_51 = arith.constant 2.000000e+00 : f32
    %82 = vector.broadcast %cst_51 : f32 to vector<1x16x1xf32>
    %83 = arith.subf %82, %81 : vector<1x16x1xf32>
    %84 = arith.mulf %80, %83 : vector<1x16x1xf32>
    %85 = vector.broadcast %84 : vector<1x16x1xf32> to vector<8x16x1xf32>
    %86 = arith.mulf %77, %85 : vector<8x16x1xf32>
    %c0_52 = arith.constant 0 : index
    %c0_53 = arith.constant 0 : index
    %c0_54 = arith.constant 0 : index
    %87 = vector.load %arg2[%c0_52, %c0_53, %c0_54] : memref<8x16x32xf32, #tpu.memory_space<vmem>>, vector<8x16x32xf32>
    %88 = vector.broadcast %86 : vector<8x16x1xf32> to vector<8x16x32xf32>
    %89 = arith.mulf %88, %87 : vector<8x16x32xf32>
    %cst_55 = arith.constant dense<0.000000e+00> : vector<16x32xf32>
    %90 = vector.multi_reduction <add>, %89, %cst_55 [0] : vector<8x16x32xf32> to vector<16x32xf32>
    %cst_56 = arith.constant dense<0.000000e+00> : vector<16x1xf32>
    %91 = tpu.matmul %90, %23, %cst_56 {dimension_numbers = #tpu.dot_dimension_numbers<[1], [0], [0], [1], [0, 0, 1, 1], [], []>} : vector<16x32xf32>, vector<32x1xf32>, vector<16x1xf32> -> vector<16x1xf32>
    %92 = vector.broadcast %24 : vector<1x1xf32> to vector<16x1xf32>
    %93 = arith.addf %91, %92 : vector<16x1xf32>
    %94 = vector.shape_cast %93 : vector<16x1xf32> to vector<1x16xf32>
    %95 = arith.index_cast %c0_i32 : i32 to index
    %c0_57 = arith.constant 0 : index
    %96 = vector.load %arg15[%95, %c0_57] : memref<4x16xf32, #tpu.memory_space<vmem>>, vector<1x16xf32>
    tpu.vector_store %arg15[%95, %c0_57], %94 {strides = array<i32>} : memref<4x16xf32, #tpu.memory_space<vmem>>, vector<1x16xf32>,
    %c1_i32 = arith.constant 1 : i32
    %97 = vector.broadcast %93 : vector<16x1xf32> to vector<16x96xf32>
    %98 = vector.broadcast %18 : vector<1x96xf32> to vector<16x96xf32>
    %99 = arith.mulf %97, %98 : vector<16x96xf32>
    %100 = arith.index_cast %c1_i32 : i32 to index
    %c0_58 = arith.constant 0 : index
    %c0_59 = arith.constant 0 : index
    %101 = vector.load %arg17[%100, %c0_58, %c0_59] : memref<4x16x96xf32, #tpu.memory_space<vmem>>, vector<1x16x96xf32>
    %102 = vector.shape_cast %101 : vector<1x16x96xf32> to vector<16x96xf32>
    %103 = arith.addf %99, %102 : vector<16x96xf32>
    %cst_60 = arith.constant dense<0.000000e+00> : vector<16x96xf32>
    %104 = tpu.matmul %90, %19, %cst_60 {dimension_numbers = #tpu.dot_dimension_numbers<[1], [0], [0], [1], [0, 0, 1, 1], [], []>} : vector<16x32xf32>, vector<32x96xf32>, vector<16x96xf32> -> vector<16x96xf32>
    %105 = vector.broadcast %20 : vector<1x96xf32> to vector<16x96xf32>
    %106 = arith.addf %104, %105 : vector<16x96xf32>
    %107 = vector.extract_strided_slice %103 {offsets = [0, 0], sizes = [16, 32], strides = [1, 1]} : vector<16x96xf32> to vector<16x32xf32>
    %108 = vector.extract_strided_slice %106 {offsets = [0, 0], sizes = [16, 32], strides = [1, 1]} : vector<16x96xf32> to vector<16x32xf32>
    %109 = arith.addf %107, %108 : vector<16x32xf32>
    %110 = arith.negf %109 : vector<16x32xf32>
    %111 = math.exp %110 : vector<16x32xf32>
    %cst_61 = arith.constant 1.000000e+00 : f32
    %112 = vector.broadcast %cst_61 : f32 to vector<16x32xf32>
    %113 = arith.addf %112, %111 : vector<16x32xf32>
    %114 = arith.divf %112, %113 : vector<16x32xf32>
    %115 = vector.extract_strided_slice %103 {offsets = [0, 32], sizes = [16, 32], strides = [1, 1]} : vector<16x96xf32> to vector<16x32xf32>
    %116 = vector.extract_strided_slice %106 {offsets = [0, 32], sizes = [16, 32], strides = [1, 1]} : vector<16x96xf32> to vector<16x32xf32>
    %117 = arith.addf %115, %116 : vector<16x32xf32>
    %118 = arith.negf %117 : vector<16x32xf32>
    %119 = math.exp %118 : vector<16x32xf32>
    %cst_62 = arith.constant 1.000000e+00 : f32
    %120 = vector.broadcast %cst_62 : f32 to vector<16x32xf32>
    %121 = arith.addf %120, %119 : vector<16x32xf32>
    %122 = arith.divf %120, %121 : vector<16x32xf32>
    %123 = vector.extract_strided_slice %103 {offsets = [0, 64], sizes = [16, 32], strides = [1, 1]} : vector<16x96xf32> to vector<16x32xf32>
    %124 = vector.extract_strided_slice %106 {offsets = [0, 64], sizes = [16, 32], strides = [1, 1]} : vector<16x96xf32> to vector<16x32xf32>
    %125 = arith.mulf %114, %124 : vector<16x32xf32>
    %126 = arith.addf %123, %125 : vector<16x32xf32>
    %127 = math.tanh %126 : vector<16x32xf32>
    %cst_63 = arith.constant 1.000000e+00 : f32
    %128 = vector.broadcast %cst_63 : f32 to vector<16x32xf32>
    %129 = arith.subf %128, %122 : vector<16x32xf32>
    %130 = arith.mulf %129, %127 : vector<16x32xf32>
    %131 = arith.mulf %122, %90 : vector<16x32xf32>
    %132 = arith.addf %130, %131 : vector<16x32xf32>
    %cst_64 = arith.constant dense<0.000000e+00> : vector<16x32xf32>
    %133 = tpu.matmul %132, %21, %cst_64 {dimension_numbers = #tpu.dot_dimension_numbers<[1], [0], [0], [1], [0, 0, 1, 1], [], []>} : vector<16x32xf32>, vector<32x32xf32>, vector<16x32xf32> -> vector<16x32xf32>
    %c0_65 = arith.constant 0 : index
    %c0_66 = arith.constant 0 : index
    %c0_67 = arith.constant 0 : index
    %134 = vector.load %arg16[%c0_65, %c0_66, %c0_67] : memref<8x16x32xf32, #tpu.memory_space<vmem>>, vector<8x16x32xf32>
    %135 = vector.shape_cast %133 : vector<16x32xf32> to vector<1x16x32xf32>
    %136 = vector.broadcast %135 : vector<1x16x32xf32> to vector<8x16x32xf32>
    %137 = arith.addf %134, %136 : vector<8x16x32xf32>
    %138 = math.tanh %137 : vector<8x16x32xf32>
    %139 = vector.shape_cast %138 : vector<8x16x32xf32> to vector<128x32xf32>
    %cst_68 = arith.constant dense<0.000000e+00> : vector<128x1xf32>
    %140 = tpu.matmul %139, %22, %cst_68 {dimension_numbers = #tpu.dot_dimension_numbers<[1], [0], [0], [1], [0, 0, 1, 1], [], []>} : vector<128x32xf32>, vector<32x1xf32>, vector<128x1xf32> -> vector<128x1xf32>
    %141 = vector.shape_cast %140 : vector<128x1xf32> to vector<8x16x1xf32>
    %cst_69 = arith.constant dense<0xFF800000> : vector<16x1xf32>
    %142 = vector.multi_reduction <maximumf>, %141, %cst_69 [0] : vector<8x16x1xf32> to vector<16x1xf32>
    %143 = vector.shape_cast %142 : vector<16x1xf32> to vector<1x16x1xf32>
    %144 = vector.broadcast %143 : vector<1x16x1xf32> to vector<8x16x1xf32>
    %145 = arith.subf %141, %144 : vector<8x16x1xf32>
    %146 = math.exp %145 : vector<8x16x1xf32>
    %cst_70 = arith.constant dense<0.000000e+00> : vector<16x1xf32>
    %147 = vector.multi_reduction <add>, %146, %cst_70 [0] : vector<8x16x1xf32> to vector<16x1xf32>
    %148 = vector.shape_cast %147 : vector<16x1xf32> to vector<1x16x1xf32>
    %149 = tpu.reciprocal %148 {approx = true} : vector<1x16x1xf32> -> vector<1x16x1xf32>
    %150 = arith.mulf %148, %149 : vector<1x16x1xf32>
    %cst_71 = arith.constant 2.000000e+00 : f32
    %151 = vector.broadcast %cst_71 : f32 to vector<1x16x1xf32>
    %152 = arith.subf %151, %150 : vector<1x16x1xf32>
    %153 = arith.mulf %149, %152 : vector<1x16x1xf32>
    %154 = vector.broadcast %153 : vector<1x16x1xf32> to vector<8x16x1xf32>
    %155 = arith.mulf %146, %154 : vector<8x16x1xf32>
    %c0_72 = arith.constant 0 : index
    %c0_73 = arith.constant 0 : index
    %c0_74 = arith.constant 0 : index
    %156 = vector.load %arg2[%c0_72, %c0_73, %c0_74] : memref<8x16x32xf32, #tpu.memory_space<vmem>>, vector<8x16x32xf32>
    %157 = vector.broadcast %155 : vector<8x16x1xf32> to vector<8x16x32xf32>
    %158 = arith.mulf %157, %156 : vector<8x16x32xf32>
    %cst_75 = arith.constant dense<0.000000e+00> : vector<16x32xf32>
    %159 = vector.multi_reduction <add>, %158, %cst_75 [0] : vector<8x16x32xf32> to vector<16x32xf32>
    %cst_76 = arith.constant dense<0.000000e+00> : vector<16x1xf32>
    %160 = tpu.matmul %159, %23, %cst_76 {dimension_numbers = #tpu.dot_dimension_numbers<[1], [0], [0], [1], [0, 0, 1, 1], [], []>} : vector<16x32xf32>, vector<32x1xf32>, vector<16x1xf32> -> vector<16x1xf32>
    %161 = vector.broadcast %24 : vector<1x1xf32> to vector<16x1xf32>
    %162 = arith.addf %160, %161 : vector<16x1xf32>
    %163 = vector.shape_cast %162 : vector<16x1xf32> to vector<1x16xf32>
    %164 = arith.index_cast %c1_i32 : i32 to index
    %c0_77 = arith.constant 0 : index
    %165 = vector.load %arg15[%164, %c0_77] : memref<4x16xf32, #tpu.memory_space<vmem>>, vector<1x16xf32>
    tpu.vector_store %arg15[%164, %c0_77], %163 {strides = array<i32>} : memref<4x16xf32, #tpu.memory_space<vmem>>, vector<1x16xf32>,
    %c2_i32 = arith.constant 2 : i32
    %166 = vector.broadcast %162 : vector<16x1xf32> to vector<16x96xf32>
    %167 = vector.broadcast %18 : vector<1x96xf32> to vector<16x96xf32>
    %168 = arith.mulf %166, %167 : vector<16x96xf32>
    %169 = arith.index_cast %c2_i32 : i32 to index
    %c0_78 = arith.constant 0 : index
    %c0_79 = arith.constant 0 : index
    %170 = vector.load %arg17[%169, %c0_78, %c0_79] : memref<4x16x96xf32, #tpu.memory_space<vmem>>, vector<1x16x96xf32>
    %171 = vector.shape_cast %170 : vector<1x16x96xf32> to vector<16x96xf32>
    %172 = arith.addf %168, %171 : vector<16x96xf32>
    %cst_80 = arith.constant dense<0.000000e+00> : vector<16x96xf32>
    %173 = tpu.matmul %159, %19, %cst_80 {dimension_numbers = #tpu.dot_dimension_numbers<[1], [0], [0], [1], [0, 0, 1, 1], [], []>} : vector<16x32xf32>, vector<32x96xf32>, vector<16x96xf32> -> vector<16x96xf32>
    %174 = vector.broadcast %20 : vector<1x96xf32> to vector<16x96xf32>
    %175 = arith.addf %173, %174 : vector<16x96xf32>
    %176 = vector.extract_strided_slice %172 {offsets = [0, 0], sizes = [16, 32], strides = [1, 1]} : vector<16x96xf32> to vector<16x32xf32>
    %177 = vector.extract_strided_slice %175 {offsets = [0, 0], sizes = [16, 32], strides = [1, 1]} : vector<16x96xf32> to vector<16x32xf32>
    %178 = arith.addf %176, %177 : vector<16x32xf32>
    %179 = arith.negf %178 : vector<16x32xf32>
    %180 = math.exp %179 : vector<16x32xf32>
    %cst_81 = arith.constant 1.000000e+00 : f32
    %181 = vector.broadcast %cst_81 : f32 to vector<16x32xf32>
    %182 = arith.addf %181, %180 : vector<16x32xf32>
    %183 = arith.divf %181, %182 : vector<16x32xf32>
    %184 = vector.extract_strided_slice %172 {offsets = [0, 32], sizes = [16, 32], strides = [1, 1]} : vector<16x96xf32> to vector<16x32xf32>
    %185 = vector.extract_strided_slice %175 {offsets = [0, 32], sizes = [16, 32], strides = [1, 1]} : vector<16x96xf32> to vector<16x32xf32>
    %186 = arith.addf %184, %185 : vector<16x32xf32>
    %187 = arith.negf %186 : vector<16x32xf32>
    %188 = math.exp %187 : vector<16x32xf32>
    %cst_82 = arith.constant 1.000000e+00 : f32
    %189 = vector.broadcast %cst_82 : f32 to vector<16x32xf32>
    %190 = arith.addf %189, %188 : vector<16x32xf32>
    %191 = arith.divf %189, %190 : vector<16x32xf32>
    %192 = vector.extract_strided_slice %172 {offsets = [0, 64], sizes = [16, 32], strides = [1, 1]} : vector<16x96xf32> to vector<16x32xf32>
    %193 = vector.extract_strided_slice %175 {offsets = [0, 64], sizes = [16, 32], strides = [1, 1]} : vector<16x96xf32> to vector<16x32xf32>
    %194 = arith.mulf %183, %193 : vector<16x32xf32>
    %195 = arith.addf %192, %194 : vector<16x32xf32>
    %196 = math.tanh %195 : vector<16x32xf32>
    %cst_83 = arith.constant 1.000000e+00 : f32
    %197 = vector.broadcast %cst_83 : f32 to vector<16x32xf32>
    %198 = arith.subf %197, %191 : vector<16x32xf32>
    %199 = arith.mulf %198, %196 : vector<16x32xf32>
    %200 = arith.mulf %191, %159 : vector<16x32xf32>
    %201 = arith.addf %199, %200 : vector<16x32xf32>
    %cst_84 = arith.constant dense<0.000000e+00> : vector<16x32xf32>
    %202 = tpu.matmul %201, %21, %cst_84 {dimension_numbers = #tpu.dot_dimension_numbers<[1], [0], [0], [1], [0, 0, 1, 1], [], []>} : vector<16x32xf32>, vector<32x32xf32>, vector<16x32xf32> -> vector<16x32xf32>
    %c0_85 = arith.constant 0 : index
    %c0_86 = arith.constant 0 : index
    %c0_87 = arith.constant 0 : index
    %203 = vector.load %arg16[%c0_85, %c0_86, %c0_87] : memref<8x16x32xf32, #tpu.memory_space<vmem>>, vector<8x16x32xf32>
    %204 = vector.shape_cast %202 : vector<16x32xf32> to vector<1x16x32xf32>
    %205 = vector.broadcast %204 : vector<1x16x32xf32> to vector<8x16x32xf32>
    %206 = arith.addf %203, %205 : vector<8x16x32xf32>
    %207 = math.tanh %206 : vector<8x16x32xf32>
    %208 = vector.shape_cast %207 : vector<8x16x32xf32> to vector<128x32xf32>
    %cst_88 = arith.constant dense<0.000000e+00> : vector<128x1xf32>
    %209 = tpu.matmul %208, %22, %cst_88 {dimension_numbers = #tpu.dot_dimension_numbers<[1], [0], [0], [1], [0, 0, 1, 1], [], []>} : vector<128x32xf32>, vector<32x1xf32>, vector<128x1xf32> -> vector<128x1xf32>
    %210 = vector.shape_cast %209 : vector<128x1xf32> to vector<8x16x1xf32>
    %cst_89 = arith.constant dense<0xFF800000> : vector<16x1xf32>
    %211 = vector.multi_reduction <maximumf>, %210, %cst_89 [0] : vector<8x16x1xf32> to vector<16x1xf32>
    %212 = vector.shape_cast %211 : vector<16x1xf32> to vector<1x16x1xf32>
    %213 = vector.broadcast %212 : vector<1x16x1xf32> to vector<8x16x1xf32>
    %214 = arith.subf %210, %213 : vector<8x16x1xf32>
    %215 = math.exp %214 : vector<8x16x1xf32>
    %cst_90 = arith.constant dense<0.000000e+00> : vector<16x1xf32>
    %216 = vector.multi_reduction <add>, %215, %cst_90 [0] : vector<8x16x1xf32> to vector<16x1xf32>
    %217 = vector.shape_cast %216 : vector<16x1xf32> to vector<1x16x1xf32>
    %218 = tpu.reciprocal %217 {approx = true} : vector<1x16x1xf32> -> vector<1x16x1xf32>
    %219 = arith.mulf %217, %218 : vector<1x16x1xf32>
    %cst_91 = arith.constant 2.000000e+00 : f32
    %220 = vector.broadcast %cst_91 : f32 to vector<1x16x1xf32>
    %221 = arith.subf %220, %219 : vector<1x16x1xf32>
    %222 = arith.mulf %218, %221 : vector<1x16x1xf32>
    %223 = vector.broadcast %222 : vector<1x16x1xf32> to vector<8x16x1xf32>
    %224 = arith.mulf %215, %223 : vector<8x16x1xf32>
    %c0_92 = arith.constant 0 : index
    %c0_93 = arith.constant 0 : index
    %c0_94 = arith.constant 0 : index
    %225 = vector.load %arg2[%c0_92, %c0_93, %c0_94] : memref<8x16x32xf32, #tpu.memory_space<vmem>>, vector<8x16x32xf32>
    %226 = vector.broadcast %224 : vector<8x16x1xf32> to vector<8x16x32xf32>
    %227 = arith.mulf %226, %225 : vector<8x16x32xf32>
    %cst_95 = arith.constant dense<0.000000e+00> : vector<16x32xf32>
    %228 = vector.multi_reduction <add>, %227, %cst_95 [0] : vector<8x16x32xf32> to vector<16x32xf32>
    %cst_96 = arith.constant dense<0.000000e+00> : vector<16x1xf32>
    %229 = tpu.matmul %228, %23, %cst_96 {dimension_numbers = #tpu.dot_dimension_numbers<[1], [0], [0], [1], [0, 0, 1, 1], [], []>} : vector<16x32xf32>, vector<32x1xf32>, vector<16x1xf32> -> vector<16x1xf32>
    %230 = vector.broadcast %24 : vector<1x1xf32> to vector<16x1xf32>
    %231 = arith.addf %229, %230 : vector<16x1xf32>
    %232 = vector.shape_cast %231 : vector<16x1xf32> to vector<1x16xf32>
    %233 = arith.index_cast %c2_i32 : i32 to index
    %c0_97 = arith.constant 0 : index
    %234 = vector.load %arg15[%233, %c0_97] : memref<4x16xf32, #tpu.memory_space<vmem>>, vector<1x16xf32>
    tpu.vector_store %arg15[%233, %c0_97], %232 {strides = array<i32>} : memref<4x16xf32, #tpu.memory_space<vmem>>, vector<1x16xf32>,
    %c3_i32 = arith.constant 3 : i32
    %235 = vector.broadcast %231 : vector<16x1xf32> to vector<16x96xf32>
    %236 = vector.broadcast %18 : vector<1x96xf32> to vector<16x96xf32>
    %237 = arith.mulf %235, %236 : vector<16x96xf32>
    %238 = arith.index_cast %c3_i32 : i32 to index
    %c0_98 = arith.constant 0 : index
    %c0_99 = arith.constant 0 : index
    %239 = vector.load %arg17[%238, %c0_98, %c0_99] : memref<4x16x96xf32, #tpu.memory_space<vmem>>, vector<1x16x96xf32>
    %240 = vector.shape_cast %239 : vector<1x16x96xf32> to vector<16x96xf32>
    %241 = arith.addf %237, %240 : vector<16x96xf32>
    %cst_100 = arith.constant dense<0.000000e+00> : vector<16x96xf32>
    %242 = tpu.matmul %228, %19, %cst_100 {dimension_numbers = #tpu.dot_dimension_numbers<[1], [0], [0], [1], [0, 0, 1, 1], [], []>} : vector<16x32xf32>, vector<32x96xf32>, vector<16x96xf32> -> vector<16x96xf32>
    %243 = vector.broadcast %20 : vector<1x96xf32> to vector<16x96xf32>
    %244 = arith.addf %242, %243 : vector<16x96xf32>
    %245 = vector.extract_strided_slice %241 {offsets = [0, 0], sizes = [16, 32], strides = [1, 1]} : vector<16x96xf32> to vector<16x32xf32>
    %246 = vector.extract_strided_slice %244 {offsets = [0, 0], sizes = [16, 32], strides = [1, 1]} : vector<16x96xf32> to vector<16x32xf32>
    %247 = arith.addf %245, %246 : vector<16x32xf32>
    %248 = arith.negf %247 : vector<16x32xf32>
    %249 = math.exp %248 : vector<16x32xf32>
    %cst_101 = arith.constant 1.000000e+00 : f32
    %250 = vector.broadcast %cst_101 : f32 to vector<16x32xf32>
    %251 = arith.addf %250, %249 : vector<16x32xf32>
    %252 = arith.divf %250, %251 : vector<16x32xf32>
    %253 = vector.extract_strided_slice %241 {offsets = [0, 32], sizes = [16, 32], strides = [1, 1]} : vector<16x96xf32> to vector<16x32xf32>
    %254 = vector.extract_strided_slice %244 {offsets = [0, 32], sizes = [16, 32], strides = [1, 1]} : vector<16x96xf32> to vector<16x32xf32>
    %255 = arith.addf %253, %254 : vector<16x32xf32>
    %256 = arith.negf %255 : vector<16x32xf32>
    %257 = math.exp %256 : vector<16x32xf32>
    %cst_102 = arith.constant 1.000000e+00 : f32
    %258 = vector.broadcast %cst_102 : f32 to vector<16x32xf32>
    %259 = arith.addf %258, %257 : vector<16x32xf32>
    %260 = arith.divf %258, %259 : vector<16x32xf32>
    %261 = vector.extract_strided_slice %241 {offsets = [0, 64], sizes = [16, 32], strides = [1, 1]} : vector<16x96xf32> to vector<16x32xf32>
    %262 = vector.extract_strided_slice %244 {offsets = [0, 64], sizes = [16, 32], strides = [1, 1]} : vector<16x96xf32> to vector<16x32xf32>
    %263 = arith.mulf %252, %262 : vector<16x32xf32>
    %264 = arith.addf %261, %263 : vector<16x32xf32>
    %265 = math.tanh %264 : vector<16x32xf32>
    %cst_103 = arith.constant 1.000000e+00 : f32
    %266 = vector.broadcast %cst_103 : f32 to vector<16x32xf32>
    %267 = arith.subf %266, %260 : vector<16x32xf32>
    %268 = arith.mulf %267, %265 : vector<16x32xf32>
    %269 = arith.mulf %260, %228 : vector<16x32xf32>
    %270 = arith.addf %268, %269 : vector<16x32xf32>
    %cst_104 = arith.constant dense<0.000000e+00> : vector<16x32xf32>
    %271 = tpu.matmul %270, %21, %cst_104 {dimension_numbers = #tpu.dot_dimension_numbers<[1], [0], [0], [1], [0, 0, 1, 1], [], []>} : vector<16x32xf32>, vector<32x32xf32>, vector<16x32xf32> -> vector<16x32xf32>
    %c0_105 = arith.constant 0 : index
    %c0_106 = arith.constant 0 : index
    %c0_107 = arith.constant 0 : index
    %272 = vector.load %arg16[%c0_105, %c0_106, %c0_107] : memref<8x16x32xf32, #tpu.memory_space<vmem>>, vector<8x16x32xf32>
    %273 = vector.shape_cast %271 : vector<16x32xf32> to vector<1x16x32xf32>
    %274 = vector.broadcast %273 : vector<1x16x32xf32> to vector<8x16x32xf32>
    %275 = arith.addf %272, %274 : vector<8x16x32xf32>
    %276 = math.tanh %275 : vector<8x16x32xf32>
    %277 = vector.shape_cast %276 : vector<8x16x32xf32> to vector<128x32xf32>
    %cst_108 = arith.constant dense<0.000000e+00> : vector<128x1xf32>
    %278 = tpu.matmul %277, %22, %cst_108 {dimension_numbers = #tpu.dot_dimension_numbers<[1], [0], [0], [1], [0, 0, 1, 1], [], []>} : vector<128x32xf32>, vector<32x1xf32>, vector<128x1xf32> -> vector<128x1xf32>
    %279 = vector.shape_cast %278 : vector<128x1xf32> to vector<8x16x1xf32>
    %cst_109 = arith.constant dense<0xFF800000> : vector<16x1xf32>
    %280 = vector.multi_reduction <maximumf>, %279, %cst_109 [0] : vector<8x16x1xf32> to vector<16x1xf32>
    %281 = vector.shape_cast %280 : vector<16x1xf32> to vector<1x16x1xf32>
    %282 = vector.broadcast %281 : vector<1x16x1xf32> to vector<8x16x1xf32>
    %283 = arith.subf %279, %282 : vector<8x16x1xf32>
    %284 = math.exp %283 : vector<8x16x1xf32>
    %cst_110 = arith.constant dense<0.000000e+00> : vector<16x1xf32>
    %285 = vector.multi_reduction <add>, %284, %cst_110 [0] : vector<8x16x1xf32> to vector<16x1xf32>
    %286 = vector.shape_cast %285 : vector<16x1xf32> to vector<1x16x1xf32>
    %287 = tpu.reciprocal %286 {approx = true} : vector<1x16x1xf32> -> vector<1x16x1xf32>
    %288 = arith.mulf %286, %287 : vector<1x16x1xf32>
    %cst_111 = arith.constant 2.000000e+00 : f32
    %289 = vector.broadcast %cst_111 : f32 to vector<1x16x1xf32>
    %290 = arith.subf %289, %288 : vector<1x16x1xf32>
    %291 = arith.mulf %287, %290 : vector<1x16x1xf32>
    %292 = vector.broadcast %291 : vector<1x16x1xf32> to vector<8x16x1xf32>
    %293 = arith.mulf %284, %292 : vector<8x16x1xf32>
    %c0_112 = arith.constant 0 : index
    %c0_113 = arith.constant 0 : index
    %c0_114 = arith.constant 0 : index
    %294 = vector.load %arg2[%c0_112, %c0_113, %c0_114] : memref<8x16x32xf32, #tpu.memory_space<vmem>>, vector<8x16x32xf32>
    %295 = vector.broadcast %293 : vector<8x16x1xf32> to vector<8x16x32xf32>
    %296 = arith.mulf %295, %294 : vector<8x16x32xf32>
    %cst_115 = arith.constant dense<0.000000e+00> : vector<16x32xf32>
    %297 = vector.multi_reduction <add>, %296, %cst_115 [0] : vector<8x16x32xf32> to vector<16x32xf32>
    %cst_116 = arith.constant dense<0.000000e+00> : vector<16x1xf32>
    %298 = tpu.matmul %297, %23, %cst_116 {dimension_numbers = #tpu.dot_dimension_numbers<[1], [0], [0], [1], [0, 0, 1, 1], [], []>} : vector<16x32xf32>, vector<32x1xf32>, vector<16x1xf32> -> vector<16x1xf32>
    %299 = vector.broadcast %24 : vector<1x1xf32> to vector<16x1xf32>
    %300 = arith.addf %298, %299 : vector<16x1xf32>
    %301 = vector.shape_cast %300 : vector<16x1xf32> to vector<1x16xf32>
    %302 = arith.index_cast %c3_i32 : i32 to index
    %c0_117 = arith.constant 0 : index
    %303 = vector.load %arg15[%302, %c0_117] : memref<4x16xf32, #tpu.memory_space<vmem>>, vector<1x16xf32>
    tpu.vector_store %arg15[%302, %c0_117], %301 {strides = array<i32>} : memref<4x16xf32, #tpu.memory_space<vmem>>, vector<1x16xf32>,
    %c4_i32 = arith.constant 4 : i32
    return
  }
  func.func @transform_0(%arg0: i32) -> (i32, i32, i32) {
    %c0_i32 = arith.constant 0 : i32
    %c0_i32_0 = arith.constant 0 : i32
    %c0_i32_1 = arith.constant 0 : i32
    return %c0_i32, %arg0, %c0_i32_0 : i32, i32, i32
  }
  func.func @transform_1(%arg0: i32) -> (i32, i32, i32) {
    %c0_i32 = arith.constant 0 : i32
    %c0_i32_0 = arith.constant 0 : i32
    %c0_i32_1 = arith.constant 0 : i32
    return %c0_i32, %arg0, %c0_i32_0 : i32, i32, i32
  }
  func.func @transform_2(%arg0: i32) -> (i32, i32) {
    %c0_i32 = arith.constant 0 : i32
    %c0_i32_0 = arith.constant 0 : i32
    return %arg0, %c0_i32 : i32, i32
  }
  func.func @transform_3(%arg0: i32) -> (i32, i32) {
    %c0_i32 = arith.constant 0 : i32
    %c0_i32_0 = arith.constant 0 : i32
    %c0_i32_1 = arith.constant 0 : i32
    return %c0_i32, %c0_i32_0 : i32, i32
  }
  func.func @transform_4(%arg0: i32) -> (i32, i32) {
    %c0_i32 = arith.constant 0 : i32
    %c0_i32_0 = arith.constant 0 : i32
    %c0_i32_1 = arith.constant 0 : i32
    return %c0_i32, %c0_i32_0 : i32, i32
  }
  func.func @transform_5(%arg0: i32) -> (i32, i32) {
    %c0_i32 = arith.constant 0 : i32
    %c0_i32_0 = arith.constant 0 : i32
    %c0_i32_1 = arith.constant 0 : i32
    return %c0_i32, %c0_i32_0 : i32, i32
  }
  func.func @transform_6(%arg0: i32) -> (i32, i32) {
    %c0_i32 = arith.constant 0 : i32
    %c0_i32_0 = arith.constant 0 : i32
    %c0_i32_1 = arith.constant 0 : i32
    return %c0_i32, %c0_i32_0 : i32, i32
  }
  func.func @transform_7(%arg0: i32) -> (i32, i32) {
    %c0_i32 = arith.constant 0 : i32
    %c0_i32_0 = arith.constant 0 : i32
    %c0_i32_1 = arith.constant 0 : i32
    return %c0_i32, %c0_i32_0 : i32, i32
  }
  func.func @transform_8(%arg0: i32) -> (i32, i32) {
    %c0_i32 = arith.constant 0 : i32
    %c0_i32_0 = arith.constant 0 : i32
    %c0_i32_1 = arith.constant 0 : i32
    return %c0_i32, %c0_i32_0 : i32, i32
  }
  func.func @transform_9(%arg0: i32) -> (i32, i32) {
    %c0_i32 = arith.constant 0 : i32
    %c0_i32_0 = arith.constant 0 : i32
    %c0_i32_1 = arith.constant 0 : i32
    return %c0_i32, %c0_i32_0 : i32, i32
  }
  func.func @transform_10(%arg0: i32) -> (i32, i32) {
    %c0_i32 = arith.constant 0 : i32
    %c0_i32_0 = arith.constant 0 : i32
    %c0_i32_1 = arith.constant 0 : i32
    return %c0_i32, %c0_i32_0 : i32, i32
  }
  func.func @transform_11(%arg0: i32) -> (i32, i32) {
    %c0_i32 = arith.constant 0 : i32
    %c0_i32_0 = arith.constant 0 : i32
    %c0_i32_1 = arith.constant 0 : i32
    return %c0_i32, %c0_i32_0 : i32, i32
  }
  func.func @transform_12(%arg0: i32) -> (i32, i32) {
    %c0_i32 = arith.constant 0 : i32
    %c0_i32_0 = arith.constant 0 : i32
    %c0_i32_1 = arith.constant 0 : i32
    return %c0_i32, %c0_i32_0 : i32, i32
  }
  func.func @transform_13(%arg0: i32) -> (i32, i32) {
    %c0_i32 = arith.constant 0 : i32
    %c0_i32_0 = arith.constant 0 : i32
    %c0_i32_1 = arith.constant 0 : i32
    return %c0_i32, %c0_i32_0 : i32, i32
  }
  func.func @transform_14(%arg0: i32) -> (i32, i32) {
    %c0_i32 = arith.constant 0 : i32
    %c0_i32_0 = arith.constant 0 : i32
    return %c0_i32, %arg0 : i32, i32
  }
}

</mosaic_0001>

<bundles_post_ra>
// kernel: tpu_custom_call.1
= control target key start
LH: loop header
LB: loop body
LE: loop exit
PB: predicated region body
PF: predicated region fallthrough
CT: control target
= control target key end

     0   :  { %s4833_s0 = inlined_call_operand.vmem [shape: f32[4,16,16], index: 0, kind: input, shape index: {}]   ;;  %s4834_s1 = inlined_call_operand.hbm [shape: f32[8,16,32], index: 1, kind: input, shape index: {}]   ;;  %s4835_s2 = inlined_call_operand.vmem [shape: f32[16,1], index: 2, kind: input, shape index: {}]   ;;  %s4836_s3 = inlined_call_operand.vmem [shape: f32[1,96], index: 3, kind: input, shape index: {}]   ;;  %s4837_s4 = inlined_call_operand.vmem [shape: f32[16,96], index: 4, kind: input, shape index: {}]   ;;  %s4838_s5 = inlined_call_operand.hbm [shape: f32[32,96], index: 5, kind: input, shape index: {}]   ;;  %s4839_s6 = inlined_call_operand.vmem [shape: f32[1,96], index: 6, kind: input, shape index: {}]   ;;  %s4840_s7 = inlined_call_operand.vmem [shape: f32[1,96], index: 7, kind: input, shape index: {}]   ;;  %s4841_s8 = inlined_call_operand.hbm [shape: f32[32,32], index: 8, kind: input, shape index: {}]   ;;  %s4842_s9 = inlined_call_operand.hbm [shape: f32[32,32], index: 9, kind: input, shape index: {}]   ;;  %s4843_s10 = inlined_call_operand.vmem [shape: f32[1,32], index: 10, kind: input, shape index: {}]   ;;  %s4844_s11 = inlined_call_operand.vmem [shape: f32[32,1], index: 11, kind: input, shape index: {}]   ;;  %s4845_s12 = inlined_call_operand.vmem [shape: f32[32,1], index: 12, kind: input, shape index: {}]   ;;  %s4846_s13 = inlined_call_operand.<no memory space> [shape: f32[1,1], index: 13, kind: input, shape index: {}]   ;;  %s4847_s14 = inlined_call_operand.hbm [shape: f32[4,16], index: 14, kind: output, shape index: {}]  }
   0x1   :  { %v19_v0 = vstv %s4846_s13 }
   0x2   :  { %20 = vst [vmem:[#allocation4] sm:$0x1] %v19_v0 }
   0x3   :  { %21 = vsyncpa [#allocation6], 0 }
   0x4   :  { %22 = vsyncpa [#allocation9], 0 }
   0x5   :  { %23 = vsyncpa [#allocation12], 0 }
   0x6   :  { %24 = vsyncpa [#allocation7], 0  ;;  %s50_s17 = sshll.u32 %s4838_s5, 4  ;;  %s3545_s18 = smov [#allocation8]   ;;  %s51_s17 = int_to_ptr.hbm [resolvable:$true] %s50_s17 }
   0x7   :  { %s52_s19 = sshll.u32 %s3545_s18, 4  ;;  %s31_s22 = sshll.u32 %s4834_s1, 4  ;;  %s53_s19 = int_to_ptr.vmem [resolvable:$true] %s52_s19  ;;  %s32_s22 = int_to_ptr.hbm [resolvable:$true] %s31_s22 }
   0x8   :  { %s3546_s23 = smov 128   ;;  %s3547_s24 = smov 8  }
   0x9   :  { %58 = dma.hbm_to_vmem [thread:$0]  %s51_s17, 512, %s53_s19, [#allocation9], %s3546_s23, %s3546_s23, %s3547_s24  }
   0xa   :  { %s3548_s13 = smov [#allocation5]   ;;  %s67_s28 = sshll.u32 %s4841_s8, 4  ;;  %s68_s28 = int_to_ptr.hbm [resolvable:$true] %s67_s28 }
   0xb   :  { %s33_s25 = sshll.u32 %s3548_s13, 4  ;;  %s80_s30 = sshll.u32 %s4842_s9, 4  ;;  %s34_s25 = int_to_ptr.vmem [resolvable:$true] %s33_s25  ;;  %s81_s30 = int_to_ptr.hbm [resolvable:$true] %s80_s30 }
   0xc   :  { %39 = dma.hbm_to_vmem [thread:$0]  %s32_s22, 2048, %s34_s25, [#allocation6], %s3546_s23, %s3546_s23, %s3547_s24  }
   0xd   :  { %s3549_s15 = smov [#allocation10]   ;;  %s3550_s1 = smov [#allocation11]  }
   0xe   :  { %s69_s16 = sshll.u32 %s3549_s15, 4  ;;  %s82_s17 = sshll.u32 %s3550_s1, 4  ;;  %s70_s16 = int_to_ptr.vmem [resolvable:$true] %s69_s16  ;;  %s83_s17 = int_to_ptr.vmem [resolvable:$true] %s82_s17 }
   0xf   :  { %75 = dma.hbm_to_vmem [thread:$0]  %s68_s28, 512, %s70_s16, [#allocation9], %s3546_s23, %s3546_s23, %s3547_s24  }
  0x10   :  { %88 = dma.hbm_to_vmem [thread:$0]  %s81_s30, 512, %s83_s17, [#allocation12], %s3546_s23, %s3546_s23, %s3547_s24  }
  0x11   :  { %3537 = dma.done.wait [#allocation6], 2048  }
  0x12   :  { %3538 = vsyncadd [#allocation6], 4294965248 }
  0x13   :  { %3539 = dma.done.wait [#allocation9], 1024  }
  0x14   :  { %3540 = vsyncadd [#allocation9], 4294966272 }
  0x15   :  { %3541 = dma.done.wait [#allocation12], 512  }
  0x16   :  { %3542 = vsyncadd [#allocation12], 4294966784  ;;  %v132_v1 = vld [vmem:[#allocation10 + $0x18] sm:$0xff]  ;;  %v131_v2 = vld [vmem:[#allocation10 + $0x10] sm:$0xff]  ;;  %vm137_vm0 = vcmask 261120   ;;  %vm281_vm1 = vcmask 130048  }
  0x17   :  { %3052 = vmatpush.msra.mxu2 %v132_v1  ;;  %3051 = vmatpush.msra.mxu1 %v132_v1  ;;  %v130_v3 = vld [vmem:[#allocation10 + $0x8] sm:$0xff]  ;;  %v129_v4 = vld [vmem:[#allocation10] sm:$0xff]  ;;  %v123_v5 = vld [vmem:[#allocation5 + $0x50] sm:$0xff]  ;;  %v3551_v20 = vmov 0   ;;  %vm347_vm2 = vcmask 785408   ;;  %s3552_s5 = smov 64  }
  0x18   :  { %198 = vmatpush.msra.mxu0 %v132_v1  ;;  %v121_v6 = vld [vmem:[#allocation5 + $0x40] sm:$0xff]  ;;  %v360_v7 = vld [vmem:[#allocation8 + $0x18] sm:$0xff]  ;;  %v359_v8 = vld [vmem:[#allocation8 + $0x10] sm:$0xff]  ;;  %3070 = vset.pattern.permute.xlu0 %v3551_v20  ;;  %s3553_s29 = smov 32   ;;  %s3554_s16 = smov 96   ;;  %vm709_vm11 = vcmask 7168  }
  0x19   :  { %3054 = vmatpush.msra.mxu2 %v131_v2  ;;  %3053 = vmatpush.msra.mxu1 %v131_v2  ;;  %v358_v9 = vld [vmem:[#allocation8 + $0x8] sm:$0xff]  ;;  %v357_v10 = vld [vmem:[#allocation8] sm:$0xff]  ;;  %v124_v11 = vld [vmem:[#allocation5 + $0x58] sm:$0xff]  ;;  %vm1029_vm12 = vcmask 130112   ;;  %vm1032_vm13 = vcmask 122880  }
  0x1a   :  { %199 = vmatpush.msra.mxu0 %v131_v2  ;;  %v122_v12 = vld [vmem:[#allocation5 + $0x48] sm:$0xff]  ;;  %v275_v14 = vld [vmem:[%s4837_s4] sm:$0xff]  ;;  %3072 = vset.pattern.permute.xlu2 %v3551_v20  ;;  %v127_v21 = vld [vmem:[#allocation5 + $0x70] sm:$0xff] }
  0x1b   :  { %3056 = vmatpush.msra.mxu2 %v130_v3  ;;  %3055 = vmatpush.msra.mxu1 %v130_v3  ;;  %v276_v13 = vld [vmem:[%s4837_s4 + $0x8] sm:$0xff]  ;;  %v267_v16 = vld [vmem:[%s4833_s0] sm:$0xff] }
  0x1c   :  { %200 = vmatpush.msra.mxu0 %v130_v3  ;;  %v125_v15 = vld [vmem:[#allocation5 + $0x60] sm:$0xff]  ;;  %v126_v17 = vld [vmem:[#allocation5 + $0x68] sm:$0xff]  ;;  %3071 = vset.pattern.permute.xlu1 %v3551_v20  ;;  %v3673_v23 = vld [vmem:[#allocation5 + $0x78] sm:$0xff] }
  0x1d   :  { %3058 = vmatpush.msra.mxu2 %v129_v4  ;;  %3057 = vmatpush.msra.mxu1 %v129_v4  ;;  %v378_v18 = vld [vmem:[%s4835_s2] sm:$0xff]  ;;  %v268_v19 = vld [vmem:[%s4833_s0 + $0x8] sm:$0xff] }
  0x1e   :  { %2941 = vmatmul.msk.f32.vlgmr.msra.gmra.mxu2 %vm137_vm0, %v123_v5  ;;  %2939 = vmatmul.msk.f32.vlgmr.msra.gmra.mxu1 %vm137_vm0, %v121_v6  ;;  %v379_v22 = vld [vmem:[%s4835_s2 + $0x8] sm:$0xff]  ;;  %v3683_v24 = vld [vmem:[%s4843_s10] ss:$0 sm:$0xff] }
  0x1f   :  { %420 = vmatpush.msrb.mxu2 %v360_v7  ;;  %201 = vmatpush.msra.mxu0 %v129_v4  ;;  %v3694_v31 = vld [vmem:[%s4839_s6] ss:$0 sm:$0xff] }
  0x20   :  { %320 = vmatpush.msrb.mxu1 %v276_v13  ;;  %382 = vperm.xlu0 %3070, %v378_v18   ;;  %v3076_v46 = vld [vmem:[%s4840_s7] ss:$0 sm:$0xff] }
  0x21   :  { %421 = vmatpush.msrb.mxu2 %v359_v8  ;;  %v3075_v51 = vld [vmem:[%s4836_s3] ss:$0 sm:$0xff] }
  0x22   :  { %321 = vmatpush.msrb.mxu1 %v275_v14 }
  0x23   :  { %422 = vmatpush.msrb.mxu2 %v358_v9 }
  0x25   :  { %423 = vmatpush.msrb.mxu2 %v357_v10 }
  0x26   :  { %2942 = vmatmul.msk.f32.gmra.mxu2 %vm137_vm0, %v124_v11  ;;  %2940 = vmatmul.msk.f32.gmra.mxu1 %vm137_vm0, %v122_v12 }
  0x28   :  { %387 = vperm.xlu0 %3070, %v379_v22  }
  0x2e   :  { %2943 = vmatmul.msk.f32.gmra.mxu2 %vm137_vm0, %v125_v15  ;;  %2947 = vmatmul.msk.f32.vlgmr.msrb.gmra.mxu1 %vm281_vm1, %v267_v16 }
  0x36   :  { %2944 = vmatmul.msk.f32.gmra.mxu2 %vm137_vm0, %v126_v17  ;;  %2948 = vmatmul.msk.f32.gmra.mxu1 %vm281_vm1, %v268_v19 }
  0x3e   :  { %2945 = vmatmul.msk.f32.gmra.mxu2 %vm137_vm0, %v127_v21 }
  0x46   :  { %2946 = vmatmul.msk.f32.gmra.mxu2 %vm137_vm0, %v3673_v23 }
  0x4e   :  { %2955 = vmatmul.msk.f32.vlgmr.msrb.gmra.mxu2 %vm137_vm0, %v127_v21 }
  0x56   :  { %2956 = vmatmul.msk.f32.gmra.mxu2 %vm137_vm0, %v3673_v23 }
  0x92   :  { %v383_v52 = vpop.permute.xlu0 %382 }
  0x93   :  { %v393_v53 = vmul.f32 %v3075_v51, %v383_v52  ;;  %v272_v52 = vld [vmem:[%s4833_s0 + $0x28] sm:$0xff] }
  0x9a   :  { %v388_v56 = vpop.permute.xlu0 %387 }
  0x9b   :  { %v227_v25 = vpop.f32.mrf.mxu1  ;;  %v394_v58 = vmul.f32 %v3075_v51, %v388_v56  ;;  %v3758_v51 = vld [vmem:[#allocation5 + $0x18] sm:$0xff] }
  0x9c   :  { %v228_v26 = vadd.f32 %v3683_v24, %v227_v25 }
  0x9e   :  { %259 = vst.msk [vmem:[#allocation2 + $0x40] sm:$0xff] %vm137_vm0, %v228_v26 }
  0xa1   :  { %v233_v27 = vpop.f32.mrf.mxu2 }
  0xa2   :  { %v234_v28 = vadd.f32 %v3683_v24, %v233_v27 }
  0xa3   :  { %v230_v29 = vpop.f32.mrf.mxu1 }
  0xa4   :  { %261 = vst.msk [vmem:[#allocation2 + $0x50] sm:$0xff] %vm137_vm0, %v234_v28  ;;  %v231_v30 = vadd.f32 %v3683_v24, %v230_v29 }
  0xa6   :  { %260 = vst.msk [vmem:[#allocation2 + $0x48] sm:$0xff] %vm137_vm0, %v231_v30 }
  0xa9   :  { %v236_v32 = vpop.f32.mrf.mxu2 }
  0xaa   :  { %v237_v33 = vadd.f32 %v3683_v24, %v236_v32 }
  0xab   :  { %v323_v34 = vpop.f32.mrf.mxu1 }
  0xac   :  { %262 = vst.msk [vmem:[#allocation2 + $0x58] sm:$0xff] %vm137_vm0, %v237_v33  ;;  %v324_v35 = vadd.f32 %v3694_v31, %v323_v34 }
  0xae   :  { %348 = vst.msk [vmem:[#allocation3] sm:$0xff] %vm347_vm2, %v324_v35 }
  0xb1   :  { %v239_v36 = vpop.f32.mrf.mxu2 }
  0xb2   :  { %v240_v37 = vadd.f32 %v3683_v24, %v239_v36 }
  0xb3   :  { %v326_v42 = vpop.f32.mrf.mxu1 }
  0xb4   :  { %263 = vst.msk [vmem:[#allocation2 + $0x60] sm:$0xff] %vm137_vm0, %v240_v37  ;;  %v327_v43 = vadd.f32 %v3694_v31, %v326_v42  ;;  %v3725_v37 = vld [vmem:[#allocation11 + $0x18] sm:$0xff] }
  0xb5   :  { %v395_v54 = vld [vmem:[#allocation3] sm:$0xff]  ;;  %537 = vmatpush.msra.mxu1 %v3725_v37  ;;  %v270_v42 = vld [vmem:[%s4833_s0 + $0x18] sm:$0xff] }
  0xb6   :  { %349 = vst.msk [vmem:[#allocation3 + $0x8] sm:$0xff] %vm347_vm2, %v327_v43  ;;  %v397_v55 = vadd.f32 %v395_v54, %v393_v53  ;;  %v3750_v43 = vld [vmem:[#allocation5 + $0x10] sm:$0xff] }
  0xb9   :  { %v242_v38 = vpop.f32.mrf.mxu2 }
  0xba   :  { %v243_v39 = vadd.f32 %v3683_v24, %v242_v38  ;;  %v3727_v38 = vld [vmem:[#allocation5] sm:$0xff] }
  0xbb   :  { %2931 = vmatmul.msk.f32.vlgmr.msra.gmra.mxu0 %vm137_vm0, %v3727_v38 }
  0xbc   :  { %264 = vst.msk [vmem:[#allocation2 + $0x68] sm:$0xff] %vm137_vm0, %v243_v39  ;;  %v269_v39 = vld [vmem:[%s4833_s0 + $0x10] sm:$0xff] }
  0xbd   :  { %v396_v59 = vld [vmem:[#allocation3 + $0x8] sm:$0xff]  ;;  %2949 = vmatmul.msk.f32.gmra.mxu1 %vm281_vm1, %v269_v39 }
  0xbe   :  { %v398_v61 = vadd.f32 %v396_v59, %v394_v58  ;;  %v3767_v59 = vld [vmem:[#allocation5 + $0x20] sm:$0xff] }
  0xbf   :  { %v367_v39 = vld [vmem:[%s4844_s11 + $0x8] sm:$0xff] }
  0xc1   :  { %v245_v40 = vpop.f32.mrf.mxu2 }
  0xc2   :  { %v246_v41 = vadd.f32 %v3683_v24, %v245_v40  ;;  %v3735_v40 = vld [vmem:[#allocation11 + $0x10] sm:$0xff] }
  0xc3   :  { %538 = vmatpush.msra.mxu1 %v3735_v40 }
  0xc4   :  { %265 = vst.msk [vmem:[#allocation2 + $0x70] sm:$0xff] %vm137_vm0, %v246_v41  ;;  %v3742_v41 = vld [vmem:[#allocation5 + $0x8] sm:$0xff] }
  0xc5   :  { %2932 = vmatmul.msk.f32.gmra.mxu0 %vm137_vm0, %v3742_v41  ;;  %2950 = vmatmul.msk.f32.gmra.mxu1 %vm281_vm1, %v270_v42  ;;  %v366_v42 = vld [vmem:[%s4844_s11] sm:$0xff] }
  0xc9   :  { %v248_v44 = vpop.f32.mrf.mxu2 }
  0xca   :  { %v249_v45 = vadd.f32 %v3683_v24, %v248_v44  ;;  %v271_v44 = vld [vmem:[%s4833_s0 + $0x20] sm:$0xff] }
  0xcc   :  { %266 = vst.msk [vmem:[#allocation2 + $0x78] sm:$0xff] %vm137_vm0, %v249_v45 }
  0xcd   :  { %2933 = vmatmul.msk.f32.gmra.mxu0 %vm137_vm0, %v3750_v43  ;;  %2951 = vmatmul.msk.f32.gmra.mxu1 %vm281_vm1, %v271_v44 }
  0xd1   :  { %v425_v47 = vpop.f32.mrf.mxu2 }
  0xd2   :  { %v426_v48 = vadd.f32 %v3076_v46, %v425_v47 }
  0xd4   :  { %473 = vrot.lane.b32.xlu1 %v426_v48, %s3552_s5  ;;  %v431_v57 = vadd.f32 %v426_v48, %v397_v55 }
  0xd5   :  { %2934 = vmatmul.msk.f32.gmra.mxu0 %vm137_vm0, %v3758_v51  ;;  %2952 = vmatmul.msk.f32.gmra.mxu1 %vm281_vm1, %v272_v52 }
  0xd6   :  { %v2957_v60 = vmul.f32 -1.442695, %v431_v57 }
  0xd8   :  { %3078 = vpow2.f32 %v2957_v60  ;;  %v3772_v60 = vld [vmem:[#allocation5 + $0x28] sm:$0xff] }
  0xd9   :  { %v428_v49 = vpop.f32.mrf.mxu2 }
  0xda   :  { %v429_v50 = vadd.f32 %v3076_v46, %v428_v49 }
  0xdc   :  { %475 = vrot.lane.b32.xlu1 %v429_v50, %s3552_s5  ;;  %v432_v62 = vadd.f32 %v429_v50, %v398_v61 }
  0xdd   :  { %2935 = vmatmul.msk.f32.gmra.mxu0 %vm137_vm0, %v3767_v59 }
  0xde   :  { %v2958_v63 = vmul.f32 -1.442695, %v432_v62  ;;  %v3079_v0 = vpop.eup %3078  ;;  %v3779_v62 = vld [vmem:[#allocation11] sm:$0xff] }
  0xdf   :  { %v439_v1 = vadd.f32 1.0, %v3079_v0  ;;  %v274_v0 = vld [vmem:[%s4833_s0 + $0x38] sm:$0xff] }
  0xe0   :  { %3080 = vpow2.f32 %v2958_v63  ;;  %v3781_v63 = vld [vmem:[#allocation5 + $0x30] sm:$0xff] }
  0xe1   :  { %3082 = vrcp.f32 %v439_v1  ;;  %v452_v12 = vand.u32 2147483648, %v439_v1  ;;  %vm446_vm4 = vweird.f32 %v439_v1  ;;  %v450_v13 = vand.u32 2147483647, %v439_v1 }
  0xe3   :  { %v453_v16 = vor.u32 1.1754944e-38, %v452_v12  ;;  %vm451_vm6 = vcmp.eq.f32.partialorder %v450_v13, 8.507059e+37 }
  0xe4   :  { %505 = vrot.lane.b32.xlu1 %v127_v21, %s3553_s29 }
  0xe5   :  { %2936 = vmatmul.msk.f32.gmra.mxu0 %vm137_vm0, %v3772_v60 }
  0xe6   :  { %v3081_v2 = vpop.eup %3080 }
  0xe7   :  { %v440_v3 = vadd.f32 1.0, %v3081_v2  ;;  %v3083_v4 = vpop.eup %3082 }
  0xe8   :  { %v442_v5 = vmul.f32 %v3083_v4, %v439_v1  ;;  %vm447_vm3 = vweird.f32 %v3083_v4  ;;  %v3790_v1 = vld [vmem:[#allocation5 + $0x38] sm:$0xff] }
  0xe9   :  { %3084 = vrcp.f32 %v440_v3  ;;  %vm448_vm5 = vmor %vm446_vm4, %vm447_vm3  ;;  %vm461_vm7 = vweird.f32 %v440_v3  ;;  %v467_v19 = vand.u32 2147483648, %v440_v3  ;;  %v465_v22 = vand.u32 2147483647, %v440_v3 }
  0xea   :  { %v443_v6 = vsub.f32 1.0, %v442_v5 }
  0xeb   :  { %v468_v25 = vor.u32 1.1754944e-38, %v467_v19  ;;  %vm466_vm10 = vcmp.eq.f32.partialorder %v465_v22, 8.507059e+37 }
  0xec   :  { %v444_v8 = vmul.f32 %v3083_v4, %v443_v6 }
  0xed   :  { %2937 = vmatmul.msk.f32.gmra.mxu0 %vm137_vm0, %v3781_v63 }
  0xee   :  { %v445_v10 = vadd.f32 %v3083_v4, %v444_v8 }
  0xef   :  { %v3085_v7 = vpop.eup %3084 }
  0xf0   :  { %v457_v9 = vmul.f32 %v3085_v7, %v440_v3  ;;  %v449_v14 = vsel %vm448_vm5, %v3083_v4, %v445_v10  ;;  %vm462_vm8 = vweird.f32 %v3085_v7 }
  0xf1   :  { %v454_v18 = vsel %vm451_vm6, %v453_v16, %v449_v14  ;;  %vm463_vm9 = vmor %vm461_vm7, %vm462_vm8 }
  0xf2   :  { %v458_v11 = vsub.f32 1.0, %v457_v9  ;;  %v493_v46 = vsub.f32 1.0, %v454_v18 }
  0xf4   :  { %v459_v15 = vmul.f32 %v3085_v7, %v458_v11 }
  0xf5   :  { %2938 = vmatmul.msk.f32.gmra.mxu0 %vm137_vm0, %v3790_v1 }
  0xf6   :  { %v460_v21 = vadd.f32 %v3085_v7, %v459_v15 }
  0xf8   :  { %v464_v26 = vsel %vm463_vm9, %v3085_v7, %v460_v21 }
  0xf9   :  { %v469_v28 = vsel %vm466_vm10, %v468_v25, %v464_v26  ;;  %v369_v26 = vld [vmem:[%s4844_s11 + $0x18] sm:$0xff] }
  0xfa   :  { %v494_v54 = vsub.f32 1.0, %v469_v28  ;;  %656 = vmatpush.msra.mxu2 %v369_v26 }
 0x138   :  { %v203_v2 = vpop.f32.mrf.mxu0 }
 0x139   :  { %v204_v3 = vadd.f32 %v3683_v24, %v203_v2 }
 0x13a   :  { %v329_v4 = vpop.f32.mrf.mxu1 }
 0x13b   :  { %v330_v5 = vadd.f32 %v3694_v31, %v329_v4  ;;  %251 = vst.msk [vmem:[#allocation2] sm:$0xff] %vm137_vm0, %v204_v3 }
 0x13d   :  { %350 = vst.msk [vmem:[#allocation3 + $0x10] sm:$0xff] %vm347_vm2, %v330_v5 }
 0x142   :  { %v206_v6 = vpop.f32.mrf.mxu0  ;;  %v332_v8 = vpop.f32.mrf.mxu1 }
 0x143   :  { %v207_v7 = vadd.f32 %v3683_v24, %v206_v6  ;;  %v333_v9 = vadd.f32 %v3694_v31, %v332_v8 }
 0x145   :  { %252 = vst.msk [vmem:[#allocation2 + $0x8] sm:$0xff] %vm137_vm0, %v207_v7 }
 0x146   :  { %v474_v17 = vpop.permute.xlu1 %473  ;;  %351 = vst.msk [vmem:[#allocation3 + $0x18] sm:$0xff] %vm347_vm2, %v333_v9  ;;  %v3884_v9 = vld [vmem:[#allocation2 + $0x40] sm:$0xff] }
 0x147   :  { %v479_v20 = vmul.f32 %v474_v17, %v454_v18 }
 0x149   :  { %483 = vrot.lane.b32.xlu2 %v479_v20, %s3552_s5 }
 0x14a   :  { %v209_v11 = vpop.f32.mrf.mxu0  ;;  %v335_v13 = vpop.f32.mrf.mxu1 }
 0x14b   :  { %v210_v12 = vadd.f32 %v3683_v24, %v209_v11  ;;  %v336_v14 = vadd.f32 %v3694_v31, %v335_v13 }
 0x14d   :  { %253 = vst.msk [vmem:[#allocation2 + $0x10] sm:$0xff] %vm137_vm0, %v210_v12  ;;  %v3889_v12 = vld [vmem:[#allocation2 + $0x48] sm:$0xff] }
 0x14e   :  { %v476_v27 = vpop.permute.xlu1 %475  ;;  %352 = vst.msk [vmem:[#allocation3 + $0x20] sm:$0xff] %vm347_vm2, %v336_v14 }
 0x14f   :  { %v480_v29 = vmul.f32 %v476_v27, %v469_v28  ;;  %v368_v27 = vld [vmem:[%s4844_s11 + $0x10] sm:$0xff] }
 0x150   :  { %657 = vmatpush.msra.mxu2 %v368_v27 }
 0x151   :  { %485 = vrot.lane.b32.xlu2 %v480_v29, %s3552_s5 }
 0x152   :  { %v212_v16 = vpop.f32.mrf.mxu0  ;;  %658 = vmatpush.msra.mxu2 %v367_v39 }
 0x153   :  { %v213_v17 = vadd.f32 %v3683_v24, %v212_v16 }
 0x154   :  { %659 = vmatpush.msra.mxu2 %v366_v42 }
 0x155   :  { %254 = vst.msk [vmem:[#allocation2 + $0x18] sm:$0xff] %vm137_vm0, %v213_v17 }
 0x156   :  { %v506_v45 = vpop.permute.xlu1 %505  ;;  %2424 = vmatpush.msrb.mxu2 %v3725_v37 }
 0x157   :  { %v511_v48 = vmul.f32 %v506_v45, %v454_v18  ;;  %v338_v18 = vpop.f32.mrf.mxu1  ;;  %v3847_v45 = vld [vmem:[#allocation2 + $0x8] sm:$0xff] }
 0x158   :  { %v339_v19 = vadd.f32 %v3694_v31, %v338_v18  ;;  %2425 = vmatpush.msrb.mxu2 %v3735_v40  ;;  %v3899_v18 = vld [vmem:[#allocation2 + $0x58] sm:$0xff] }
 0x15a   :  { %353 = vst.msk [vmem:[#allocation3 + $0x28] sm:$0xff] %vm347_vm2, %v339_v19  ;;  %v215_v20 = vpop.f32.mrf.mxu0 }
 0x15b   :  { %v216_v21 = vadd.f32 %v3683_v24, %v215_v20 }
 0x15d   :  { %255 = vst.msk [vmem:[#allocation2 + $0x20] sm:$0xff] %vm137_vm0, %v216_v21  ;;  %v3904_v21 = vld [vmem:[#allocation2 + $0x60] sm:$0xff] }
 0x162   :  { %v218_v22 = vpop.f32.mrf.mxu0 }
 0x163   :  { %v219_v25 = vadd.f32 %v3683_v24, %v218_v22 }
 0x165   :  { %256 = vst.msk [vmem:[#allocation2 + $0x28] sm:$0xff] %vm137_vm0, %v219_v25 }
 0x16a   :  { %v221_v29 = vpop.f32.mrf.mxu0 }
 0x1a3   :  { %v484_v30 = vpop.permute.xlu2 %483 }
 0x1a4   :  { %v489_v32 = vadd.f32 %v484_v30, %v397_v55 }
 0x1a6   :  { %3086 = vtanh.f32 %v489_v32  ;;  %v222_v32 = vadd.f32 %v3683_v24, %v221_v29  ;;  %v3914_v29 = vld [vmem:[#allocation2 + $0x70] sm:$0xff] }
 0x1a7   :  { %4859 = vst [vmem:[#allocation19_spill] sm:$0xff] %v3914_v29 }
 0x1a8   :  { %257 = vst.msk [vmem:[#allocation2 + $0x30] sm:$0xff] %vm137_vm0, %v222_v32 }
 0x1ab   :  { %v486_v33 = vpop.permute.xlu2 %485 }
 0x1ac   :  { %v3087_v34 = vpop.eup %3086  ;;  %v490_v35 = vadd.f32 %v486_v33, %v398_v61  ;;  %v273_v61 = vld [vmem:[%s4833_s0 + $0x30] sm:$0xff] }
 0x1ad   :  { %497 = vrot.lane.b32.xlu0 %v3087_v34, %s3554_s16  ;;  %2953 = vmatmul.msk.f32.gmra.mxu1 %vm281_vm1, %v273_v61  ;;  %v224_v34 = vpop.f32.mrf.mxu0  ;;  %v3869_v61 = vld [vmem:[#allocation2 + $0x28] sm:$0xff] }
 0x1ae   :  { %3088 = vtanh.f32 %v490_v35 }
 0x1af   :  { %v3874_v3 = vld [vmem:[#allocation2 + $0x30] sm:$0xff] }
 0x1b4   :  { %v3089_v36 = vpop.eup %3088 }
 0x1b5   :  { %507 = vrot.lane.b32.xlu0 %v3673_v23, %s3553_s29  ;;  %499 = vrot.lane.b32.xlu2 %v3089_v36, %s3554_s16  ;;  %v3739_v23 = vld [vmem:[#allocation11 + $0x8] sm:$0xff]  ;;  %v225_v36 = vadd.f32 %v3683_v24, %v224_v34  ;;  %v3841_v24 = vld [vmem:[#allocation2] sm:$0xff] }
 0x1b6   :  { %539 = vmatpush.msra.mxu1 %v3739_v23  ;;  %2426 = vmatpush.msrb.mxu2 %v3739_v23 }
 0x1b7   :  { %2954 = vmatmul.msk.f32.gmra.mxu1 %vm281_vm1, %v274_v0  ;;  %258 = vst.msk [vmem:[#allocation2 + $0x38] sm:$0xff] %vm137_vm0, %v225_v36 }
 0x1b8   :  { %540 = vmatpush.msra.mxu1 %v3779_v62  ;;  %2427 = vmatpush.msrb.mxu2 %v3779_v62 }
 0x1ba   :  { %1291 = vmatpush.msrb.mxu1 %v369_v26  ;;  %v3909_v26 = vld [vmem:[#allocation2 + $0x68] sm:$0xff] }
 0x1bb   :  { %4858 = vst [vmem:[#allocation18_spill] sm:$0xff] %v3909_v26 }
 0x1bc   :  { %1292 = vmatpush.msrb.mxu1 %v368_v27 }
 0x1be   :  { %1293 = vmatpush.msrb.mxu1 %v367_v39  ;;  %v3879_v6 = vld [vmem:[#allocation2 + $0x38] sm:$0xff] }
 0x1c0   :  { %1294 = vmatpush.msrb.mxu1 %v366_v42 }
 0x20f   :  { %v500_v53 = vpop.permute.xlu2 %499 }
 0x210   :  { %v504_v56 = vmul.f32 %v500_v53, %v494_v54  ;;  %v3859_v53 = vld [vmem:[#allocation2 + $0x18] sm:$0xff] }
 0x21f   :  { %v498_v47 = vpop.permute.xlu0 %497 }
 0x220   :  { %v503_v49 = vmul.f32 %v498_v47, %v493_v46 }
 0x222   :  { %v513_v50 = vadd.f32 %v511_v48, %v503_v49  ;;  %v3854_v49 = vld [vmem:[#allocation2 + $0x10] sm:$0xff] }
 0x224   :  { %517 = vrot.lane.b32.xlu1 %v513_v50, %s3554_s16 }
 0x227   :  { %v508_v55 = vpop.permute.xlu0 %507 }
 0x228   :  { %v512_v57 = vmul.f32 %v508_v55, %v469_v28 }
 0x22a   :  { %v514_v58 = vadd.f32 %v512_v57, %v504_v56  ;;  %v341_v28 = vpop.f32.mrf.mxu1  ;;  %v3864_v56 = vld [vmem:[#allocation2 + $0x20] sm:$0xff] }
 0x22b   :  { %v342_v30 = vadd.f32 %v3694_v31, %v341_v28 }
 0x22c   :  { %519 = vrot.lane.b32.xlu2 %v514_v58, %s3554_s16 }
 0x22d   :  { %354 = vst.msk [vmem:[#allocation3 + $0x30] sm:$0xff] %vm347_vm2, %v342_v30 }
 0x234   :  { %v344_v33 = vpop.f32.mrf.mxu1 }
 0x235   :  { %v345_v35 = vadd.f32 %v3694_v31, %v344_v33  ;;  %v3919_v33 = vld [vmem:[#allocation2 + $0x78] sm:$0xff] }
 0x236   :  { %4860 = vst [vmem:[#allocation20_spill] sm:$0xff] %v3919_v33 }
 0x237   :  { %355 = vst.msk [vmem:[#allocation3 + $0x38] sm:$0xff] %vm347_vm2, %v345_v35 }
 0x286   :  { %v520_v15 = vpop.permute.xlu2 %519 }
 0x296   :  { %v518_v10 = vpop.permute.xlu1 %517 }
 0x297   :  { %2959 = vmatmul.msk.f32.vlgmr.msra.gmra.mxu1 %vm137_vm0, %v518_v10 }
 0x29f   :  { %2960 = vmatmul.msk.f32.gmra.mxu1 %vm137_vm0, %v520_v15  ;;  %v3894_v15 = vld [vmem:[#allocation2 + $0x50] sm:$0xff] }
 0x314   :  { %v3843_v31 = vpop.f32.mrf.mxu1 }
 0x315   :  { %v564_v44 = vadd.f32 %v3841_v24, %v3843_v31  ;;  %v566_v50 = vadd.f32 %v3854_v49, %v3843_v31  ;;  %v568_v57 = vadd.f32 %v3864_v56, %v3843_v31  ;;  %v570_v4 = vadd.f32 %v3874_v3, %v3843_v31 }
 0x316   :  { %v572_v10 = vadd.f32 %v3884_v9, %v3843_v31  ;;  %v574_v16 = vadd.f32 %v3894_v15, %v3843_v31  ;;  %v576_v22 = vadd.f32 %v3904_v21, %v3843_v31  ;;  %v578_v30 = vadd.f32 %v3914_v29, %v3843_v31 }
 0x317   :  { %3090 = vtanh.f32 %v564_v44 }
 0x31c   :  { %v3849_v46 = vpop.f32.mrf.mxu1 }
 0x31d   :  { %v3091_v47 = vpop.eup %3090  ;;  %v565_v48 = vadd.f32 %v3847_v45, %v3849_v46  ;;  %v567_v54 = vadd.f32 %v3859_v53, %v3849_v46  ;;  %v569_v0 = vadd.f32 %v3869_v61, %v3849_v46  ;;  %v571_v7 = vadd.f32 %v3879_v6, %v3849_v46 }
 0x31e   :  { %2961 = vmatmul.msk.f32.vlgmr.msra.gmra.mxu2 %vm137_vm0, %v3091_v47  ;;  %v573_v13 = vadd.f32 %v3889_v12, %v3849_v46  ;;  %v575_v19 = vadd.f32 %v3899_v18, %v3849_v46  ;;  %v577_v27 = vadd.f32 %v3909_v26, %v3849_v46  ;;  %v579_v34 = vadd.f32 %v3919_v33, %v3849_v46 }
 0x31f   :  { %3092 = vtanh.f32 %v565_v48 }
 0x320   :  { %3094 = vtanh.f32 %v566_v50 }
 0x321   :  { %3096 = vtanh.f32 %v567_v54 }
 0x322   :  { %3098 = vtanh.f32 %v568_v57 }
 0x323   :  { %3100 = vtanh.f32 %v569_v0 }
 0x324   :  { %3102 = vtanh.f32 %v570_v4 }
 0x325   :  { %v3093_v52 = vpop.eup %3092  ;;  %3104 = vtanh.f32 %v571_v7 }
 0x326   :  { %2962 = vmatmul.msk.f32.gmra.mxu2 %vm137_vm0, %v3093_v52  ;;  %v3095_v55 = vpop.eup %3094  ;;  %3106 = vtanh.f32 %v572_v10 }
 0x327   :  { %v3097_v58 = vpop.eup %3096  ;;  %3108 = vtanh.f32 %v573_v13 }
 0x328   :  { %v3099_v2 = vpop.eup %3098  ;;  %3110 = vtanh.f32 %v574_v16 }
 0x329   :  { %v3101_v5 = vpop.eup %3100  ;;  %3112 = vtanh.f32 %v575_v19 }
 0x32a   :  { %v3103_v8 = vpop.eup %3102  ;;  %3114 = vtanh.f32 %v576_v22 }
 0x32b   :  { %v3105_v11 = vpop.eup %3104  ;;  %3116 = vtanh.f32 %v577_v27 }
 0x32c   :  { %v3107_v14 = vpop.eup %3106  ;;  %3118 = vtanh.f32 %v578_v30 }
 0x32d   :  { %v3109_v17 = vpop.eup %3108  ;;  %3120 = vtanh.f32 %v579_v34 }
 0x32e   :  { %2963 = vmatmul.msk.f32.gmra.mxu2 %vm137_vm0, %v3095_v55  ;;  %v3111_v20 = vpop.eup %3110 }
 0x32f   :  { %v3113_v25 = vpop.eup %3112 }
 0x330   :  { %v3115_v28 = vpop.eup %3114 }
 0x331   :  { %v3117_v32 = vpop.eup %3116 }
 0x332   :  { %v3119_v35 = vpop.eup %3118 }
 0x333   :  { %v3121_v36 = vpop.eup %3120 }
 0x336   :  { %2964 = vmatmul.msk.f32.gmra.mxu2 %vm137_vm0, %v3097_v58 }
 0x33e   :  { %2965 = vmatmul.msk.f32.gmra.mxu2 %vm137_vm0, %v3099_v2 }
 0x346   :  { %2966 = vmatmul.msk.f32.gmra.mxu2 %vm137_vm0, %v3101_v5 }
 0x34e   :  { %2967 = vmatmul.msk.f32.gmra.mxu2 %vm137_vm0, %v3103_v8 }
 0x356   :  { %2968 = vmatmul.msk.f32.gmra.mxu2 %vm137_vm0, %v3105_v11 }
 0x35e   :  { %2969 = vmatmul.msk.f32.gmra.mxu2 %vm137_vm0, %v3107_v14 }
 0x366   :  { %2970 = vmatmul.msk.f32.gmra.mxu2 %vm137_vm0, %v3109_v17 }
 0x36e   :  { %2971 = vmatmul.msk.f32.gmra.mxu2 %vm137_vm0, %v3111_v20 }
 0x376   :  { %2972 = vmatmul.msk.f32.gmra.mxu2 %vm137_vm0, %v3113_v25 }
 0x37e   :  { %2973 = vmatmul.msk.f32.gmra.mxu2 %vm137_vm0, %v3115_v28 }
 0x386   :  { %2974 = vmatmul.msk.f32.gmra.mxu2 %vm137_vm0, %v3117_v32 }
 0x38e   :  { %2975 = vmatmul.msk.f32.gmra.mxu2 %vm137_vm0, %v3119_v35 }
 0x396   :  { %2976 = vmatmul.msk.f32.gmra.mxu2 %vm137_vm0, %v3121_v36 }
 0x3a1   :  { %v661_v39 = vpop.f32.mrf.mxu2 }
 0x3a2   :  { %v710_v5 = vsel %vm709_vm11, %v661_v39, -inf }
 0x3a9   :  { %v3925_v42 = vpop.f32.mrf.mxu2 }
 0x3aa   :  { %v725_v32 = vsel %vm709_vm11, %v3925_v42, -inf }
 0x3b1   :  { %v667_v31 = vpop.f32.mrf.mxu2 }
 0x3b2   :  { %v711_v7 = vsel %vm709_vm11, %v667_v31, -inf }
 0x3b9   :  { %v3927_v44 = vpop.f32.mrf.mxu2 }
 0x3ba   :  { %v726_v34 = vsel %vm709_vm11, %v3927_v44, -inf }
 0x3c1   :  { %v673_v47 = vpop.f32.mrf.mxu2 }
 0x3c2   :  { %v712_v2 = vsel %vm709_vm11, %v673_v47, -inf }
 0x3c3   :  { %v713_v11 = vmax.f32 %v710_v5, %v712_v2 }
 0x3c9   :  { %v3929_v48 = vpop.f32.mrf.mxu2 }
 0x3ca   :  { %v727_v27 = vsel %vm709_vm11, %v3929_v48, -inf }
 0x3d1   :  { %v679_v50 = vpop.f32.mrf.mxu2 }
 0x3d2   :  { %v714_v4 = vsel %vm709_vm11, %v679_v50, -inf }
 0x3d3   :  { %v715_v13 = vmax.f32 %v711_v7, %v714_v4 }
 0x3d9   :  { %v3931_v52 = vpop.f32.mrf.mxu2 }
 0x3da   :  { %v729_v28 = vsel %vm709_vm11, %v3931_v52, -inf }
 0x3e1   :  { %v685_v46 = vpop.f32.mrf.mxu2 }
 0x3e2   :  { %v716_v8 = vsel %vm709_vm11, %v685_v46, -inf }
 0x3e3   :  { %v717_v16 = vmax.f32 %v713_v11, %v716_v8  ;;  %v728_v8 = vmax.f32 %v725_v32, %v727_v27 }
 0x3e9   :  { %v3933_v54 = vpop.f32.mrf.mxu2 }
 0x3ea   :  { %v731_v35 = vsel %vm709_vm11, %v3933_v54, -inf }
 0x3f1   :  { %v691_v55 = vpop.f32.mrf.mxu2 }
 0x3f2   :  { %v718_v10 = vsel %vm709_vm11, %v691_v55, -inf }
 0x3f3   :  { %v719_v17 = vmax.f32 %v715_v13, %v718_v10  ;;  %v730_v10 = vmax.f32 %v726_v34, %v729_v28 }
 0x3f9   :  { %v3935_v57 = vpop.f32.mrf.mxu2 }
 0x3fa   :  { %v733_v36 = vsel %vm709_vm11, %v3935_v57, -inf }
 0x3fb   :  { %v734_v33 = vmax.f32 %v730_v10, %v733_v36 }
 0x401   :  { %v697_v58 = vpop.f32.mrf.mxu2 }
 0x402   :  { %v720_v14 = vsel %vm709_vm11, %v697_v58, -inf }
 0x403   :  { %v721_v22 = vmax.f32 %v717_v16, %v720_v14 }
 0x409   :  { %v3937_v0 = vpop.f32.mrf.mxu2 }
 0x40a   :  { %v735_v11 = vsel %vm709_vm11, %v3937_v0, -inf }
 0x411   :  { %v703_v19 = vpop.f32.mrf.mxu2 }
 0x412   :  { %v722_v20 = vsel %vm709_vm11, %v703_v19, -inf }
 0x413   :  { %v723_v25 = vmax.f32 %v719_v17, %v722_v20 }
 0x415   :  { %v724_v30 = vmax.f32 %v721_v22, %v723_v25  ;;  %v732_v25 = vmax.f32 %v728_v8, %v731_v35 }
 0x417   :  { %v740_v2 = vsub.f32 %v661_v39, %v724_v30  ;;  %v742_v4 = vsub.f32 %v667_v31, %v724_v30  ;;  %v744_v5 = vsub.f32 %v673_v47, %v724_v30  ;;  %v746_v7 = vsub.f32 %v679_v50, %v724_v30 }
 0x418   :  { %v748_v13 = vsub.f32 %v685_v46, %v724_v30  ;;  %v750_v14 = vsub.f32 %v691_v55, %v724_v30  ;;  %v752_v29 = vsub.f32 %v697_v58, %v724_v30  ;;  %v754_v39 = vsub.f32 %v703_v19, %v724_v30 }
 0x419   :  { %v756_v16 = vmul.f32 1.442695, %v740_v2  ;;  %v760_v17 = vmul.f32 1.442695, %v742_v4  ;;  %v764_v20 = vmul.f32 1.442695, %v744_v5  ;;  %v3961_v22 = vpop.f32.mrf.mxu2  ;;  %v736_v47 = vmax.f32 %v732_v25, %v735_v11 }
 0x41a   :  { %v768_v26 = vmul.f32 1.442695, %v746_v7  ;;  %v737_v31 = vsel %vm709_vm11, %v3961_v22, -inf  ;;  %v772_v50 = vmul.f32 1.442695, %v748_v13 }
 0x41b   :  { %3122 = vpow2.f32 %v756_v16  ;;  %v738_v27 = vmax.f32 %v734_v33, %v737_v31  ;;  %v776_v46 = vmul.f32 1.442695, %v750_v14  ;;  %v780_v55 = vmul.f32 1.442695, %v752_v29 }
 0x41c   :  { %3124 = vpow2.f32 %v760_v17  ;;  %v784_v32 = vmul.f32 1.442695, %v754_v39 }
 0x41d   :  { %3126 = vpow2.f32 %v764_v20  ;;  %v739_v28 = vmax.f32 %v736_v47, %v738_v27 }
 0x41e   :  { %3128 = vpow2.f32 %v768_v26 }
 0x41f   :  { %3130 = vpow2.f32 %v772_v50  ;;  %v741_v34 = vsub.f32 %v3925_v42, %v739_v28  ;;  %v743_v58 = vsub.f32 %v3927_v44, %v739_v28  ;;  %v745_v19 = vsub.f32 %v3929_v48, %v739_v28 }
 0x420   :  { %3132 = vpow2.f32 %v776_v46  ;;  %v747_v35 = vsub.f32 %v3931_v52, %v739_v28  ;;  %v749_v29 = vsub.f32 %v3933_v54, %v739_v28  ;;  %v751_v44 = vsub.f32 %v3935_v57, %v739_v28 }
 0x421   :  { %v3968_v30 = vpop.eup %3122  ;;  %3134 = vpow2.f32 %v780_v55  ;;  %v758_v48 = vmul.f32 1.442695, %v741_v34  ;;  %v762_v2 = vmul.f32 1.442695, %v743_v58  ;;  %v766_v5 = vmul.f32 1.442695, %v745_v19 }
 0x422   :  { %v3971_v36 = vpop.eup %3124  ;;  %v788_v26 = vsel %vm709_vm11, %v3968_v30, 0.0  ;;  %3136 = vpow2.f32 %v784_v32  ;;  %v770_v7 = vmul.f32 1.442695, %v747_v35  ;;  %v753_v11 = vsub.f32 %v3937_v0, %v739_v28 }
 0x423   :  { %v3976_v33 = vpop.eup %3126  ;;  %v789_v42 = vsel %vm709_vm11, %v3971_v36, 0.0  ;;  %3138 = vpow2.f32 %v758_v48  ;;  %v774_v13 = vmul.f32 1.442695, %v749_v29  ;;  %v755_v20 = vsub.f32 %v3961_v22, %v739_v28 }
 0x424   :  { %v3981_v4 = vpop.eup %3128  ;;  %v790_v52 = vadd.f32 %v789_v42, %v788_v26  ;;  %v791_v8 = vsel %vm709_vm11, %v3976_v33, 0.0  ;;  %3140 = vpow2.f32 %v762_v2  ;;  %v778_v25 = vmul.f32 1.442695, %v751_v44 }
 0x425   :  { %v3985_v54 = vpop.eup %3130  ;;  %v793_v14 = vsel %vm709_vm11, %v3981_v4, 0.0  ;;  %3142 = vpow2.f32 %v766_v5  ;;  %v782_v47 = vmul.f32 1.442695, %v753_v11  ;;  %v786_v32 = vmul.f32 1.442695, %v755_v20 }
 0x426   :  { %v792_v10 = vadd.f32 %v791_v8, %v790_v52  ;;  %v3988_v57 = vpop.eup %3132  ;;  %3144 = vpow2.f32 %v770_v7  ;;  %v795_v39 = vsel %vm709_vm11, %v3985_v54, 0.0 }
 0x427   :  { %v3992_v16 = vpop.eup %3134  ;;  %3146 = vpow2.f32 %v774_v13  ;;  %v797_v27 = vsel %vm709_vm11, %v3988_v57, 0.0 }
 0x428   :  { %v794_v17 = vadd.f32 %v793_v14, %v792_v10  ;;  %v3137_v31 = vpop.eup %3136  ;;  %3148 = vpow2.f32 %v778_v25  ;;  %v799_v28 = vsel %vm709_vm11, %v3992_v16, 0.0 }
 0x429   :  { %v3139_v50 = vpop.eup %3138  ;;  %3150 = vpow2.f32 %v782_v47  ;;  %v801_v29 = vsel %vm709_vm11, %v3137_v31, 0.0 }
 0x42a   :  { %v796_v0 = vadd.f32 %v795_v39, %v794_v17  ;;  %v3141_v46 = vpop.eup %3140  ;;  %v803_v34 = vsel %vm709_vm11, %v3139_v50, 0.0  ;;  %3152 = vpow2.f32 %v786_v32 }
 0x42b   :  { %v3143_v22 = vpop.eup %3142  ;;  %v804_v58 = vsel %vm709_vm11, %v3141_v46, 0.0 }
 0x42c   :  { %v798_v55 = vadd.f32 %v797_v27, %v796_v0  ;;  %v3145_v19 = vpop.eup %3144  ;;  %v805_v26 = vadd.f32 %v804_v58, %v803_v34  ;;  %v806_v42 = vsel %vm709_vm11, %v3143_v22, 0.0 }
 0x42d   :  { %v3147_v44 = vpop.eup %3146  ;;  %v808_v52 = vsel %vm709_vm11, %v3145_v19, 0.0 }
 0x42e   :  { %v800_v35 = vadd.f32 %v799_v28, %v798_v55  ;;  %v807_v2 = vadd.f32 %v806_v42, %v805_v26  ;;  %v3149_v5 = vpop.eup %3148  ;;  %v810_v8 = vsel %vm709_vm11, %v3147_v44, 0.0 }
 0x42f   :  { %v3151_v10 = vpop.eup %3150  ;;  %v812_v13 = vsel %vm709_vm11, %v3149_v5, 0.0 }
 0x430   :  { %v802_v48 = vadd.f32 %v801_v29, %v800_v35  ;;  %v809_v7 = vadd.f32 %v808_v52, %v807_v2  ;;  %v3153_v14 = vpop.eup %3152  ;;  %v814_v20 = vsel %vm709_vm11, %v3151_v10, 0.0 }
 0x431   :  { %v816_v47 = vsel %vm709_vm11, %v3153_v14, 0.0 }
 0x432   :  { %3154 = vrcp.f32 %v802_v48  ;;  %v811_v11 = vadd.f32 %v810_v8, %v809_v7 }
 0x434   :  { %v813_v17 = vadd.f32 %v812_v13, %v811_v11 }
 0x436   :  { %v815_v39 = vadd.f32 %v814_v20, %v813_v17  ;;  %v4055_v20 = vld [vmem:[#allocation8 + $0x10] sm:$0xff] }
 0x438   :  { %v3155_v25 = vpop.eup %3154  ;;  %v817_v27 = vadd.f32 %v816_v47, %v815_v39  ;;  %v4061_v39 = vld [vmem:[#allocation8 + $0x8] sm:$0xff] }
 0x439   :  { %v820_v0 = vmul.f32 %v3155_v25, %v802_v48 }
 0x43a   :  { %3156 = vrcp.f32 %v817_v27 }
 0x43b   :  { %v822_v55 = vsub.f32 2.0, %v820_v0  ;;  %v4066_v0 = vld [vmem:[#allocation8] sm:$0xff] }
 0x43d   :  { %v824_v32 = vmul.f32 %v3155_v25, %v822_v55 }
 0x43f   :  { %v830_v34 = vmul.f32 %v3976_v33, %v824_v32  ;;  %v828_v28 = vmul.f32 %v3971_v36, %v824_v32  ;;  %v826_v58 = vmul.f32 %v3968_v30, %v824_v32  ;;  %v840_v42 = vmul.f32 %v3137_v31, %v824_v32 }
 0x440   :  { %v3157_v35 = vpop.eup %3156  ;;  %v834_v48 = vmul.f32 %v3985_v54, %v824_v32  ;;  %v832_v2 = vmul.f32 %v3981_v4, %v824_v32  ;;  %v836_v33 = vmul.f32 %v3988_v57, %v824_v32  ;;  %v838_v30 = vmul.f32 %v3992_v16, %v824_v32  ;;  %v4020_v57 = vld [vmem:[%s4845_s12 + $0x18] sm:$0xff]  ;;  %v4025_v16 = vld [vmem:[%s4845_s12 + $0x10] sm:$0xff] }
 0x441   :  { %880 = vperm.xlu2 %3072, %v830_v34   ;;  %870 = vperm.xlu1 %3071, %v828_v28   ;;  %v821_v26 = vmul.f32 %v3157_v35, %v817_v27 }
 0x442   :  { %860 = vperm.xlu0 %3070, %v826_v58   ;;  %1005 = vmatpush.msra.mxu3 %v4020_v57 }
 0x443   :  { %v823_v29 = vsub.f32 2.0, %v821_v26  ;;  %2262 = vmatpush.msrb.mxu0 %v4020_v57  ;;  %2888 = vmatpush.msra.mxu2 %v4020_v57  ;;  %v3402_v26 = vld [vmem:[#allocation5 + $0x40] sm:$0xff] }
 0x444   :  { %1006 = vmatpush.msra.mxu3 %v4025_v16 }
 0x445   :  { %v825_v52 = vmul.f32 %v3157_v35, %v823_v29  ;;  %2263 = vmatpush.msrb.mxu0 %v4025_v16  ;;  %2889 = vmatpush.msra.mxu2 %v4025_v16 }
 0x447   :  { %v827_v36 = vmul.f32 %v3139_v50, %v825_v52  ;;  %v833_v7 = vmul.f32 %v3145_v19, %v825_v52  ;;  %v831_v8 = vmul.f32 %v3143_v22, %v825_v52  ;;  %v829_v11 = vmul.f32 %v3141_v46, %v825_v52  ;;  %v4032_v50 = vld [vmem:[%s4845_s12 + $0x8] sm:$0xff]  ;;  %v4044_v22 = vld [vmem:[%s4845_s12] sm:$0xff] }
 0x448   :  { %v837_v54 = vmul.f32 %v3149_v5, %v825_v52  ;;  %v839_v4 = vmul.f32 %v3151_v10, %v825_v52  ;;  %v835_v31 = vmul.f32 %v3147_v44, %v825_v52  ;;  %v841_v13 = vmul.f32 %v3153_v14, %v825_v52  ;;  %1007 = vmatpush.msra.mxu3 %v4032_v50  ;;  %v4049_v10 = vld [vmem:[#allocation8 + $0x18] sm:$0xff] }
 0x449   :  { %930 = vperm.xlu2 %3072, %v840_v42   ;;  %900 = vperm.xlu1 %3071, %v834_v48   ;;  %v4073_v42 = vld [vmem:[#allocation5 + $0x50] sm:$0xff]  ;;  %v4075_v48 = vld [vmem:[#allocation5 + $0x60] sm:$0xff] }
 0x44a   :  { %890 = vperm.xlu0 %3070, %v832_v2   ;;  %2264 = vmatpush.msrb.mxu0 %v4032_v50 }
 0x44b   :  { %2890 = vmatpush.msra.mxu2 %v4032_v50  ;;  %1008 = vmatpush.msra.mxu3 %v4044_v22 }
 0x44c   :  { %2265 = vmatpush.msrb.mxu0 %v4044_v22 }
 0x44d   :  { %1055 = vmatpush.msrb.mxu3 %v4049_v10  ;;  %2891 = vmatpush.msra.mxu2 %v4044_v22 }
 0x44e   :  { %2307 = vmatpush.msra.mxu0 %v4049_v10 }
 0x44f   :  { %1056 = vmatpush.msrb.mxu3 %v4055_v20 }
 0x450   :  { %2308 = vmatpush.msra.mxu0 %v4055_v20 }
 0x451   :  { %910 = vperm.xlu1 %3071, %v836_v33   ;;  %865 = vperm.xlu2 %3072, %v827_v36  }
 0x452   :  { %920 = vperm.xlu0 %3070, %v838_v30   ;;  %1057 = vmatpush.msrb.mxu3 %v4061_v39 }
 0x453   :  { %2309 = vmatpush.msra.mxu0 %v4061_v39 }
 0x454   :  { %1058 = vmatpush.msrb.mxu3 %v4066_v0 }
 0x455   :  { %2310 = vmatpush.msra.mxu0 %v4066_v0 }
 0x459   :  { %895 = vperm.xlu1 %3071, %v833_v7   ;;  %885 = vperm.xlu2 %3072, %v831_v8   ;;  %v3403_v7 = vld [vmem:[#allocation5 + $0x70] sm:$0xff] }
 0x45a   :  { %875 = vperm.xlu0 %3070, %v829_v11  }
 0x461   :  { %915 = vperm.xlu1 %3071, %v837_v54   ;;  %925 = vperm.xlu2 %3072, %v839_v4  }
 0x462   :  { %905 = vperm.xlu0 %3070, %v835_v31  }
 0x46a   :  { %935 = vperm.xlu0 %3070, %v841_v13  }
 0x49b   :  { %v881_v46 = vpop.permute.xlu2 %880 }
 0x4a3   :  { %v931_v17 = vpop.permute.xlu2 %930 }
 0x4a4   :  { %v952_v8 = vmul.f32 %v3403_v7, %v931_v17 }
 0x4a6   :  { %v967_v13 = vsel %vm137_vm0, %v952_v8, 0.0  ;;  %v4127_v8 = vld [vmem:[#allocation4] ss:$0 sm:$0xff] }
 0x4ab   :  { %v866_v35 = vpop.permute.xlu2 %865 }
 0x4b3   :  { %v871_v19 = vpop.permute.xlu1 %870 }
 0x4b4   :  { %v940_v44 = vmul.f32 %v871_v19, %v3750_v43  ;;  %v861_v5 = vpop.permute.xlu0 %860  ;;  %v939_v19 = vmul.f32 %v866_v35, %v3742_v41 }
 0x4b5   :  { %v938_v14 = vmul.f32 %v861_v5, %v3727_v38  ;;  %v942_v38 = vmul.f32 %v881_v46, %v3767_v59  ;;  %v886_v46 = vpop.permute.xlu2 %885 }
 0x4b6   :  { %v955_v43 = vsel %vm137_vm0, %v940_v44, 0.0  ;;  %v969_v17 = vsel %vm137_vm0, %v939_v19, 0.0 }
 0x4b7   :  { %v954_v25 = vsel %vm137_vm0, %v938_v14, 0.0  ;;  %v957_v34 = vsel %vm137_vm0, %v942_v38, 0.0 }
 0x4b8   :  { %v956_v47 = vadd.f32 %v955_v43, %v954_v25  ;;  %v943_v43 = vmul.f32 %v886_v46, %v3772_v60  ;;  %v4096_v60 = vld [vmem:[#allocation5 + $0x58] sm:$0xff]  ;;  %v1024_v46 = vlaneseq }
 0x4ba   :  { %v958_v28 = vadd.f32 %v957_v34, %v956_v47  ;;  %v972_v41 = vsel %vm137_vm0, %v943_v43, 0.0  ;;  %v4140_v19 = vand.u32 127, %v1024_v46  ;;  %v4148_v43 = vld [vmem:[%s4836_s3] ss:$0 sm:$0xff] }
 0x4bb   :  { %v901_v27 = vpop.permute.xlu1 %900 }
 0x4bc   :  { %v891_v55 = vpop.permute.xlu0 %890  ;;  %v946_v29 = vmul.f32 %v3402_v26, %v901_v27 }
 0x4bd   :  { %v944_v32 = vmul.f32 %v891_v55, %v3781_v63 }
 0x4be   :  { %v961_v52 = vsel %vm137_vm0, %v946_v29, 0.0 }
 0x4bf   :  { %v959_v58 = vsel %vm137_vm0, %v944_v32, 0.0 }
 0x4c0   :  { %v960_v59 = vadd.f32 %v959_v58, %v958_v28  ;;  %v4105_v58 = vld [vmem:[#allocation5 + $0x68] sm:$0xff] }
 0x4c2   :  { %v962_v63 = vadd.f32 %v961_v52, %v960_v59  ;;  %v4110_v52 = vld [vmem:[#allocation5 + $0x78] sm:$0xff] }
 0x4c3   :  { %v911_v2 = vpop.permute.xlu1 %910 }
 0x4c4   :  { %v948_v33 = vmul.f32 %v911_v2, %v4073_v42  ;;  %v921_v36 = vpop.permute.xlu0 %920 }
 0x4c5   :  { %v950_v30 = vmul.f32 %v921_v36, %v4075_v48 }
 0x4c6   :  { %v963_v11 = vsel %vm137_vm0, %v948_v33, 0.0 }
 0x4c7   :  { %v964_v54 = vadd.f32 %v963_v11, %v962_v63  ;;  %v965_v4 = vsel %vm137_vm0, %v950_v30, 0.0 }
 0x4c9   :  { %v966_v31 = vadd.f32 %v965_v4, %v964_v54 }
 0x4cb   :  { %v896_v44 = vpop.permute.xlu1 %895  ;;  %v4084_v5 = vadd.f32 %v967_v13, %v966_v31 }
 0x4cc   :  { %v876_v14 = vpop.permute.xlu0 %875  ;;  %v945_v27 = vmul.f32 %v896_v44, %v3790_v1  ;;  %v926_v1 = vpop.permute.xlu2 %925  ;;  %v4143_v44 = vadd.s32 4294967288, %v4140_v19 }
 0x4cd   :  { %v941_v25 = vmul.f32 %v876_v14, %v3758_v51  ;;  %2977 = vmatmul.msk.f32.vlgmr.msra.gmra.mxu3 %vm137_vm0, %v4084_v5  ;;  %v4098_v51 = vld [vmem:[#allocation5 + $0x48] sm:$0xff]  ;;  %v951_v59 = vmul.f32 %v926_v1, %v4105_v58 }
 0x4ce   :  { %1172 = vmatpush.msra.mxu3 %v3725_v37  ;;  %v974_v34 = vsel %vm137_vm0, %v945_v27, 0.0 }
 0x4cf   :  { %v970_v38 = vsel %vm137_vm0, %v941_v25, 0.0  ;;  %v980_v33 = vsel %vm137_vm0, %v951_v59, 0.0 }
 0x4d0   :  { %v971_v47 = vadd.f32 %v970_v38, %v969_v17  ;;  %1173 = vmatpush.msra.mxu3 %v3735_v40  ;;  %v1040_v17 = vld [vmem:[#allocation3 + $0x18] sm:$0xff] }
 0x4d2   :  { %v973_v55 = vadd.f32 %v972_v41, %v971_v47  ;;  %1174 = vmatpush.msra.mxu3 %v3739_v23 }
 0x4d3   :  { %v916_v32 = vpop.permute.xlu1 %915 }
 0x4d4   :  { %v906_v37 = vpop.permute.xlu0 %905  ;;  %1175 = vmatpush.msra.mxu3 %v3779_v62  ;;  %v949_v28 = vmul.f32 %v916_v32, %v4096_v60  ;;  %v975_v35 = vadd.f32 %v974_v34, %v973_v55 }
 0x4d5   :  { %v947_v40 = vmul.f32 %v906_v37, %v4098_v51  ;;  %v1039_v37 = vld [vmem:[#allocation3 + $0x10] sm:$0xff] }
 0x4d6   :  { %v978_v23 = vsel %vm137_vm0, %v949_v28, 0.0 }
 0x4d7   :  { %v976_v26 = vsel %vm137_vm0, %v947_v40, 0.0 }
 0x4d8   :  { %v977_v29 = vadd.f32 %v976_v26, %v975_v35 }
 0x4da   :  { %v979_v2 = vadd.f32 %v978_v23, %v977_v29 }
 0x4dc   :  { %v936_v62 = vpop.permute.xlu0 %935  ;;  %v981_v63 = vadd.f32 %v980_v33, %v979_v2 }
 0x4dd   :  { %v953_v36 = vmul.f32 %v936_v62, %v4110_v52 }
 0x4df   :  { %v982_v30 = vsel %vm137_vm0, %v953_v36, 0.0 }
 0x4e0   :  { %v4115_v7 = vadd.f32 %v982_v30, %v981_v63 }
 0x4e2   :  { %2978 = vmatmul.msk.f32.gmra.mxu3 %vm137_vm0, %v4115_v7 }
 0x4ea   :  { %2979 = vmatmul.msk.f32.vlgmr.msrb.gmra.mxu3 %vm137_vm0, %v4084_v5 }
 0x4eb   :  { %1636 = vmatpush.msrb.mxu3 %v4020_v57 }
 0x4ed   :  { %1637 = vmatpush.msrb.mxu3 %v4025_v16  ;;  %v4134_v16 = vld [vmem:[%s4840_s7] ss:$0 sm:$0xff] }
 0x4ef   :  { %1638 = vmatpush.msrb.mxu3 %v4032_v50 }
 0x4f1   :  { %1639 = vmatpush.msrb.mxu3 %v4044_v22 }
 0x4f2   :  { %2980 = vmatmul.msk.f32.gmra.mxu3 %vm137_vm0, %v4115_v7 }
 0x550   :  { %v1010_v11 = vpop.f32.mrf.mxu3 }
 0x551   :  { %v1011_v54 = vadd.f32 %v4127_v8, %v1010_v11 }
 0x553   :  { %1019 = vperm.xlu1 %3071, %v1011_v54  }
 0x565   :  { %v1013_v4 = vpop.f32.mrf.mxu3 }
 0x566   :  { %v1014_v31 = vadd.f32 %v4127_v8, %v1013_v4 }
 0x568   :  { %1022 = vperm.xlu2 %3072, %v1014_v31  }
 0x56d   :  { %v1060_v57 = vpop.f32.mrf.mxu3 }
 0x56e   :  { %v1061_v50 = vadd.f32 %v4134_v16, %v1060_v57 }
 0x570   :  { %1108 = vrot.lane.b32.xlu0 %v1061_v50, %s3552_s5 }
 0x575   :  { %v1063_v22 = vpop.f32.mrf.mxu3 }
 0x576   :  { %v1064_v13 = vadd.f32 %v4134_v16, %v1063_v22 }
 0x578   :  { %1110 = vrot.lane.b32.xlu1 %v1064_v13, %s3552_s5 }
 0x5c2   :  { %v1023_v14 = vpop.permute.xlu2 %1022 }
 0x5c3   :  { %v1037_v25 = vmul.f32 %v4148_v43, %v1023_v14  ;;  %v1028_v41 = vperm.slane %v1023_v14, %v4143_v44 }
 0x5c5   :  { %v4151_v38 = vadd.f32 %v1040_v17, %v1037_v25  ;;  %v1020_v47 = vpop.permute.xlu1 %1019 }
 0x5c6   :  { %v1026_v27 = vperm.slane %v1020_v47, %v4140_v19  ;;  %v1036_v55 = vmul.f32 %v4148_v43, %v1020_v47 }
 0x5c7   :  { %v1067_v32 = vadd.f32 %v1064_v13, %v4151_v38 }
 0x5c8   :  { %v1030_v34 = vsel %vm1029_vm12, %v1028_v41, %v1026_v27  ;;  %v1041_v28 = vadd.f32 %v1039_v37, %v1036_v55 }
 0x5c9   :  { %v2982_v40 = vmul.f32 -1.442695, %v1067_v32  ;;  %1033 = vst.msk [vmem:[#allocation13] sm:$0x1] %vm1032_vm13, %v1030_v34 }
 0x5ca   :  { %v1066_v1 = vadd.f32 %v1061_v50, %v1041_v28 }
 0x5cb   :  { %3158 = vpow2.f32 %v2982_v40 }
 0x5cc   :  { %v2981_v35 = vmul.f32 -1.442695, %v1066_v1 }
 0x5ce   :  { %3160 = vpow2.f32 %v2981_v35 }
 0x5d1   :  { %v3159_v26 = vpop.eup %3158 }
 0x5d2   :  { %v1075_v29 = vadd.f32 1.0, %v3159_v26 }
 0x5d4   :  { %v3161_v59 = vpop.eup %3160  ;;  %3162 = vrcp.f32 %v1075_v29  ;;  %v1102_v22 = vand.u32 2147483648, %v1075_v29  ;;  %vm1096_vm3 = vweird.f32 %v1075_v29  ;;  %v1100_v46 = vand.u32 2147483647, %v1075_v29 }
 0x5d5   :  { %v1074_v23 = vadd.f32 1.0, %v3161_v59 }
 0x5d6   :  { %v1103_v27 = vor.u32 1.1754944e-38, %v1102_v22  ;;  %vm1101_vm6 = vcmp.eq.f32.partialorder %v1100_v46, 8.507059e+37 }
 0x5d7   :  { %3164 = vrcp.f32 %v1074_v23  ;;  %v1087_v54 = vand.u32 2147483648, %v1074_v23  ;;  %v1085_v31 = vand.u32 2147483647, %v1074_v23  ;;  %vm1081_vm1 = vweird.f32 %v1074_v23 }
 0x5d9   :  { %v1088_v13 = vor.u32 1.1754944e-38, %v1087_v54  ;;  %vm1086_vm4 = vcmp.eq.f32.partialorder %v1085_v31, 8.507059e+37 }
 0x5da   :  { %v3163_v2 = vpop.eup %3162 }
 0x5db   :  { %v1092_v62 = vmul.f32 %v3163_v2, %v1075_v29  ;;  %vm1097_vm15 = vweird.f32 %v3163_v2 }
 0x5dc   :  { %vm1098_vm5 = vmor %vm1096_vm3, %vm1097_vm15 }
 0x5dd   :  { %v3165_v33 = vpop.eup %3164  ;;  %v1093_v36 = vsub.f32 1.0, %v1092_v62 }
 0x5de   :  { %v1077_v63 = vmul.f32 %v3165_v33, %v1074_v23  ;;  %vm1082_vm14 = vweird.f32 %v3165_v33 }
 0x5df   :  { %v1094_v30 = vmul.f32 %v3163_v2, %v1093_v36  ;;  %vm1083_vm2 = vmor %vm1081_vm1, %vm1082_vm14 }
 0x5e0   :  { %v1078_v11 = vsub.f32 1.0, %v1077_v63 }
 0x5e1   :  { %v1095_v57 = vadd.f32 %v3163_v2, %v1094_v30 }
 0x5e2   :  { %v1079_v4 = vmul.f32 %v3165_v33, %v1078_v11  ;;  %v1109_v25 = vpop.permute.xlu0 %1108 }
 0x5e3   :  { %v1099_v47 = vsel %vm1098_vm5, %v3163_v2, %v1095_v57 }
 0x5e4   :  { %v1080_v50 = vadd.f32 %v3165_v33, %v1079_v4  ;;  %v1104_v32 = vsel %vm1101_vm6, %v1103_v27, %v1099_v47 }
 0x5e5   :  { %v1129_v36 = vsub.f32 1.0, %v1104_v32 }
 0x5e6   :  { %v1084_v14 = vsel %vm1083_vm2, %v3165_v33, %v1080_v50 }
 0x5e7   :  { %v1089_v17 = vsel %vm1086_vm4, %v1088_v13, %v1084_v14 }
 0x5e8   :  { %v1114_v41 = vmul.f32 %v1109_v25, %v1089_v17  ;;  %v1128_v23 = vsub.f32 1.0, %v1089_v17 }
 0x5ea   :  { %v1111_v55 = vpop.permute.xlu1 %1110  ;;  %1118 = vrot.lane.b32.xlu2 %v1114_v41, %s3552_s5 }
 0x5eb   :  { %v1115_v37 = vmul.f32 %v1111_v55, %v1104_v32 }
 0x5ed   :  { %1120 = vrot.lane.b32.xlu0 %v1115_v37, %s3552_s5 }
 0x5f2   :  { %1140 = vrot.lane.b32.xlu2 %v4084_v5, %s3553_s29 }
 0x644   :  { %v1119_v34 = vpop.permute.xlu2 %1118 }
 0x645   :  { %v1124_v40 = vadd.f32 %v1119_v34, %v1041_v28 }
 0x647   :  { %3166 = vtanh.f32 %v1124_v40 }
 0x64c   :  { %v1141_v59 = vpop.permute.xlu2 %1140 }
 0x64d   :  { %v3167_v1 = vpop.eup %3166  ;;  %v1146_v5 = vmul.f32 %v1141_v59, %v1089_v17 }
 0x64e   :  { %1132 = vrot.lane.b32.xlu1 %v3167_v1, %s3554_s16 }
 0x656   :  { %1142 = vrot.lane.b32.xlu1 %v4115_v7, %s3553_s29 }
 0x65f   :  { %v1121_v35 = vpop.permute.xlu0 %1120 }
 0x660   :  { %v1125_v26 = vadd.f32 %v1121_v35, %v4151_v38 }
 0x662   :  { %3168 = vtanh.f32 %v1125_v26 }
 0x668   :  { %v3169_v29 = vpop.eup %3168 }
 0x669   :  { %1134 = vrot.lane.b32.xlu0 %v3169_v29, %s3554_s16 }
 0x6c0   :  { %v1133_v2 = vpop.permute.xlu1 %1132 }
 0x6c1   :  { %v1138_v62 = vmul.f32 %v1133_v2, %v1128_v23 }
 0x6c3   :  { %v1148_v28 = vadd.f32 %v1146_v5, %v1138_v62 }
 0x6c5   :  { %1152 = vrot.lane.b32.xlu2 %v1148_v28, %s3554_s16 }
 0x6c8   :  { %v1143_v33 = vpop.permute.xlu1 %1142 }
 0x6c9   :  { %v1147_v30 = vmul.f32 %v1143_v33, %v1104_v32 }
 0x6db   :  { %v1135_v63 = vpop.permute.xlu0 %1134 }
 0x6dc   :  { %v1139_v7 = vmul.f32 %v1135_v63, %v1129_v36 }
 0x6de   :  { %v1149_v11 = vadd.f32 %v1147_v30, %v1139_v7 }
 0x6e0   :  { %1154 = vrot.lane.b32.xlu0 %v1149_v11, %s3554_s16 }
 0x71f   :  { %v1153_v38 = vpop.permute.xlu2 %1152 }
 0x720   :  { %2983 = vmatmul.msk.f32.vlgmr.msra.gmra.mxu3 %vm137_vm0, %v1153_v38 }
 0x721   :  { %1681 = vmatpush.msra.mxu3 %v4049_v10 }
 0x723   :  { %1682 = vmatpush.msra.mxu3 %v4055_v20 }
 0x725   :  { %1683 = vmatpush.msra.mxu3 %v4061_v39 }
 0x727   :  { %1684 = vmatpush.msra.mxu3 %v4066_v0 }
 0x752   :  { %v1155_v54 = vpop.permute.xlu0 %1154 }
 0x753   :  { %2984 = vmatmul.msk.f32.gmra.mxu3 %vm137_vm0, %v1155_v54 }
 0x7a3   :  { %v1177_v4 = vpop.f32.mrf.mxu3 }
 0x7a4   :  { %v1199_v31 = vadd.f32 %v1177_v4, %v3841_v24  ;;  %v1201_v10 = vadd.f32 %v1177_v4, %v3854_v49  ;;  %v1203_v24 = vadd.f32 %v1177_v4, %v3864_v56  ;;  %v1205_v49 = vadd.f32 %v1177_v4, %v3874_v3 }
 0x7a5   :  { %v1207_v56 = vadd.f32 %v1177_v4, %v3884_v9  ;;  %v1209_v3 = vadd.f32 %v1177_v4, %v3894_v15  ;;  %v1211_v9 = vadd.f32 %v1177_v4, %v3904_v21  ;;  %v4862_v15 = vld [vmem:[#allocation19_spill] sm:$0xff] }
 0x7a6   :  { %3170 = vtanh.f32 %v1199_v31  ;;  %v1213_v34 = vadd.f32 %v1177_v4, %v4862_v15 }
 0x7ac   :  { %v3171_v57 = vpop.eup %3170 }
 0x7ad   :  { %2985 = vmatmul.msk.f32.vlgmr.msrb.gmra.mxu1 %vm137_vm0, %v3171_v57 }
 0x7d6   :  { %v1180_v50 = vpop.f32.mrf.mxu3 }
 0x7d7   :  { %v1200_v22 = vadd.f32 %v1180_v50, %v3847_v45  ;;  %v1202_v39 = vadd.f32 %v1180_v50, %v3859_v53  ;;  %v1204_v45 = vadd.f32 %v1180_v50, %v3869_v61  ;;  %v1206_v53 = vadd.f32 %v1180_v50, %v3879_v6 }
 0x7d8   :  { %v1208_v61 = vadd.f32 %v1180_v50, %v3889_v12  ;;  %v1210_v6 = vadd.f32 %v1180_v50, %v3899_v18  ;;  %v4861_v12 = vld [vmem:[#allocation18_spill] sm:$0xff]  ;;  %v4863_v18 = vld [vmem:[#allocation20_spill] sm:$0xff] }
 0x7d9   :  { %3172 = vtanh.f32 %v1200_v22  ;;  %v1212_v32 = vadd.f32 %v1180_v50, %v4861_v12  ;;  %v1214_v1 = vadd.f32 %v1180_v50, %v4863_v18 }
 0x7da   :  { %3174 = vtanh.f32 %v1201_v10 }
 0x7db   :  { %3176 = vtanh.f32 %v1202_v39 }
 0x7dc   :  { %3178 = vtanh.f32 %v1203_v24 }
 0x7dd   :  { %3180 = vtanh.f32 %v1204_v45 }
 0x7de   :  { %3182 = vtanh.f32 %v1205_v49 }
 0x7df   :  { %v3173_v20 = vpop.eup %3172  ;;  %3184 = vtanh.f32 %v1206_v53 }
 0x7e0   :  { %2986 = vmatmul.msk.f32.gmra.mxu1 %vm137_vm0, %v3173_v20  ;;  %v3175_v0 = vpop.eup %3174  ;;  %3186 = vtanh.f32 %v1207_v56 }
 0x7e1   :  { %v3177_v13 = vpop.eup %3176  ;;  %3188 = vtanh.f32 %v1208_v61 }
 0x7e2   :  { %v3179_v46 = vpop.eup %3178  ;;  %3190 = vtanh.f32 %v1209_v3 }
 0x7e3   :  { %v3181_v14 = vpop.eup %3180  ;;  %3192 = vtanh.f32 %v1210_v6 }
 0x7e4   :  { %v3183_v25 = vpop.eup %3182  ;;  %3194 = vtanh.f32 %v1211_v9 }
 0x7e5   :  { %v3185_v17 = vpop.eup %3184  ;;  %3196 = vtanh.f32 %v1212_v32 }
 0x7e6   :  { %v3187_v47 = vpop.eup %3186  ;;  %3198 = vtanh.f32 %v1213_v34 }
 0x7e7   :  { %v3189_v41 = vpop.eup %3188  ;;  %3200 = vtanh.f32 %v1214_v1 }
 0x7e8   :  { %2987 = vmatmul.msk.f32.gmra.mxu1 %vm137_vm0, %v3175_v0  ;;  %v3191_v27 = vpop.eup %3190 }
 0x7e9   :  { %v3193_v55 = vpop.eup %3192 }
 0x7ea   :  { %v3195_v37 = vpop.eup %3194 }
 0x7eb   :  { %v3197_v40 = vpop.eup %3196 }
 0x7ec   :  { %v3199_v35 = vpop.eup %3198 }
 0x7ed   :  { %v3201_v21 = vpop.eup %3200 }
 0x7f0   :  { %2988 = vmatmul.msk.f32.gmra.mxu1 %vm137_vm0, %v3177_v13 }
 0x7f8   :  { %2989 = vmatmul.msk.f32.gmra.mxu1 %vm137_vm0, %v3179_v46 }
 0x800   :  { %2990 = vmatmul.msk.f32.gmra.mxu1 %vm137_vm0, %v3181_v14 }
 0x808   :  { %2991 = vmatmul.msk.f32.gmra.mxu1 %vm137_vm0, %v3183_v25 }
 0x810   :  { %2992 = vmatmul.msk.f32.gmra.mxu1 %vm137_vm0, %v3185_v17 }
 0x818   :  { %2993 = vmatmul.msk.f32.gmra.mxu1 %vm137_vm0, %v3187_v47 }
 0x820   :  { %2994 = vmatmul.msk.f32.gmra.mxu1 %vm137_vm0, %v3189_v41 }
 0x828   :  { %2995 = vmatmul.msk.f32.gmra.mxu1 %vm137_vm0, %v3191_v27 }
 0x82a   :  { %v1296_v26 = vpop.f32.mrf.mxu1 }
 0x82b   :  { %v1344_v4 = vsel %vm709_vm11, %v1296_v26, -inf }
 0x830   :  { %2996 = vmatmul.msk.f32.gmra.mxu1 %vm137_vm0, %v3193_v55 }
 0x838   :  { %2997 = vmatmul.msk.f32.gmra.mxu1 %vm137_vm0, %v3195_v37 }
 0x840   :  { %2998 = vmatmul.msk.f32.gmra.mxu1 %vm137_vm0, %v3197_v40 }
 0x848   :  { %2999 = vmatmul.msk.f32.gmra.mxu1 %vm137_vm0, %v3199_v35 }
 0x850   :  { %3000 = vmatmul.msk.f32.gmra.mxu1 %vm137_vm0, %v3201_v21 }
 0x85d   :  { %v4208_v29 = vpop.f32.mrf.mxu1 }
 0x85e   :  { %v1359_v25 = vsel %vm709_vm11, %v4208_v29, -inf }
 0x865   :  { %v1302_v59 = vpop.f32.mrf.mxu1 }
 0x866   :  { %v1345_v31 = vsel %vm709_vm11, %v1302_v59, -inf }
 0x86d   :  { %v4210_v23 = vpop.f32.mrf.mxu1 }
 0x86e   :  { %v1360_v56 = vsel %vm709_vm11, %v4210_v23, -inf }
 0x875   :  { %v1308_v2 = vpop.f32.mrf.mxu1 }
 0x876   :  { %v1346_v38 = vsel %vm709_vm11, %v1308_v2, -inf }
 0x877   :  { %v1347_v22 = vmax.f32 %v1344_v4, %v1346_v38 }
 0x87d   :  { %v4212_v5 = vpop.f32.mrf.mxu1 }
 0x87e   :  { %v1361_v49 = vsel %vm709_vm11, %v4212_v5, -inf }
 0x87f   :  { %v1362_v27 = vmax.f32 %v1359_v25, %v1361_v49 }
 0x885   :  { %v1314_v62 = vpop.f32.mrf.mxu1 }
 0x886   :  { %v1348_v54 = vsel %vm709_vm11, %v1314_v62, -inf }
 0x887   :  { %v1349_v10 = vmax.f32 %v1345_v31, %v1348_v54 }
 0x88d   :  { %v4214_v28 = vpop.f32.mrf.mxu1 }
 0x88e   :  { %v1363_v14 = vsel %vm709_vm11, %v4214_v28, -inf }
 0x88f   :  { %v1364_v9 = vmax.f32 %v1360_v56, %v1363_v14 }
 0x895   :  { %v1320_v33 = vpop.f32.mrf.mxu1 }
 0x896   :  { %v1350_v57 = vsel %vm709_vm11, %v1320_v33, -inf }
 0x897   :  { %v1351_v39 = vmax.f32 %v1347_v22, %v1350_v57 }
 0x89d   :  { %v4216_v36 = vpop.f32.mrf.mxu1 }
 0x89e   :  { %v1365_v17 = vsel %vm709_vm11, %v4216_v36, -inf }
 0x89f   :  { %v1366_v18 = vmax.f32 %v1362_v27, %v1365_v17 }
 0x8a5   :  { %v1326_v63 = vpop.f32.mrf.mxu1 }
 0x8a6   :  { %v1352_v50 = vsel %vm709_vm11, %v1326_v63, -inf }
 0x8a7   :  { %v1353_v0 = vmax.f32 %v1349_v10, %v1352_v50 }
 0x8ad   :  { %v4218_v30 = vpop.f32.mrf.mxu1 }
 0x8ae   :  { %v1367_v61 = vsel %vm709_vm11, %v4218_v30, -inf }
 0x8af   :  { %v1368_v1 = vmax.f32 %v1364_v9, %v1367_v61 }
 0x8b5   :  { %v1332_v7 = vpop.f32.mrf.mxu1 }
 0x8b6   :  { %v1354_v20 = vsel %vm709_vm11, %v1332_v7, -inf }
 0x8b7   :  { %v1355_v45 = vmax.f32 %v1351_v39, %v1354_v20 }
 0x8bd   :  { %v4220_v11 = vpop.f32.mrf.mxu1 }
 0x8be   :  { %v1369_v55 = vsel %vm709_vm11, %v4220_v11, -inf }
 0x8c5   :  { %v1338_v24 = vpop.f32.mrf.mxu1 }
 0x8c6   :  { %v1356_v13 = vsel %vm709_vm11, %v1338_v24, -inf }
 0x8c7   :  { %v1357_v46 = vmax.f32 %v1353_v0, %v1356_v13 }
 0x8c9   :  { %v1358_v53 = vmax.f32 %v1355_v45, %v1357_v46 }
 0x8cb   :  { %v1374_v47 = vsub.f32 %v1296_v26, %v1358_v53  ;;  %v1376_v3 = vsub.f32 %v1302_v59, %v1358_v53  ;;  %v1378_v41 = vsub.f32 %v1308_v2, %v1358_v53  ;;  %v1380_v6 = vsub.f32 %v1314_v62, %v1358_v53 }
 0x8cc   :  { %v1382_v12 = vsub.f32 %v1320_v33, %v1358_v53  ;;  %v1384_v32 = vsub.f32 %v1326_v63, %v1358_v53  ;;  %v1386_v35 = vsub.f32 %v1332_v7, %v1358_v53  ;;  %v1388_v26 = vsub.f32 %v1338_v24, %v1358_v53 }
 0x8cd   :  { %v1390_v37 = vmul.f32 1.442695, %v1374_v47  ;;  %v1394_v15 = vmul.f32 1.442695, %v1376_v3  ;;  %v1398_v34 = vmul.f32 1.442695, %v1378_v41  ;;  %v4244_v40 = vpop.f32.mrf.mxu1  ;;  %v1370_v2 = vmax.f32 %v1366_v18, %v1369_v55 }
 0x8ce   :  { %v1402_v21 = vmul.f32 1.442695, %v1380_v6  ;;  %v1371_v59 = vsel %vm709_vm11, %v4244_v40, -inf  ;;  %v1406_v62 = vmul.f32 1.442695, %v1382_v12 }
 0x8cf   :  { %3202 = vpow2.f32 %v1390_v37  ;;  %v1372_v38 = vmax.f32 %v1368_v1, %v1371_v59  ;;  %v1410_v33 = vmul.f32 1.442695, %v1384_v32  ;;  %v1414_v63 = vmul.f32 1.442695, %v1386_v35 }
 0x8d0   :  { %3204 = vpow2.f32 %v1394_v15  ;;  %v1418_v4 = vmul.f32 1.442695, %v1388_v26 }
 0x8d1   :  { %3206 = vpow2.f32 %v1398_v34  ;;  %v1373_v54 = vmax.f32 %v1370_v2, %v1372_v38 }
 0x8d2   :  { %3208 = vpow2.f32 %v1402_v21 }
 0x8d3   :  { %3210 = vpow2.f32 %v1406_v62  ;;  %v1375_v31 = vsub.f32 %v4208_v29, %v1373_v54  ;;  %v1377_v7 = vsub.f32 %v4210_v23, %v1373_v54  ;;  %v1379_v57 = vsub.f32 %v4212_v5, %v1373_v54 }
 0x8d4   :  { %3212 = vpow2.f32 %v1410_v33  ;;  %v1381_v22 = vsub.f32 %v4214_v28, %v1373_v54  ;;  %v1383_v39 = vsub.f32 %v4216_v36, %v1373_v54  ;;  %v1385_v23 = vsub.f32 %v4218_v30, %v1373_v54 }
 0x8d5   :  { %v4251_v50 = vpop.eup %3202  ;;  %3214 = vpow2.f32 %v1414_v63  ;;  %v1392_v5 = vmul.f32 1.442695, %v1375_v31  ;;  %v1396_v24 = vmul.f32 1.442695, %v1377_v7  ;;  %v1400_v45 = vmul.f32 1.442695, %v1379_v57 }
 0x8d6   :  { %v4254_v10 = vpop.eup %3204  ;;  %v1422_v20 = vsel %vm709_vm11, %v4251_v50, 0.0  ;;  %3216 = vpow2.f32 %v1418_v4  ;;  %v1404_v46 = vmul.f32 1.442695, %v1381_v22  ;;  %v1387_v53 = vsub.f32 %v4220_v11, %v1373_v54 }
 0x8d7   :  { %v4259_v0 = vpop.eup %3206  ;;  %v1423_v29 = vsel %vm709_vm11, %v4254_v10, 0.0  ;;  %3218 = vpow2.f32 %v1392_v5  ;;  %v1408_v25 = vmul.f32 1.442695, %v1383_v39  ;;  %v1389_v47 = vsub.f32 %v4244_v40, %v1373_v54 }
 0x8d8   :  { %v4264_v13 = vpop.eup %3208  ;;  %v1424_v28 = vadd.f32 %v1423_v29, %v1422_v20  ;;  %v1425_v49 = vsel %vm709_vm11, %v4259_v0, 0.0  ;;  %3220 = vpow2.f32 %v1396_v24  ;;  %v1412_v3 = vmul.f32 1.442695, %v1385_v23 }
 0x8d9   :  { %v4268_v36 = vpop.eup %3210  ;;  %v1427_v56 = vsel %vm709_vm11, %v4264_v13, 0.0  ;;  %3222 = vpow2.f32 %v1400_v45  ;;  %v1416_v27 = vmul.f32 1.442695, %v1387_v53  ;;  %v1420_v37 = vmul.f32 1.442695, %v1389_v47 }
 0x8da   :  { %v1426_v14 = vadd.f32 %v1425_v49, %v1424_v28  ;;  %v4271_v30 = vpop.eup %3212  ;;  %3224 = vpow2.f32 %v1404_v46  ;;  %v1429_v41 = vsel %vm709_vm11, %v4268_v36, 0.0 }
 0x8db   :  { %v4275_v17 = vpop.eup %3214  ;;  %3226 = vpow2.f32 %v1408_v25  ;;  %v1431_v55 = vsel %vm709_vm11, %v4271_v30, 0.0 }
 0x8dc   :  { %v1428_v61 = vadd.f32 %v1427_v56, %v1426_v14  ;;  %v3217_v6 = vpop.eup %3216  ;;  %3228 = vpow2.f32 %v1412_v3  ;;  %v1433_v40 = vsel %vm709_vm11, %v4275_v17, 0.0 }
 0x8dd   :  { %v3219_v9 = vpop.eup %3218  ;;  %3230 = vpow2.f32 %v1416_v27  ;;  %v1435_v26 = vsel %vm709_vm11, %v3217_v6, 0.0 }
 0x8de   :  { %v1430_v11 = vadd.f32 %v1429_v41, %v1428_v61  ;;  %v3221_v12 = vpop.eup %3220  ;;  %v1437_v15 = vsel %vm709_vm11, %v3219_v9, 0.0  ;;  %3232 = vpow2.f32 %v1420_v37 }
 0x8df   :  { %v3223_v34 = vpop.eup %3222  ;;  %v1438_v18 = vsel %vm709_vm11, %v3221_v12, 0.0 }
 0x8e0   :  { %v1432_v32 = vadd.f32 %v1431_v55, %v1430_v11  ;;  %v3225_v1 = vpop.eup %3224  ;;  %v1439_v21 = vadd.f32 %v1438_v18, %v1437_v15  ;;  %v1440_v59 = vsel %vm709_vm11, %v3223_v34, 0.0 }
 0x8e1   :  { %v3227_v2 = vpop.eup %3226  ;;  %v1442_v33 = vsel %vm709_vm11, %v3225_v1, 0.0 }
 0x8e2   :  { %v1434_v35 = vadd.f32 %v1433_v40, %v1432_v32  ;;  %v1441_v38 = vadd.f32 %v1440_v59, %v1439_v21  ;;  %v3229_v63 = vpop.eup %3228  ;;  %v1444_v4 = vsel %vm709_vm11, %v3227_v2, 0.0  ;;  %v4311_v59 = vld [vmem:[#allocation5 + $0x40] sm:$0xff] }
 0x8e3   :  { %v3231_v31 = vpop.eup %3230  ;;  %v1446_v57 = vsel %vm709_vm11, %v3229_v63, 0.0 }
 0x8e4   :  { %v1436_v62 = vadd.f32 %v1435_v26, %v1434_v35  ;;  %v1443_v54 = vadd.f32 %v1442_v33, %v1441_v38  ;;  %v3233_v22 = vpop.eup %3232  ;;  %v1448_v39 = vsel %vm709_vm11, %v3231_v31, 0.0 }
 0x8e5   :  { %v1450_v24 = vsel %vm709_vm11, %v3233_v22, 0.0 }
 0x8e6   :  { %3234 = vrcp.f32 %v1436_v62  ;;  %v1445_v7 = vadd.f32 %v1444_v4, %v1443_v54 }
 0x8e8   :  { %v1447_v20 = vadd.f32 %v1446_v57, %v1445_v7 }
 0x8ea   :  { %v1449_v23 = vadd.f32 %v1448_v39, %v1447_v20 }
 0x8ec   :  { %v3235_v29 = vpop.eup %3234  ;;  %v1451_v28 = vadd.f32 %v1450_v24, %v1449_v23 }
 0x8ed   :  { %v1454_v5 = vmul.f32 %v3235_v29, %v1436_v62  ;;  %v4313_v62 = vld [vmem:[#allocation5 + $0x30] sm:$0xff] }
 0x8ee   :  { %3236 = vrcp.f32 %v1451_v28 }
 0x8ef   :  { %v1456_v45 = vsub.f32 2.0, %v1454_v5 }
 0x8f1   :  { %v1458_v46 = vmul.f32 %v3235_v29, %v1456_v45  ;;  %v4321_v29 = vld [vmem:[#allocation5 + $0x70] sm:$0xff] }
 0x8f3   :  { %v1464_v49 = vmul.f32 %v4259_v0, %v1458_v46  ;;  %v1462_v14 = vmul.f32 %v4254_v10, %v1458_v46  ;;  %v1460_v53 = vmul.f32 %v4251_v50, %v1458_v46  ;;  %v1474_v47 = vmul.f32 %v3217_v6, %v1458_v46 }
 0x8f4   :  { %v3237_v25 = vpop.eup %3236  ;;  %v1468_v3 = vmul.f32 %v4268_v36, %v1458_v46  ;;  %v1466_v41 = vmul.f32 %v4264_v13, %v1458_v46  ;;  %v1470_v0 = vmul.f32 %v4271_v30, %v1458_v46  ;;  %v1472_v50 = vmul.f32 %v4275_v17, %v1458_v46  ;;  %v4302_v17 = vld [vmem:[#allocation5] sm:$0xff] }
 0x8f5   :  { %1514 = vperm.xlu0 %3070, %v1464_v49   ;;  %1504 = vperm.xlu2 %3072, %v1462_v14   ;;  %v1455_v56 = vmul.f32 %v3237_v25, %v1451_v28 }
 0x8f6   :  { %1494 = vperm.xlu1 %3071, %v1460_v53  }
 0x8f7   :  { %v1457_v61 = vsub.f32 2.0, %v1455_v56  ;;  %v4327_v56 = vld [vmem:[#allocation5 + $0x8] sm:$0xff] }
 0x8f9   :  { %v1459_v11 = vmul.f32 %v3237_v25, %v1457_v61 }
 0x8fb   :  { %v1461_v10 = vmul.f32 %v3219_v9, %v1459_v11  ;;  %v1467_v27 = vmul.f32 %v3225_v1, %v1459_v11  ;;  %v1465_v55 = vmul.f32 %v3223_v34, %v1459_v11  ;;  %v1463_v32 = vmul.f32 %v3221_v12, %v1459_v11  ;;  %v4300_v9 = vld [vmem:[#allocation5 + $0x10] sm:$0xff]  ;;  %v4306_v1 = vld [vmem:[#allocation5 + $0x20] sm:$0xff] }
 0x8fc   :  { %v1471_v36 = vmul.f32 %v3229_v63, %v1459_v11  ;;  %v1473_v13 = vmul.f32 %v3231_v31, %v1459_v11  ;;  %v1469_v6 = vmul.f32 %v3227_v2, %v1459_v11  ;;  %v1475_v37 = vmul.f32 %v3233_v22, %v1459_v11 }
 0x8fd   :  { %1564 = vperm.xlu0 %3070, %v1474_v47   ;;  %1534 = vperm.xlu2 %3072, %v1468_v3   ;;  %v4332_v47 = vld [vmem:[#allocation5 + $0x18] sm:$0xff]  ;;  %v4334_v3 = vld [vmem:[#allocation5 + $0x28] sm:$0xff] }
 0x8fe   :  { %1524 = vperm.xlu1 %3071, %v1466_v41  }
 0x905   :  { %1544 = vperm.xlu2 %3072, %v1470_v0   ;;  %1499 = vperm.xlu0 %3070, %v1461_v10  }
 0x906   :  { %1554 = vperm.xlu1 %3071, %v1472_v50   ;;  %v3406_v50 = vld [vmem:[#allocation11 + $0x18] sm:$0xff] }
 0x90d   :  { %1529 = vperm.xlu2 %3072, %v1467_v27   ;;  %1519 = vperm.xlu0 %3070, %v1465_v55   ;;  %v4341_v27 = vld [vmem:[#allocation5 + $0x38] sm:$0xff] }
 0x90e   :  { %1509 = vperm.xlu1 %3071, %v1463_v32  }
 0x915   :  { %1549 = vperm.xlu2 %3072, %v1471_v36   ;;  %1559 = vperm.xlu0 %3070, %v1473_v13   ;;  %v3407_v36 = vld [vmem:[#allocation11 + $0x10] sm:$0xff] }
 0x916   :  { %1539 = vperm.xlu1 %3071, %v1469_v6  }
 0x91e   :  { %1569 = vperm.xlu1 %3071, %v1475_v37  }
 0x94f   :  { %v1505_v30 = vpop.permute.xlu2 %1504 }
 0x950   :  { %v1574_v12 = vmul.f32 %v1505_v30, %v4300_v9  ;;  %v3408_v30 = vld [vmem:[#allocation11 + $0x8] sm:$0xff] }
 0x952   :  { %v1589_v21 = vsel %vm137_vm0, %v1574_v12, 0.0 }
 0x957   :  { %v1535_v40 = vpop.permute.xlu2 %1534 }
 0x958   :  { %v1580_v63 = vmul.f32 %v1535_v40, %v4311_v59 }
 0x95a   :  { %v1595_v20 = vsel %vm137_vm0, %v1580_v63, 0.0 }
 0x95f   :  { %v1545_v31 = vpop.permute.xlu2 %1544 }
 0x960   :  { %v1582_v39 = vmul.f32 %v1545_v31, %v4073_v42 }
 0x962   :  { %v1597_v28 = vsel %vm137_vm0, %v1582_v39, 0.0  ;;  %v4383_v39 = vld [vmem:[%s4844_s11] sm:$0xff] }
 0x967   :  { %v1515_v15 = vpop.permute.xlu0 %1514  ;;  %v1530_v53 = vpop.permute.xlu2 %1529 }
 0x968   :  { %v1495_v34 = vpop.permute.xlu1 %1494  ;;  %v1576_v26 = vmul.f32 %v1515_v15, %v4306_v1  ;;  %v1579_v6 = vmul.f32 %v1530_v53, %v4341_v27 }
 0x969   :  { %v1572_v18 = vmul.f32 %v1495_v34, %v4302_v17  ;;  %v3409_v34 = vld [vmem:[#allocation11] sm:$0xff] }
 0x96a   :  { %v1591_v54 = vsel %vm137_vm0, %v1576_v26, 0.0 }
 0x96b   :  { %v1588_v35 = vsel %vm137_vm0, %v1572_v18, 0.0  ;;  %v1608_v18 = vsel %vm137_vm0, %v1579_v6, 0.0 }
 0x96c   :  { %v1590_v2 = vadd.f32 %v1589_v21, %v1588_v35 }
 0x96e   :  { %v1592_v7 = vadd.f32 %v1591_v54, %v1590_v2 }
 0x96f   :  { %v1565_v38 = vpop.permute.xlu0 %1564  ;;  %v1550_v15 = vpop.permute.xlu2 %1549 }
 0x970   :  { %v1525_v33 = vpop.permute.xlu1 %1524  ;;  %v1586_v45 = vmul.f32 %v1565_v38, %v4321_v29  ;;  %v1583_v35 = vmul.f32 %v1550_v15, %v4096_v60 }
 0x971   :  { %v1578_v4 = vmul.f32 %v1525_v33, %v4313_v62 }
 0x972   :  { %v1601_v42 = vsel %vm137_vm0, %v1586_v45, 0.0  ;;  %v1612_v63 = vsel %vm137_vm0, %v1583_v35, 0.0 }
 0x973   :  { %v1593_v57 = vsel %vm137_vm0, %v1578_v4, 0.0 }
 0x974   :  { %v1594_v22 = vadd.f32 %v1593_v57, %v1592_v7 }
 0x976   :  { %v1596_v23 = vadd.f32 %v1595_v20, %v1594_v22 }
 0x977   :  { %v1500_v5 = vpop.permute.xlu0 %1499 }
 0x978   :  { %v1555_v24 = vpop.permute.xlu1 %1554  ;;  %v1598_v49 = vadd.f32 %v1597_v28, %v1596_v23  ;;  %v1573_v41 = vmul.f32 %v1500_v5, %v4327_v56 }
 0x979   :  { %v1584_v46 = vmul.f32 %v1555_v24, %v4075_v48 }
 0x97a   :  { %v1603_v55 = vsel %vm137_vm0, %v1573_v41, 0.0 }
 0x97b   :  { %v1599_v14 = vsel %vm137_vm0, %v1584_v46, 0.0 }
 0x97c   :  { %v1600_v25 = vadd.f32 %v1599_v14, %v1598_v49 }
 0x97e   :  { %v4330_v61 = vadd.f32 %v1601_v42, %v1600_v25  ;;  %v1665_v42 = vld [vmem:[#allocation3 + $0x20] sm:$0xff] }
 0x97f   :  { %v1520_v11 = vpop.permute.xlu0 %1519 }
 0x980   :  { %3001 = vmatmul.msk.f32.vlgmr.msrb.gmra.mxu3 %vm137_vm0, %v4330_v61  ;;  %v1510_v48 = vpop.permute.xlu1 %1509  ;;  %v1577_v10 = vmul.f32 %v1520_v11, %v4334_v3 }
 0x981   :  { %v1575_v0 = vmul.f32 %v1510_v48, %v4332_v47  ;;  %1798 = vmatpush.msrb.mxu3 %v3406_v50 }
 0x982   :  { %v1606_v37 = vsel %vm137_vm0, %v1577_v10, 0.0 }
 0x983   :  { %v1604_v32 = vsel %vm137_vm0, %v1575_v0, 0.0  ;;  %1799 = vmatpush.msrb.mxu3 %v3407_v36 }
 0x984   :  { %v1605_v13 = vadd.f32 %v1604_v32, %v1603_v55 }
 0x985   :  { %1800 = vmatpush.msrb.mxu3 %v3408_v30  ;;  %v1666_v30 = vld [vmem:[#allocation3 + $0x28] sm:$0xff] }
 0x986   :  { %v1607_v40 = vadd.f32 %v1606_v37, %v1605_v13 }
 0x987   :  { %1801 = vmatpush.msrb.mxu3 %v3409_v34  ;;  %v1560_v2 = vpop.permute.xlu0 %1559 }
 0x988   :  { %v1540_v12 = vpop.permute.xlu1 %1539  ;;  %v1609_v26 = vadd.f32 %v1608_v18, %v1607_v40  ;;  %v1585_v54 = vmul.f32 %v1560_v2, %v4105_v58  ;;  %v4371_v58 = vld [vmem:[%s4844_s11 + $0x10] sm:$0xff] }
 0x989   :  { %v1581_v21 = vmul.f32 %v1540_v12, %v4098_v51  ;;  %v4365_v51 = vld [vmem:[%s4844_s11 + $0x18] sm:$0xff] }
 0x98a   :  { %v1614_v7 = vsel %vm137_vm0, %v1585_v54, 0.0 }
 0x98b   :  { %v1610_v38 = vsel %vm137_vm0, %v1581_v21, 0.0 }
 0x98c   :  { %v1611_v33 = vadd.f32 %v1610_v38, %v1609_v26 }
 0x98e   :  { %v1613_v4 = vadd.f32 %v1612_v63, %v1611_v33 }
 0x990   :  { %v1570_v31 = vpop.permute.xlu1 %1569  ;;  %v1615_v22 = vadd.f32 %v1614_v7, %v1613_v4 }
 0x991   :  { %v1587_v57 = vmul.f32 %v1570_v31, %v4110_v52  ;;  %v4377_v52 = vld [vmem:[%s4844_s11 + $0x8] sm:$0xff] }
 0x993   :  { %v1616_v60 = vsel %vm137_vm0, %v1587_v57, 0.0 }
 0x994   :  { %v4356_v20 = vadd.f32 %v1616_v60, %v1615_v22 }
 0x996   :  { %3002 = vmatmul.msk.f32.gmra.mxu3 %vm137_vm0, %v4356_v20 }
 0x99e   :  { %3003 = vmatmul.msk.f32.vlgmr.msra.gmra.mxu3 %vm137_vm0, %v4330_v61 }
 0x99f   :  { %1917 = vmatpush.msra.mxu3 %v4365_v51 }
 0x9a1   :  { %1918 = vmatpush.msra.mxu3 %v4371_v58 }
 0x9a3   :  { %1919 = vmatpush.msra.mxu3 %v4377_v52 }
 0x9a5   :  { %1920 = vmatpush.msra.mxu3 %v4383_v39 }
 0x9a6   :  { %3004 = vmatmul.msk.f32.gmra.mxu3 %vm137_vm0, %v4356_v20 }
 0xa03   :  { %v1641_v23 = vpop.f32.mrf.mxu3 }
 0xa04   :  { %v1642_v5 = vadd.f32 %v4127_v8, %v1641_v23 }
 0xa06   :  { %1650 = vperm.xlu2 %3072, %v1642_v5  }
 0xa19   :  { %v1644_v24 = vpop.f32.mrf.mxu3 }
 0xa1a   :  { %v1645_v28 = vadd.f32 %v4127_v8, %v1644_v24 }
 0xa1c   :  { %1653 = vperm.xlu0 %3070, %v1645_v28  }
 0xa21   :  { %v1686_v45 = vpop.f32.mrf.mxu3 }
 0xa22   :  { %v1687_v46 = vadd.f32 %v4134_v16, %v1686_v45 }
 0xa24   :  { %1734 = vrot.lane.b32.xlu1 %v1687_v46, %s3552_s5 }
 0xa29   :  { %v1689_v49 = vpop.f32.mrf.mxu3 }
 0xa2a   :  { %v1690_v14 = vadd.f32 %v4134_v16, %v1689_v49 }
 0xa2c   :  { %1736 = vrot.lane.b32.xlu2 %v1690_v14, %s3552_s5 }
 0xa60   :  { %v1651_v53 = vpop.permute.xlu2 %1650 }
 0xa61   :  { %v1662_v25 = vmul.f32 %v4148_v43, %v1651_v53  ;;  %v1655_v36 = vperm.slane %v1651_v53, %v4140_v19 }
 0xa63   :  { %v1667_v41 = vadd.f32 %v1665_v42, %v1662_v25 }
 0xa65   :  { %v1692_v11 = vadd.f32 %v1687_v46, %v1667_v41 }
 0xa67   :  { %v3005_v48 = vmul.f32 -1.442695, %v1692_v11 }
 0xa69   :  { %3238 = vpow2.f32 %v3005_v48 }
 0xa6f   :  { %v3239_v8 = vpop.eup %3238 }
 0xa70   :  { %v1700_v0 = vadd.f32 1.0, %v3239_v8 }
 0xa72   :  { %3240 = vrcp.f32 %v1700_v0  ;;  %v1713_v15 = vand.u32 2147483648, %v1700_v0  ;;  %vm1707_vm8 = vweird.f32 %v1700_v0  ;;  %v1711_v12 = vand.u32 2147483647, %v1700_v0 }
 0xa74   :  { %v1714_v21 = vor.u32 1.1754944e-38, %v1713_v15  ;;  %vm1712_vm10 = vcmp.eq.f32.partialorder %v1711_v12, 8.507059e+37 }
 0xa78   :  { %v3241_v10 = vpop.eup %3240 }
 0xa79   :  { %v1703_v50 = vmul.f32 %v3241_v10, %v1700_v0  ;;  %vm1708_vm7 = vweird.f32 %v3241_v10 }
 0xa7a   :  { %vm1709_vm9 = vmor %vm1707_vm8, %vm1708_vm7 }
 0xa7b   :  { %v1704_v55 = vsub.f32 1.0, %v1703_v50 }
 0xa7d   :  { %v1705_v32 = vmul.f32 %v3241_v10, %v1704_v55 }
 0xa7f   :  { %v1706_v37 = vadd.f32 %v3241_v10, %v1705_v32 }
 0xa81   :  { %v1710_v35 = vsel %vm1709_vm9, %v3241_v10, %v1706_v37  ;;  %v4414_v37 = vld [vmem:[#allocation2] sm:$0xff] }
 0xa82   :  { %v1715_v38 = vsel %vm1712_vm10, %v1714_v21, %v1710_v35 }
 0xa83   :  { %v1754_v11 = vsub.f32 1.0, %v1715_v38 }
 0xa86   :  { %v1737_v24 = vpop.permute.xlu2 %1736 }
 0xa8e   :  { %v1654_v16 = vpop.permute.xlu0 %1653 }
 0xa8f   :  { %v1656_v13 = vperm.slane %v1654_v16, %v4143_v44  ;;  %v1663_v6 = vmul.f32 %v4148_v43, %v1654_v16 }
 0xa91   :  { %v1657_v40 = vsel %vm1029_vm12, %v1656_v13, %v1655_v36  ;;  %v1668_v34 = vadd.f32 %v1666_v30, %v1663_v6 }
 0xa92   :  { %1659 = vst.msk [vmem:[#allocation13 + $0x1] sm:$0x1] %vm1032_vm13, %v1657_v40 }
 0xa93   :  { %v1693_v18 = vadd.f32 %v1690_v14, %v1668_v34 }
 0xa95   :  { %v3006_v26 = vmul.f32 -1.442695, %v1693_v18  ;;  %v4425_v18 = vld [vmem:[#allocation2 + $0x10] sm:$0xff] }
 0xa96   :  { %v1735_v2 = vpop.permute.xlu1 %1734 }
 0xa97   :  { %3242 = vpow2.f32 %v3006_v26  ;;  %v1740_v43 = vmul.f32 %v1735_v2, %v1715_v38  ;;  %v4430_v26 = vld [vmem:[#allocation2 + $0x18] sm:$0xff] }
 0xa99   :  { %1744 = vrot.lane.b32.xlu0 %v1740_v43, %s3552_s5  ;;  %v4435_v43 = vld [vmem:[#allocation2 + $0x20] sm:$0xff] }
 0xa9d   :  { %v3243_v33 = vpop.eup %3242 }
 0xa9e   :  { %v1701_v63 = vadd.f32 1.0, %v3243_v33 }
 0xaa0   :  { %3244 = vrcp.f32 %v1701_v63  ;;  %v1728_v7 = vand.u32 2147483648, %v1701_v63  ;;  %v1726_v22 = vand.u32 2147483647, %v1701_v63  ;;  %vm1722_vm15 = vweird.f32 %v1701_v63 }
 0xaa1   :  { %1766 = vrot.lane.b32.xlu0 %v4330_v61, %s3553_s29 }
 0xaa2   :  { %v1729_v23 = vor.u32 1.1754944e-38, %v1728_v7  ;;  %vm1727_vm2 = vcmp.eq.f32.partialorder %v1726_v22, 8.507059e+37  ;;  %v4445_v7 = vld [vmem:[#allocation2 + $0x30] sm:$0xff] }
 0xaa6   :  { %v3245_v54 = vpop.eup %3244 }
 0xaa7   :  { %v1718_v4 = vmul.f32 %v3245_v54, %v1701_v63  ;;  %vm1723_vm14 = vweird.f32 %v3245_v54 }
 0xaa8   :  { %vm1724_vm1 = vmor %vm1722_vm15, %vm1723_vm14 }
 0xaa9   :  { %v1719_v31 = vsub.f32 1.0, %v1718_v4 }
 0xaab   :  { %v1720_v57 = vmul.f32 %v3245_v54, %v1719_v31 }
 0xaad   :  { %v1721_v60 = vadd.f32 %v3245_v54, %v1720_v57 }
 0xaaf   :  { %v1725_v5 = vsel %vm1724_vm1, %v3245_v54, %v1721_v60  ;;  %v4440_v54 = vld [vmem:[#allocation2 + $0x28] sm:$0xff]  ;;  %v4450_v60 = vld [vmem:[#allocation2 + $0x38] sm:$0xff] }
 0xab0   :  { %v1730_v28 = vsel %vm1727_vm2, %v1729_v23, %v1725_v5 }
 0xab1   :  { %v1741_v45 = vmul.f32 %v1737_v24, %v1730_v28  ;;  %v1755_v50 = vsub.f32 1.0, %v1730_v28  ;;  %v4455_v24 = vld [vmem:[#allocation2 + $0x40] sm:$0xff] }
 0xab3   :  { %1746 = vrot.lane.b32.xlu1 %v1741_v45, %s3552_s5 }
 0xb0b   :  { %v1745_v46 = vpop.permute.xlu0 %1744 }
 0xb0c   :  { %v1750_v61 = vadd.f32 %v1745_v46, %v1667_v41  ;;  %v4460_v46 = vld [vmem:[#allocation2 + $0x48] sm:$0xff] }
 0xb0d   :  { %4864 = vst [vmem:[#allocation18_spill] sm:$0xff] %v4460_v46 }
 0xb0e   :  { %3246 = vtanh.f32 %v1750_v61 }
 0xb13   :  { %v1767_v42 = vpop.permute.xlu0 %1766 }
 0xb14   :  { %v3247_v49 = vpop.eup %3246  ;;  %v1772_v8 = vmul.f32 %v1767_v42, %v1715_v38  ;;  %v4470_v42 = vld [vmem:[#allocation2 + $0x58] sm:$0xff] }
 0xb15   :  { %1758 = vrot.lane.b32.xlu2 %v3247_v49, %s3554_s16  ;;  %4866 = vst [vmem:[#allocation20_spill] sm:$0xff] %v4470_v42 }
 0xb1d   :  { %1768 = vrot.lane.b32.xlu2 %v4356_v20, %s3553_s29 }
 0xb25   :  { %v1747_v14 = vpop.permute.xlu1 %1746 }
 0xb26   :  { %v1751_v53 = vadd.f32 %v1747_v14, %v1668_v34  ;;  %v4421_v34 = vld [vmem:[#allocation2 + $0x8] sm:$0xff]  ;;  %v4465_v14 = vld [vmem:[#allocation2 + $0x50] sm:$0xff] }
 0xb27   :  { %4865 = vst [vmem:[#allocation19_spill] sm:$0xff] %v4465_v14 }
 0xb28   :  { %3248 = vtanh.f32 %v1751_v53 }
 0xb2e   :  { %v3249_v25 = vpop.eup %3248 }
 0xb2f   :  { %1760 = vrot.lane.b32.xlu1 %v3249_v25, %s3554_s16 }
 0xb6f   :  { %v1759_v48 = vpop.permute.xlu2 %1758 }
 0xb70   :  { %v1764_v0 = vmul.f32 %v1759_v48, %v1754_v11 }
 0xb72   :  { %v1774_v10 = vadd.f32 %v1772_v8, %v1764_v0  ;;  %v4475_v8 = vld [vmem:[#allocation2 + $0x60] sm:$0xff] }
 0xb73   :  { %4867 = vst [vmem:[#allocation21_spill] sm:$0xff] %v4475_v8 }
 0xb74   :  { %1778 = vrot.lane.b32.xlu0 %v1774_v10, %s3554_s16 }
 0xb77   :  { %v1769_v41 = vpop.permute.xlu2 %1768 }
 0xb78   :  { %v1773_v32 = vmul.f32 %v1769_v41, %v1730_v28  ;;  %v4480_v41 = vld [vmem:[#allocation2 + $0x68] sm:$0xff] }
 0xb79   :  { %4868 = vst [vmem:[#allocation22_spill] sm:$0xff] %v4480_v41 }
 0xba1   :  { %v1761_v55 = vpop.permute.xlu1 %1760 }
 0xba2   :  { %v1765_v36 = vmul.f32 %v1761_v55, %v1755_v50 }
 0xba4   :  { %v1775_v20 = vadd.f32 %v1773_v32, %v1765_v36  ;;  %v4485_v32 = vld [vmem:[#allocation2 + $0x70] sm:$0xff] }
 0xba5   :  { %4869 = vst [vmem:[#allocation23_spill] sm:$0xff] %v4485_v32 }
 0xba6   :  { %1780 = vrot.lane.b32.xlu1 %v1775_v20, %s3554_s16 }
 0xbe6   :  { %v1779_v16 = vpop.permute.xlu0 %1778 }
 0xbe7   :  { %3007 = vmatmul.msk.f32.vlgmr.msrb.gmra.mxu3 %vm137_vm0, %v1779_v16  ;;  %v4490_v16 = vld [vmem:[#allocation2 + $0x78] sm:$0xff] }
 0xbe8   :  { %4870 = vst [vmem:[#allocation24_spill] sm:$0xff] %v4490_v16 }
 0xc18   :  { %v1781_v13 = vpop.permute.xlu1 %1780 }
 0xc19   :  { %3008 = vmatmul.msk.f32.gmra.mxu3 %vm137_vm0, %v1781_v13 }
 0xc6a   :  { %v4412_v6 = vpop.f32.mrf.mxu3 }
 0xc6b   :  { %v1825_v30 = vadd.f32 %v4414_v37, %v4412_v6  ;;  %v1827_v35 = vadd.f32 %v4425_v18, %v4412_v6  ;;  %v1829_v33 = vadd.f32 %v4435_v43, %v4412_v6  ;;  %v1831_v57 = vadd.f32 %v4445_v7, %v4412_v6 }
 0xc6c   :  { %v1833_v28 = vadd.f32 %v4455_v24, %v4412_v6  ;;  %v1835_v53 = vadd.f32 %v4465_v14, %v4412_v6  ;;  %v1837_v0 = vadd.f32 %v4475_v8, %v4412_v6  ;;  %v1839_v36 = vadd.f32 %v4485_v32, %v4412_v6 }
 0xc6d   :  { %3250 = vtanh.f32 %v1825_v30 }
 0xc73   :  { %v3251_v15 = vpop.eup %3250 }
 0xc74   :  { %3009 = vmatmul.msk.f32.vlgmr.msra.gmra.mxu3 %vm137_vm0, %v3251_v15 }
 0xc9c   :  { %v4419_v40 = vpop.f32.mrf.mxu3 }
 0xc9d   :  { %v1826_v12 = vadd.f32 %v4421_v34, %v4419_v40  ;;  %v1828_v2 = vadd.f32 %v4430_v26, %v4419_v40  ;;  %v1830_v4 = vadd.f32 %v4440_v54, %v4419_v40  ;;  %v1832_v23 = vadd.f32 %v4450_v60, %v4419_v40 }
 0xc9e   :  { %v1834_v61 = vadd.f32 %v4460_v46, %v4419_v40  ;;  %v1836_v11 = vadd.f32 %v4470_v42, %v4419_v40  ;;  %v1838_v50 = vadd.f32 %v4480_v41, %v4419_v40  ;;  %v1840_v13 = vadd.f32 %v4490_v16, %v4419_v40 }
 0xc9f   :  { %3252 = vtanh.f32 %v1826_v12 }
 0xca0   :  { %3254 = vtanh.f32 %v1827_v35 }
 0xca1   :  { %3256 = vtanh.f32 %v1828_v2 }
 0xca2   :  { %3258 = vtanh.f32 %v1829_v33 }
 0xca3   :  { %3260 = vtanh.f32 %v1830_v4 }
 0xca4   :  { %3262 = vtanh.f32 %v1831_v57 }
 0xca5   :  { %v3253_v21 = vpop.eup %3252  ;;  %3264 = vtanh.f32 %v1832_v23 }
 0xca6   :  { %3010 = vmatmul.msk.f32.gmra.mxu3 %vm137_vm0, %v3253_v21  ;;  %v3255_v38 = vpop.eup %3254  ;;  %3266 = vtanh.f32 %v1833_v28 }
 0xca7   :  { %v3257_v63 = vpop.eup %3256  ;;  %3268 = vtanh.f32 %v1834_v61 }
 0xca8   :  { %v3259_v31 = vpop.eup %3258  ;;  %3270 = vtanh.f32 %v1835_v53 }
 0xca9   :  { %v3261_v22 = vpop.eup %3260  ;;  %3272 = vtanh.f32 %v1836_v11 }
 0xcaa   :  { %v3263_v5 = vpop.eup %3262  ;;  %3274 = vtanh.f32 %v1837_v0 }
 0xcab   :  { %v3265_v45 = vpop.eup %3264  ;;  %3276 = vtanh.f32 %v1838_v50 }
 0xcac   :  { %v3267_v49 = vpop.eup %3266  ;;  %3278 = vtanh.f32 %v1839_v36 }
 0xcad   :  { %v3269_v25 = vpop.eup %3268  ;;  %3280 = vtanh.f32 %v1840_v13 }
 0xcae   :  { %3011 = vmatmul.msk.f32.gmra.mxu3 %vm137_vm0, %v3255_v38  ;;  %v3271_v48 = vpop.eup %3270 }
 0xcaf   :  { %v3273_v10 = vpop.eup %3272 }
 0xcb0   :  { %v3275_v55 = vpop.eup %3274 }
 0xcb1   :  { %v3277_v20 = vpop.eup %3276 }
 0xcb2   :  { %v3279_v30 = vpop.eup %3278 }
 0xcb3   :  { %v3281_v15 = vpop.eup %3280 }
 0xcb6   :  { %3012 = vmatmul.msk.f32.gmra.mxu3 %vm137_vm0, %v3257_v63 }
 0xcbe   :  { %3013 = vmatmul.msk.f32.gmra.mxu3 %vm137_vm0, %v3259_v31 }
 0xcc6   :  { %3014 = vmatmul.msk.f32.gmra.mxu3 %vm137_vm0, %v3261_v22 }
 0xcce   :  { %3015 = vmatmul.msk.f32.gmra.mxu3 %vm137_vm0, %v3263_v5 }
 0xcd6   :  { %3016 = vmatmul.msk.f32.gmra.mxu3 %vm137_vm0, %v3265_v45 }
 0xcde   :  { %3017 = vmatmul.msk.f32.gmra.mxu3 %vm137_vm0, %v3267_v49 }
 0xce6   :  { %3018 = vmatmul.msk.f32.gmra.mxu3 %vm137_vm0, %v3269_v25 }
 0xcee   :  { %3019 = vmatmul.msk.f32.gmra.mxu3 %vm137_vm0, %v3271_v48 }
 0xcf6   :  { %3020 = vmatmul.msk.f32.gmra.mxu3 %vm137_vm0, %v3273_v10 }
 0xcf7   :  { %v1922_v12 = vpop.f32.mrf.mxu3 }
 0xcf8   :  { %v1970_v45 = vsel %vm709_vm11, %v1922_v12, -inf }
 0xcfe   :  { %3021 = vmatmul.msk.f32.gmra.mxu3 %vm137_vm0, %v3275_v55 }
 0xd06   :  { %3022 = vmatmul.msk.f32.gmra.mxu3 %vm137_vm0, %v3277_v20 }
 0xd0e   :  { %3023 = vmatmul.msk.f32.gmra.mxu3 %vm137_vm0, %v3279_v30 }
 0xd16   :  { %3024 = vmatmul.msk.f32.gmra.mxu3 %vm137_vm0, %v3281_v15 }
 0xd29   :  { %v4496_v35 = vpop.f32.mrf.mxu3 }
 0xd31   :  { %v1928_v6 = vpop.f32.mrf.mxu3 }
 0xd32   :  { %v1971_v61 = vsel %vm709_vm11, %v1928_v6, -inf }
 0xd39   :  { %v4498_v21 = vpop.f32.mrf.mxu3 }
 0xd41   :  { %v1934_v2 = vpop.f32.mrf.mxu3 }
 0xd42   :  { %v1972_v5 = vsel %vm709_vm11, %v1934_v2, -inf }
 0xd43   :  { %v1973_v25 = vmax.f32 %v1970_v45, %v1972_v5  ;;  %v1985_v5 = vsel %vm709_vm11, %v4496_v35, -inf }
 0xd49   :  { %v4500_v38 = vpop.f32.mrf.mxu3 }
 0xd4a   :  { %v1987_v13 = vsel %vm709_vm11, %v4500_v38, -inf }
 0xd51   :  { %v1940_v33 = vpop.f32.mrf.mxu3 }
 0xd52   :  { %v1974_v28 = vsel %vm709_vm11, %v1940_v33, -inf }
 0xd53   :  { %v1975_v11 = vmax.f32 %v1971_v61, %v1974_v28  ;;  %v1986_v28 = vsel %vm709_vm11, %v4498_v21, -inf }
 0xd59   :  { %v4502_v63 = vpop.f32.mrf.mxu3 }
 0xd5a   :  { %v1989_v30 = vsel %vm709_vm11, %v4502_v63, -inf }
 0xd61   :  { %v1946_v40 = vpop.f32.mrf.mxu3 }
 0xd62   :  { %v1976_v49 = vsel %vm709_vm11, %v1946_v40, -inf }
 0xd63   :  { %v1977_v0 = vmax.f32 %v1973_v25, %v1976_v49 }
 0xd69   :  { %v4504_v4 = vpop.f32.mrf.mxu3 }
 0xd6a   :  { %v1991_v45 = vsel %vm709_vm11, %v4504_v4, -inf }
 0xd71   :  { %v1952_v31 = vpop.f32.mrf.mxu3 }
 0xd72   :  { %v1978_v53 = vsel %vm709_vm11, %v1952_v31, -inf }
 0xd73   :  { %v1979_v10 = vmax.f32 %v1975_v11, %v1978_v53 }
 0xd79   :  { %v4506_v57 = vpop.f32.mrf.mxu3 }
 0xd7a   :  { %v1993_v61 = vsel %vm709_vm11, %v4506_v57, -inf }
 0xd81   :  { %v1958_v22 = vpop.f32.mrf.mxu3 }
 0xd82   :  { %v1980_v48 = vsel %vm709_vm11, %v1958_v22, -inf }
 0xd83   :  { %v1981_v36 = vmax.f32 %v1977_v0, %v1980_v48  ;;  %v1988_v48 = vmax.f32 %v1985_v5, %v1987_v13  ;;  %v1990_v0 = vmax.f32 %v1986_v28, %v1989_v30 }
 0xd85   :  { %v1992_v8 = vmax.f32 %v1988_v48, %v1991_v45  ;;  %v1994_v42 = vmax.f32 %v1990_v0, %v1993_v61 }
 0xd89   :  { %v4508_v23 = vpop.f32.mrf.mxu3 }
 0xd91   :  { %v1964_v50 = vpop.f32.mrf.mxu3 }
 0xd92   :  { %v1982_v55 = vsel %vm709_vm11, %v1964_v50, -inf }
 0xd93   :  { %v1983_v20 = vmax.f32 %v1979_v10, %v1982_v55  ;;  %v1995_v10 = vsel %vm709_vm11, %v4508_v23, -inf }
 0xd95   :  { %v1984_v15 = vmax.f32 %v1981_v36, %v1983_v20 }
 0xd97   :  { %v2000_v49 = vsub.f32 %v1922_v12, %v1984_v15  ;;  %v2002_v53 = vsub.f32 %v1928_v6, %v1984_v15  ;;  %v2004_v25 = vsub.f32 %v1934_v2, %v1984_v15  ;;  %v2006_v11 = vsub.f32 %v1940_v33, %v1984_v15 }
 0xd98   :  { %v2008_v55 = vsub.f32 %v1946_v40, %v1984_v15  ;;  %v2010_v36 = vsub.f32 %v1952_v31, %v1984_v15  ;;  %v2012_v14 = vsub.f32 %v1958_v22, %v1984_v15  ;;  %v2014_v12 = vsub.f32 %v1964_v50, %v1984_v15 }
 0xd99   :  { %v2016_v20 = vmul.f32 1.442695, %v2000_v49  ;;  %v2020_v16 = vmul.f32 1.442695, %v2002_v53  ;;  %v2024_v32 = vmul.f32 1.442695, %v2004_v25  ;;  %v4532_v41 = vpop.f32.mrf.mxu3  ;;  %v1996_v2 = vmax.f32 %v1992_v8, %v1995_v10 }
 0xd9a   :  { %v2028_v46 = vmul.f32 1.442695, %v2006_v11  ;;  %v1997_v6 = vsel %vm709_vm11, %v4532_v41, -inf  ;;  %v2032_v33 = vmul.f32 1.442695, %v2008_v55 }
 0xd9b   :  { %3282 = vpow2.f32 %v2016_v20  ;;  %v1998_v13 = vmax.f32 %v1994_v42, %v1997_v6  ;;  %v2036_v40 = vmul.f32 1.442695, %v2010_v36  ;;  %v2040_v31 = vmul.f32 1.442695, %v2012_v14 }
 0xd9c   :  { %3284 = vpow2.f32 %v2020_v16  ;;  %v2044_v5 = vmul.f32 1.442695, %v2014_v12 }
 0xd9d   :  { %3286 = vpow2.f32 %v2024_v32  ;;  %v1999_v30 = vmax.f32 %v1996_v2, %v1998_v13 }
 0xd9e   :  { %3288 = vpow2.f32 %v2028_v46 }
 0xd9f   :  { %3290 = vpow2.f32 %v2032_v33  ;;  %v2001_v28 = vsub.f32 %v4496_v35, %v1999_v30  ;;  %v2003_v22 = vsub.f32 %v4498_v21, %v1999_v30  ;;  %v2005_v50 = vsub.f32 %v4500_v38, %v1999_v30 }
 0xda0   :  { %3292 = vpow2.f32 %v2036_v40  ;;  %v2007_v8 = vsub.f32 %v4502_v63, %v1999_v30  ;;  %v2009_v14 = vsub.f32 %v4504_v4, %v1999_v30  ;;  %v2011_v35 = vsub.f32 %v4506_v57, %v1999_v30 }
 0xda1   :  { %v4539_v15 = vpop.eup %3282  ;;  %3294 = vpow2.f32 %v2040_v31  ;;  %v2018_v21 = vmul.f32 1.442695, %v2001_v28  ;;  %v2022_v38 = vmul.f32 1.442695, %v2003_v22  ;;  %v2026_v61 = vmul.f32 1.442695, %v2005_v50 }
 0xda2   :  { %v4542_v16 = vpop.eup %3284  ;;  %v2048_v46 = vsel %vm709_vm11, %v4539_v15, 0.0  ;;  %3296 = vpow2.f32 %v2044_v5  ;;  %v2030_v49 = vmul.f32 1.442695, %v2007_v8  ;;  %v2013_v11 = vsub.f32 %v4508_v23, %v1999_v30 }
 0xda3   :  { %v4547_v42 = vpop.eup %3286  ;;  %v2049_v32 = vsel %vm709_vm11, %v4542_v16, 0.0  ;;  %3298 = vpow2.f32 %v2018_v21  ;;  %v2034_v48 = vmul.f32 1.442695, %v2009_v14  ;;  %v2015_v36 = vsub.f32 %v4532_v41, %v1999_v30 }
 0xda4   :  { %v4552_v45 = vpop.eup %3288  ;;  %v2050_v63 = vadd.f32 %v2049_v32, %v2048_v46  ;;  %v2051_v53 = vsel %vm709_vm11, %v4547_v42, 0.0  ;;  %3300 = vpow2.f32 %v2022_v38  ;;  %v2038_v20 = vmul.f32 1.442695, %v2011_v35 }
 0xda5   :  { %v4556_v4 = vpop.eup %3290  ;;  %v2053_v0 = vsel %vm709_vm11, %v4552_v45, 0.0  ;;  %3302 = vpow2.f32 %v2026_v61  ;;  %v2042_v2 = vmul.f32 1.442695, %v2013_v11  ;;  %v2046_v5 = vmul.f32 1.442695, %v2015_v36 }
 0xda6   :  { %v2052_v25 = vadd.f32 %v2051_v53, %v2050_v63  ;;  %v4559_v57 = vpop.eup %3292  ;;  %3304 = vpow2.f32 %v2030_v49  ;;  %v2055_v12 = vsel %vm709_vm11, %v4556_v4, 0.0 }
 0xda7   :  { %v4563_v10 = vpop.eup %3294  ;;  %3306 = vpow2.f32 %v2034_v48  ;;  %v2057_v13 = vsel %vm709_vm11, %v4559_v57, 0.0 }
 0xda8   :  { %v2054_v55 = vadd.f32 %v2053_v0, %v2052_v25  ;;  %v3297_v6 = vpop.eup %3296  ;;  %3308 = vpow2.f32 %v2038_v20  ;;  %v2059_v30 = vsel %vm709_vm11, %v4563_v10, 0.0 }
 0xda9   :  { %v3299_v33 = vpop.eup %3298  ;;  %3310 = vpow2.f32 %v2042_v2  ;;  %v2061_v14 = vsel %vm709_vm11, %v3297_v6, 0.0 }
 0xdaa   :  { %v2056_v23 = vadd.f32 %v2055_v12, %v2054_v55  ;;  %v3301_v40 = vpop.eup %3300  ;;  %v2063_v28 = vsel %vm709_vm11, %v3299_v33, 0.0  ;;  %3312 = vpow2.f32 %v2046_v5 }
 0xdab   :  { %v3303_v41 = vpop.eup %3302  ;;  %v2064_v22 = vsel %vm709_vm11, %v3301_v40, 0.0 }
 0xdac   :  { %v2058_v31 = vadd.f32 %v2057_v13, %v2056_v23  ;;  %v3305_v50 = vpop.eup %3304  ;;  %v2065_v46 = vadd.f32 %v2064_v22, %v2063_v28  ;;  %v2066_v32 = vsel %vm709_vm11, %v3303_v41, 0.0 }
 0xdad   :  { %v3307_v35 = vpop.eup %3306  ;;  %v2068_v63 = vsel %vm709_vm11, %v3305_v50, 0.0 }
 0xdae   :  { %v2060_v8 = vadd.f32 %v2059_v30, %v2058_v31  ;;  %v2067_v38 = vadd.f32 %v2066_v32, %v2065_v46  ;;  %v3309_v61 = vpop.eup %3308  ;;  %v2070_v53 = vsel %vm709_vm11, %v3307_v35, 0.0 }
 0xdaf   :  { %v3311_v25 = vpop.eup %3310  ;;  %v2072_v48 = vsel %vm709_vm11, %v3309_v61, 0.0 }
 0xdb0   :  { %v2062_v21 = vadd.f32 %v2061_v14, %v2060_v8  ;;  %v2069_v49 = vadd.f32 %v2068_v63, %v2067_v38  ;;  %v3313_v0 = vpop.eup %3312  ;;  %v2074_v36 = vsel %vm709_vm11, %v3311_v25, 0.0 }
 0xdb1   :  { %v2076_v2 = vsel %vm709_vm11, %v3313_v0, 0.0 }
 0xdb2   :  { %3314 = vrcp.f32 %v2062_v21  ;;  %v2071_v11 = vadd.f32 %v2070_v53, %v2069_v49 }
 0xdb4   :  { %v2073_v55 = vadd.f32 %v2072_v48, %v2071_v11 }
 0xdb6   :  { %v2075_v12 = vadd.f32 %v2074_v36, %v2073_v55 }
 0xdb8   :  { %v3315_v20 = vpop.eup %3314  ;;  %v2077_v13 = vadd.f32 %v2076_v2, %v2075_v12 }
 0xdb9   :  { %v2080_v23 = vmul.f32 %v3315_v20, %v2062_v21 }
 0xdba   :  { %3316 = vrcp.f32 %v2077_v13 }
 0xdbb   :  { %v2082_v31 = vsub.f32 2.0, %v2080_v23 }
 0xdbd   :  { %v2084_v5 = vmul.f32 %v3315_v20, %v2082_v31 }
 0xdbf   :  { %v2090_v28 = vmul.f32 %v4547_v42, %v2084_v5  ;;  %v2088_v30 = vmul.f32 %v4542_v16, %v2084_v5  ;;  %v2086_v22 = vmul.f32 %v4539_v15, %v2084_v5  ;;  %v2100_v32 = vmul.f32 %v3297_v6, %v2084_v5 }
 0xdc0   :  { %v3317_v8 = vpop.eup %3316  ;;  %v2094_v21 = vmul.f32 %v4556_v4, %v2084_v5  ;;  %v2092_v38 = vmul.f32 %v4552_v45, %v2084_v5  ;;  %v2096_v42 = vmul.f32 %v4559_v57, %v2084_v5  ;;  %v2098_v15 = vmul.f32 %v4563_v10, %v2084_v5 }
 0xdc1   :  { %2140 = vperm.xlu1 %3071, %v2090_v28   ;;  %2130 = vperm.xlu0 %3070, %v2088_v30   ;;  %v2081_v46 = vmul.f32 %v3317_v8, %v2077_v13 }
 0xdc2   :  { %2120 = vperm.xlu2 %3072, %v2086_v22  }
 0xdc3   :  { %v2083_v14 = vsub.f32 2.0, %v2081_v46 }
 0xdc5   :  { %v2085_v63 = vmul.f32 %v3317_v8, %v2083_v14 }
 0xdc7   :  { %v2087_v16 = vmul.f32 %v3299_v33, %v2085_v63  ;;  %v2093_v49 = vmul.f32 %v3305_v50, %v2085_v63  ;;  %v2091_v53 = vmul.f32 %v3303_v41, %v2085_v63  ;;  %v2089_v11 = vmul.f32 %v3301_v40, %v2085_v63 }
 0xdc8   :  { %v2097_v4 = vmul.f32 %v3309_v61, %v2085_v63  ;;  %v2099_v45 = vmul.f32 %v3311_v25, %v2085_v63  ;;  %v2095_v6 = vmul.f32 %v3307_v35, %v2085_v63  ;;  %v2101_v48 = vmul.f32 %v3313_v0, %v2085_v63 }
 0xdc9   :  { %2190 = vperm.xlu1 %3071, %v2100_v32   ;;  %2160 = vperm.xlu0 %3070, %v2094_v21  }
 0xdca   :  { %2150 = vperm.xlu2 %3072, %v2092_v38  }
 0xdd1   :  { %2170 = vperm.xlu0 %3070, %v2096_v42   ;;  %2125 = vperm.xlu1 %3071, %v2087_v16  }
 0xdd2   :  { %2180 = vperm.xlu2 %3072, %v2098_v15  }
 0xdd9   :  { %2155 = vperm.xlu0 %3070, %v2093_v49   ;;  %2145 = vperm.xlu1 %3071, %v2091_v53  }
 0xdda   :  { %2135 = vperm.xlu2 %3072, %v2089_v11  }
 0xde1   :  { %2175 = vperm.xlu0 %3070, %v2097_v4   ;;  %2185 = vperm.xlu1 %3071, %v2099_v45  }
 0xde2   :  { %2165 = vperm.xlu2 %3072, %v2095_v6   ;;  %v4616_v6 = vld [vmem:[#allocation5 + $0x48] sm:$0xff] }
 0xdea   :  { %2195 = vperm.xlu2 %3072, %v2101_v48  }
 0xe1c   :  { %v2121_v57 = vpop.permute.xlu2 %2120 }
 0xe1d   :  { %v2198_v40 = vmul.f32 %v2121_v57, %v4302_v17  ;;  %v4598_v17 = vld [vmem:[#allocation5 + $0x50] sm:$0xff] }
 0xe1f   :  { %v2214_v61 = vsel %vm137_vm0, %v2198_v40, 0.0 }
 0xe24   :  { %v2151_v33 = vpop.permute.xlu2 %2150 }
 0xe25   :  { %v2204_v0 = vmul.f32 %v2151_v33, %v4313_v62 }
 0xe27   :  { %v2219_v5 = vsel %vm137_vm0, %v2204_v0, 0.0 }
 0xe2c   :  { %v2181_v36 = vpop.permute.xlu2 %2180 }
 0xe33   :  { %v2141_v10 = vpop.permute.xlu1 %2140  ;;  %v2131_v55 = vpop.permute.xlu0 %2130 }
 0xe34   :  { %v2200_v50 = vmul.f32 %v2131_v55, %v4300_v9  ;;  %v2202_v35 = vmul.f32 %v2141_v10, %v4306_v1  ;;  %v2136_v2 = vpop.permute.xlu2 %2135  ;;  %v4596_v9 = vld [vmem:[#allocation5 + $0x60] sm:$0xff]  ;;  %v4625_v55 = vld [vmem:[#allocation5 + $0x58] sm:$0xff] }
 0xe35   :  { %v2210_v8 = vmul.f32 %v2181_v36, %v4596_v9  ;;  %v2201_v63 = vmul.f32 %v2136_v2, %v4332_v47 }
 0xe36   :  { %v2215_v41 = vsel %vm137_vm0, %v2200_v50, 0.0  ;;  %v2217_v23 = vsel %vm137_vm0, %v2202_v35, 0.0  ;;  %v4630_v50 = vld [vmem:[#allocation5 + $0x78] sm:$0xff] }
 0xe37   :  { %v2216_v25 = vadd.f32 %v2215_v41, %v2214_v61  ;;  %v2225_v38 = vsel %vm137_vm0, %v2210_v8, 0.0 }
 0xe39   :  { %v2218_v31 = vadd.f32 %v2217_v23, %v2216_v25 }
 0xe3b   :  { %v2191_v20 = vpop.permute.xlu1 %2190  ;;  %v2161_v12 = vpop.permute.xlu0 %2160  ;;  %v2220_v1 = vadd.f32 %v2219_v5, %v2218_v31 }
 0xe3c   :  { %v2206_v13 = vmul.f32 %v2161_v12, %v4311_v59  ;;  %v2212_v14 = vmul.f32 %v2191_v20, %v4321_v29  ;;  %v2166_v42 = vpop.permute.xlu2 %2165  ;;  %v2230_v29 = vsel %vm137_vm0, %v2201_v63, 0.0 }
 0xe3d   :  { %v2207_v33 = vmul.f32 %v2166_v42, %v4616_v6 }
 0xe3e   :  { %v2221_v28 = vsel %vm137_vm0, %v2206_v13, 0.0  ;;  %v2227_v15 = vsel %vm137_vm0, %v2212_v14, 0.0  ;;  %v4648_v13 = vld [vmem:[#allocation4] ss:$0 sm:$0xff] }
 0xe3f   :  { %v2222_v46 = vadd.f32 %v2221_v28, %v2220_v1  ;;  %v3416_v14 = vld [vmem:[%s4836_s3] ss:$0 sm:$0xff]  ;;  %s3555_s3 = smov [#allocation13]  }
 0xe43   :  { %v2171_v30 = vpop.permute.xlu0 %2170  ;;  %v2126_v22 = vpop.permute.xlu1 %2125 }
 0xe44   :  { %v2208_v62 = vmul.f32 %v2171_v30, %v4598_v17  ;;  %v2199_v32 = vmul.f32 %v2126_v22, %v4327_v56  ;;  %v2196_v36 = vpop.permute.xlu2 %2195  ;;  %v3415_v30 = vld [vmem:[%s4840_s7] ss:$0 sm:$0xff]  ;;  %s2917_s7 = sshll.u32 %s3555_s3, 4  ;;  %s2918_s7 = int_to_ptr.vmem [resolvable:$true] %s2917_s7 }
 0xe45   :  { %v2213_v25 = vmul.f32 %v2196_v36, %v4630_v50 }
 0xe46   :  { %v2223_v59 = vsel %vm137_vm0, %v2208_v62, 0.0  ;;  %v2229_v49 = vsel %vm137_vm0, %v2199_v32, 0.0  ;;  %v2291_v32 = vld [vmem:[#allocation3 + $0x30] sm:$0xff] }
 0xe47   :  { %v2224_v21 = vadd.f32 %v2223_v59, %v2222_v46  ;;  %v2231_v48 = vadd.f32 %v2230_v29, %v2229_v49  ;;  %v2242_v23 = vsel %vm137_vm0, %v2213_v25, 0.0  ;;  %v2292_v29 = vld [vmem:[#allocation3 + $0x38] sm:$0xff] }
 0xe49   :  { %v2226_v16 = vadd.f32 %v2225_v38, %v2224_v21 }
 0xe4b   :  { %v2156_v53 = vpop.permute.xlu0 %2155  ;;  %v2146_v11 = vpop.permute.xlu1 %2145  ;;  %v4611_v4 = vadd.f32 %v2227_v15, %v2226_v16 }
 0xe4c   :  { %v2205_v45 = vmul.f32 %v2156_v53, %v4341_v27  ;;  %v2203_v56 = vmul.f32 %v2146_v11, %v4334_v3  ;;  %v4627_v3 = vld [vmem:[#allocation5 + $0x68] sm:$0xff] }
 0xe4d   :  { %3025 = vmatmul.msk.f32.vlgmr.msrb.gmra.mxu0 %vm137_vm0, %v4611_v4 }
 0xe4e   :  { %v2232_v47 = vsel %vm137_vm0, %v2203_v56, 0.0  ;;  %2543 = vmatpush.msrb.mxu0 %v4365_v51  ;;  %v2234_v10 = vsel %vm137_vm0, %v2205_v45, 0.0  ;;  %v2236_v51 = vsel %vm137_vm0, %v2207_v33, 0.0 }
 0xe4f   :  { %v2233_v57 = vadd.f32 %v2232_v47, %v2231_v48 }
 0xe50   :  { %2544 = vmatpush.msrb.mxu0 %v4371_v58 }
 0xe51   :  { %v2235_v27 = vadd.f32 %v2234_v10, %v2233_v57 }
 0xe52   :  { %2545 = vmatpush.msrb.mxu0 %v4377_v52 }
 0xe53   :  { %v2176_v40 = vpop.permute.xlu0 %2175  ;;  %v2186_v41 = vpop.permute.xlu1 %2185  ;;  %v2237_v58 = vadd.f32 %v2236_v51, %v2235_v27 }
 0xe54   :  { %v2209_v61 = vmul.f32 %v2176_v40, %v4625_v55  ;;  %v2211_v35 = vmul.f32 %v2186_v41, %v4627_v3  ;;  %2546 = vmatpush.msrb.mxu0 %v4383_v39 }
 0xe56   :  { %v2238_v20 = vsel %vm137_vm0, %v2209_v61, 0.0  ;;  %v2240_v52 = vsel %vm137_vm0, %v2211_v35, 0.0 }
 0xe57   :  { %v2239_v12 = vadd.f32 %v2238_v20, %v2237_v58 }
 0xe59   :  { %v2241_v0 = vadd.f32 %v2240_v52, %v2239_v12 }
 0xe5b   :  { %v4640_v2 = vadd.f32 %v2242_v23, %v2241_v0 }
 0xe5d   :  { %3026 = vmatmul.msk.f32.gmra.mxu0 %vm137_vm0, %v4640_v2 }
 0xe65   :  { %3027 = vmatmul.msk.f32.vlgmr.msra.gmra.mxu0 %vm137_vm0, %v4611_v4 }
 0xe6d   :  { %3028 = vmatmul.msk.f32.gmra.mxu0 %vm137_vm0, %v4640_v2 }
 0xeca   :  { %v2267_v39 = vpop.f32.mrf.mxu0 }
 0xecb   :  { %v2268_v31 = vadd.f32 %v4648_v13, %v2267_v39 }
 0xecd   :  { %2276 = vperm.xlu0 %3070, %v2268_v31  }
 0xeda   :  { %v2270_v5 = vpop.f32.mrf.mxu0 }
 0xedb   :  { %v2271_v28 = vadd.f32 %v4648_v13, %v2270_v5 }
 0xedd   :  { %2279 = vperm.xlu1 %3071, %v2271_v28  }
 0xee2   :  { %v2312_v1 = vpop.f32.mrf.mxu0 }
 0xee3   :  { %v2313_v22 = vadd.f32 %v3415_v30, %v2312_v1 }
 0xee5   :  { %2360 = vrot.lane.b32.xlu2 %v2313_v22, %s3552_s5 }
 0xeea   :  { %v2315_v8 = vpop.f32.mrf.mxu0 }
 0xeeb   :  { %v2316_v62 = vadd.f32 %v3415_v30, %v2315_v8 }
 0xeed   :  { %2362 = vrot.lane.b32.xlu0 %v2316_v62, %s3552_s5 }
 0xf3f   :  { %v2277_v46 = vpop.permute.xlu0 %2276  ;;  %v2361_v25 = vpop.permute.xlu2 %2360 }
 0xf40   :  { %v2288_v59 = vmul.f32 %v3416_v14, %v2277_v46  ;;  %v2281_v49 = vperm.slane %v2277_v46, %v4140_v19 }
 0xf42   :  { %v2293_v21 = vadd.f32 %v2291_v32, %v2288_v59 }
 0xf44   :  { %v2318_v38 = vadd.f32 %v2313_v22, %v2293_v21 }
 0xf46   :  { %v3029_v63 = vmul.f32 -1.442695, %v2318_v38 }
 0xf48   :  { %3318 = vpow2.f32 %v3029_v63 }
 0xf4e   :  { %v3319_v42 = vpop.eup %3318 }
 0xf4f   :  { %v2326_v16 = vadd.f32 1.0, %v3319_v42  ;;  %v2280_v15 = vpop.permute.xlu1 %2279 }
 0xf50   :  { %v2282_v53 = vperm.slane %v2280_v15, %v4143_v44  ;;  %v2289_v11 = vmul.f32 %v3416_v14, %v2280_v15 }
 0xf51   :  { %3320 = vrcp.f32 %v2326_v16  ;;  %v2339_v27 = vand.u32 2147483648, %v2326_v16  ;;  %v2337_v40 = vand.u32 2147483647, %v2326_v16  ;;  %vm2333_vm4 = vweird.f32 %v2326_v16 }
 0xf52   :  { %v2283_v45 = vsel %vm1029_vm12, %v2282_v53, %v2281_v49  ;;  %v2294_v56 = vadd.f32 %v2292_v29, %v2289_v11 }
 0xf53   :  { %2285 = vst.msk [vmem:[#allocation13 + $0x2] sm:$0x1] %vm1032_vm13, %v2283_v45  ;;  %v2340_v61 = vor.u32 1.1754944e-38, %v2339_v27  ;;  %vm2338_vm6 = vcmp.eq.f32.partialorder %v2337_v40, 8.507059e+37 }
 0xf54   :  { %v2319_v48 = vadd.f32 %v2316_v62, %v2294_v56 }
 0xf56   :  { %v3030_v47 = vmul.f32 -1.442695, %v2319_v48 }
 0xf57   :  { %v3321_v57 = vpop.eup %3320 }
 0xf58   :  { %v2329_v33 = vmul.f32 %v3321_v57, %v2326_v16  ;;  %3322 = vpow2.f32 %v3030_v47  ;;  %vm2334_vm3 = vweird.f32 %v3321_v57 }
 0xf59   :  { %vm2335_vm5 = vmor %vm2333_vm4, %vm2334_vm3 }
 0xf5a   :  { %v2330_v10 = vsub.f32 1.0, %v2329_v33 }
 0xf5c   :  { %v2331_v36 = vmul.f32 %v3321_v57, %v2330_v10 }
 0xf5e   :  { %v3323_v41 = vpop.eup %3322  ;;  %v2332_v51 = vadd.f32 %v3321_v57, %v2331_v36 }
 0xf5f   :  { %v2327_v35 = vadd.f32 1.0, %v3323_v41  ;;  %v2363_v22 = vpop.permute.xlu0 %2362 }
 0xf60   :  { %v2336_v58 = vsel %vm2335_vm5, %v3321_v57, %v2332_v51 }
 0xf61   :  { %v2341_v20 = vsel %vm2338_vm6, %v2340_v61, %v2336_v58  ;;  %3324 = vrcp.f32 %v2327_v35  ;;  %v2354_v39 = vand.u32 2147483648, %v2327_v35  ;;  %v2352_v5 = vand.u32 2147483647, %v2327_v35 }
 0xf62   :  { %v2366_v12 = vmul.f32 %v2361_v25, %v2341_v20  ;;  %vm2348_vm8 = vweird.f32 %v2327_v35  ;;  %v2380_v42 = vsub.f32 1.0, %v2341_v20 }
 0xf63   :  { %v2355_v1 = vor.u32 1.1754944e-38, %v2354_v39  ;;  %vm2353_vm10 = vcmp.eq.f32.partialorder %v2352_v5, 8.507059e+37 }
 0xf64   :  { %2370 = vrot.lane.b32.xlu1 %v2366_v12, %s3552_s5 }
 0xf67   :  { %v3325_v52 = vpop.eup %3324 }
 0xf68   :  { %v2344_v0 = vmul.f32 %v3325_v52, %v2327_v35  ;;  %vm2349_vm7 = vweird.f32 %v3325_v52 }
 0xf69   :  { %vm2350_vm9 = vmor %vm2348_vm8, %vm2349_vm7 }
 0xf6a   :  { %v2345_v23 = vsub.f32 1.0, %v2344_v0 }
 0xf6c   :  { %v2346_v31 = vmul.f32 %v3325_v52, %v2345_v23  ;;  %2392 = vrot.lane.b32.xlu1 %v4611_v4, %s3553_s29 }
 0xf6e   :  { %v2347_v28 = vadd.f32 %v3325_v52, %v2346_v31 }
 0xf70   :  { %v2351_v30 = vsel %vm2350_vm9, %v3325_v52, %v2347_v28 }
 0xf71   :  { %v2356_v8 = vsel %vm2353_vm10, %v2355_v1, %v2351_v30  ;;  %v4875_v30 = vld [vmem:[#allocation22_spill] sm:$0xff] }
 0xf72   :  { %v2367_v62 = vmul.f32 %v2363_v22, %v2356_v8  ;;  %v2381_v29 = vsub.f32 1.0, %v2356_v8 }
 0xf74   :  { %2372 = vrot.lane.b32.xlu2 %v2367_v62, %s3552_s5  ;;  %v4876_v62 = vld [vmem:[#allocation23_spill] sm:$0xff] }
 0xfce   :  { %v2373_v46 = vpop.permute.xlu2 %2372 }
 0xfcf   :  { %v2377_v14 = vadd.f32 %v2373_v46, %v2294_v56 }
 0xfd1   :  { %3326 = vtanh.f32 %v2377_v14 }
 0xfd6   :  { %v2371_v59 = vpop.permute.xlu1 %2370 }
 0xfd7   :  { %v3327_v32 = vpop.eup %3326  ;;  %v2376_v38 = vadd.f32 %v2371_v59, %v2293_v21  ;;  %v4877_v59 = vld [vmem:[#allocation24_spill] sm:$0xff] }
 0xfd8   :  { %2386 = vrot.lane.b32.xlu2 %v3327_v32, %s3554_s16 }
 0xfd9   :  { %3328 = vtanh.f32 %v2376_v38 }
 0xfde   :  { %v2393_v63 = vpop.permute.xlu1 %2392 }
 0xfdf   :  { %v3329_v4 = vpop.eup %3328  ;;  %v2398_v15 = vmul.f32 %v2393_v63, %v2341_v20 }
 0xfe0   :  { %2384 = vrot.lane.b32.xlu0 %v3329_v4, %s3554_s16 }
 0xfe8   :  { %2394 = vrot.lane.b32.xlu0 %v4640_v2, %s3553_s29 }
0x1032   :  { %v2387_v11 = vpop.permute.xlu2 %2386 }
0x1033   :  { %v2391_v45 = vmul.f32 %v2387_v11, %v2381_v29 }
0x1052   :  { %v2385_v16 = vpop.permute.xlu0 %2384 }
0x1053   :  { %v2390_v49 = vmul.f32 %v2385_v16, %v2380_v42 }
0x1055   :  { %v2400_v53 = vadd.f32 %v2398_v15, %v2390_v49 }
0x1057   :  { %2404 = vrot.lane.b32.xlu1 %v2400_v53, %s3554_s16 }
0x105a   :  { %v2395_v21 = vpop.permute.xlu0 %2394 }
0x105b   :  { %v2399_v56 = vmul.f32 %v2395_v21, %v2356_v8 }
0x105d   :  { %v2401_v48 = vadd.f32 %v2399_v56, %v2391_v45 }
0x105f   :  { %2406 = vrot.lane.b32.xlu2 %v2401_v48, %s3554_s16  ;;  %s2919_s16 = sshll.u32 %s4847_s14, 4  ;;  %s2920_s16 = int_to_ptr.hbm [resolvable:$true] %s2919_s16 }
0x10b9   :  { %v2407_v2 = vpop.permute.xlu2 %2406 }
0x10c9   :  { %v2405_v47 = vpop.permute.xlu1 %2404 }
0x10ca   :  { %3031 = vmatmul.msk.f32.vlgmr.msrb.gmra.mxu2 %vm137_vm0, %v2405_v47 }
0x10d2   :  { %3032 = vmatmul.msk.f32.gmra.mxu2 %vm137_vm0, %v2407_v2 }
0x114d   :  { %v2429_v57 = vpop.f32.mrf.mxu2 }
0x114e   :  { %v2451_v33 = vadd.f32 %v2429_v57, %v4414_v37  ;;  %v2453_v40 = vadd.f32 %v2429_v57, %v4425_v18  ;;  %v2455_v37 = vadd.f32 %v2429_v57, %v4435_v43  ;;  %v2457_v18 = vadd.f32 %v2429_v57, %v4445_v7  ;;  %v4872_v7 = vld [vmem:[#allocation19_spill] sm:$0xff] }
0x114f   :  { %v2459_v43 = vadd.f32 %v2429_v57, %v4455_v24  ;;  %v2461_v23 = vadd.f32 %v2429_v57, %v4872_v7  ;;  %v4874_v24 = vld [vmem:[#allocation21_spill] sm:$0xff]  ;;  %v2465_v46 = vadd.f32 %v2429_v57, %v4876_v62 }
0x1150   :  { %3330 = vtanh.f32 %v2451_v33  ;;  %v2463_v28 = vadd.f32 %v2429_v57, %v4874_v24 }
0x1155   :  { %v2432_v10 = vpop.f32.mrf.mxu2 }
0x1156   :  { %v3331_v27 = vpop.eup %3330  ;;  %v2452_v36 = vadd.f32 %v2432_v10, %v4421_v34  ;;  %v2454_v51 = vadd.f32 %v2432_v10, %v4430_v26  ;;  %v2456_v34 = vadd.f32 %v2432_v10, %v4440_v54  ;;  %v2458_v26 = vadd.f32 %v2432_v10, %v4450_v60  ;;  %v4871_v54 = vld [vmem:[#allocation18_spill] sm:$0xff]  ;;  %v4873_v60 = vld [vmem:[#allocation20_spill] sm:$0xff] }
0x1157   :  { %3033 = vmatmul.msk.f32.vlgmr.msrb.gmra.mxu0 %vm137_vm0, %v3331_v27  ;;  %v2460_v52 = vadd.f32 %v2432_v10, %v4871_v54  ;;  %v2462_v31 = vadd.f32 %v2432_v10, %v4873_v60  ;;  %v2464_v22 = vadd.f32 %v2432_v10, %v4875_v30  ;;  %v2466_v32 = vadd.f32 %v2432_v10, %v4877_v59 }
0x1158   :  { %3332 = vtanh.f32 %v2452_v36 }
0x1159   :  { %3334 = vtanh.f32 %v2453_v40 }
0x115a   :  { %3336 = vtanh.f32 %v2454_v51 }
0x115b   :  { %3338 = vtanh.f32 %v2455_v37 }
0x115c   :  { %3340 = vtanh.f32 %v2456_v34 }
0x115d   :  { %3342 = vtanh.f32 %v2457_v18 }
0x115e   :  { %v3333_v41 = vpop.eup %3332  ;;  %3344 = vtanh.f32 %v2458_v26 }
0x115f   :  { %3034 = vmatmul.msk.f32.gmra.mxu0 %vm137_vm0, %v3333_v41  ;;  %v3335_v61 = vpop.eup %3334  ;;  %3346 = vtanh.f32 %v2459_v43 }
0x1160   :  { %v3337_v35 = vpop.eup %3336  ;;  %3348 = vtanh.f32 %v2460_v52 }
0x1161   :  { %v3339_v58 = vpop.eup %3338  ;;  %3350 = vtanh.f32 %v2461_v23 }
0x1162   :  { %v3341_v25 = vpop.eup %3340  ;;  %3352 = vtanh.f32 %v2462_v31 }
0x1163   :  { %v3343_v20 = vpop.eup %3342  ;;  %3354 = vtanh.f32 %v2463_v28 }
0x1164   :  { %v3345_v12 = vpop.eup %3344  ;;  %3356 = vtanh.f32 %v2464_v22 }
0x1165   :  { %v3347_v0 = vpop.eup %3346  ;;  %3358 = vtanh.f32 %v2465_v46 }
0x1166   :  { %v3349_v39 = vpop.eup %3348  ;;  %3360 = vtanh.f32 %v2466_v32 }
0x1167   :  { %3035 = vmatmul.msk.f32.gmra.mxu0 %vm137_vm0, %v3335_v61  ;;  %v3351_v5 = vpop.eup %3350 }
0x1168   :  { %v3353_v1 = vpop.eup %3352 }
0x1169   :  { %v3355_v8 = vpop.eup %3354 }
0x116a   :  { %v3357_v14 = vpop.eup %3356 }
0x116b   :  { %v3359_v38 = vpop.eup %3358 }
0x116c   :  { %v3361_v4 = vpop.eup %3360 }
0x116f   :  { %3036 = vmatmul.msk.f32.gmra.mxu0 %vm137_vm0, %v3337_v35 }
0x1177   :  { %3037 = vmatmul.msk.f32.gmra.mxu0 %vm137_vm0, %v3339_v58 }
0x117f   :  { %3038 = vmatmul.msk.f32.gmra.mxu0 %vm137_vm0, %v3341_v25 }
0x1187   :  { %3039 = vmatmul.msk.f32.gmra.mxu0 %vm137_vm0, %v3343_v20 }
0x118f   :  { %3040 = vmatmul.msk.f32.gmra.mxu0 %vm137_vm0, %v3345_v12 }
0x1197   :  { %3041 = vmatmul.msk.f32.gmra.mxu0 %vm137_vm0, %v3347_v0 }
0x119f   :  { %3042 = vmatmul.msk.f32.gmra.mxu0 %vm137_vm0, %v3349_v39 }
0x11a7   :  { %3043 = vmatmul.msk.f32.gmra.mxu0 %vm137_vm0, %v3351_v5 }
0x11af   :  { %3044 = vmatmul.msk.f32.gmra.mxu0 %vm137_vm0, %v3353_v1 }
0x11b7   :  { %3045 = vmatmul.msk.f32.gmra.mxu0 %vm137_vm0, %v3355_v8 }
0x11bf   :  { %3046 = vmatmul.msk.f32.gmra.mxu0 %vm137_vm0, %v3357_v14 }
0x11c7   :  { %3047 = vmatmul.msk.f32.gmra.mxu0 %vm137_vm0, %v3359_v38 }
0x11cf   :  { %3048 = vmatmul.msk.f32.gmra.mxu0 %vm137_vm0, %v3361_v4 }
0x11d4   :  { %v2548_v63 = vpop.f32.mrf.mxu0 }
0x11d5   :  { %v2596_v10 = vsel %vm709_vm11, %v2548_v63, -inf }
0x11dc   :  { %v4708_v42 = vpop.f32.mrf.mxu0 }
0x11dd   :  { %v2611_v12 = vsel %vm709_vm11, %v4708_v42, -inf }
0x11e4   :  { %v2554_v16 = vpop.f32.mrf.mxu0 }
0x11e5   :  { %v2597_v27 = vsel %vm709_vm11, %v2554_v16, -inf }
0x11ec   :  { %v4710_v15 = vpop.f32.mrf.mxu0 }
0x11ed   :  { %v2612_v54 = vsel %vm709_vm11, %v4710_v15, -inf }
0x11f4   :  { %v2560_v49 = vpop.f32.mrf.mxu0 }
0x11f5   :  { %v2598_v57 = vsel %vm709_vm11, %v2560_v49, -inf }
0x11f6   :  { %v2599_v41 = vmax.f32 %v2596_v10, %v2598_v57 }
0x11fc   :  { %v4712_v53 = vpop.f32.mrf.mxu0 }
0x11fd   :  { %v2613_v26 = vsel %vm709_vm11, %v4712_v53, -inf }
0x11fe   :  { %v2614_v31 = vmax.f32 %v2611_v12, %v2613_v26 }
0x1204   :  { %v2566_v11 = vpop.f32.mrf.mxu0 }
0x1205   :  { %v2600_v33 = vsel %vm709_vm11, %v2566_v11, -inf }
0x1206   :  { %v2601_v51 = vmax.f32 %v2597_v27, %v2600_v33 }
0x120c   :  { %v4714_v29 = vpop.f32.mrf.mxu0 }
0x120d   :  { %v2615_v20 = vsel %vm709_vm11, %v4714_v29, -inf }
0x120e   :  { %v2616_v5 = vmax.f32 %v2612_v54, %v2615_v20 }
0x1214   :  { %v2572_v21 = vpop.f32.mrf.mxu0 }
0x1215   :  { %v2602_v36 = vsel %vm709_vm11, %v2572_v21, -inf }
0x1216   :  { %v2603_v37 = vmax.f32 %v2599_v41, %v2602_v36 }
0x121c   :  { %v4716_v45 = vpop.f32.mrf.mxu0 }
0x121d   :  { %v2617_v52 = vsel %vm709_vm11, %v4716_v45, -inf }
0x121e   :  { %v2618_v46 = vmax.f32 %v2614_v31, %v2617_v52 }
0x1224   :  { %v2578_v56 = vpop.f32.mrf.mxu0 }
0x1225   :  { %v2604_v40 = vsel %vm709_vm11, %v2578_v56, -inf }
0x1226   :  { %v2605_v35 = vmax.f32 %v2601_v51, %v2604_v40 }
0x122c   :  { %v4718_v48 = vpop.f32.mrf.mxu0 }
0x122d   :  { %v2619_v0 = vsel %vm709_vm11, %v4718_v48, -inf }
0x122e   :  { %v2620_v14 = vmax.f32 %v2616_v5, %v2619_v0 }
0x1234   :  { %v2584_v47 = vpop.f32.mrf.mxu0 }
0x1235   :  { %v2606_v61 = vsel %vm709_vm11, %v2584_v47, -inf }
0x1236   :  { %v2607_v18 = vmax.f32 %v2603_v37, %v2606_v61 }
0x123c   :  { %v4720_v2 = vpop.f32.mrf.mxu0 }
0x123d   :  { %v2621_v24 = vsel %vm709_vm11, %v4720_v2, -inf }
0x1244   :  { %v2590_v34 = vpop.f32.mrf.mxu0 }
0x1245   :  { %v2608_v58 = vsel %vm709_vm11, %v2590_v34, -inf }
0x1246   :  { %v2609_v25 = vmax.f32 %v2605_v35, %v2608_v58 }
0x1248   :  { %v2610_v43 = vmax.f32 %v2607_v18, %v2609_v25 }
0x124a   :  { %v2626_v7 = vsub.f32 %v2548_v63, %v2610_v43  ;;  %v2628_v23 = vsub.f32 %v2554_v16, %v2610_v43  ;;  %v2630_v39 = vsub.f32 %v2560_v49, %v2610_v43  ;;  %v2632_v60 = vsub.f32 %v2566_v11, %v2610_v43 }
0x124b   :  { %v2634_v28 = vsub.f32 %v2572_v21, %v2610_v43  ;;  %v2636_v1 = vsub.f32 %v2578_v56, %v2610_v43  ;;  %v2638_v59 = vsub.f32 %v2584_v47, %v2610_v43  ;;  %v2640_v38 = vsub.f32 %v2590_v34, %v2610_v43 }
0x124c   :  { %v2642_v30 = vmul.f32 1.442695, %v2626_v7  ;;  %v2646_v22 = vmul.f32 1.442695, %v2628_v23  ;;  %v2650_v8 = vmul.f32 1.442695, %v2630_v39  ;;  %v4744_v62 = vpop.f32.mrf.mxu0  ;;  %v2622_v63 = vmax.f32 %v2618_v46, %v2621_v24 }
0x124d   :  { %v2654_v32 = vmul.f32 1.442695, %v2632_v60  ;;  %v2623_v4 = vsel %vm709_vm11, %v4744_v62, -inf  ;;  %v2658_v16 = vmul.f32 1.442695, %v2634_v28 }
0x124e   :  { %3362 = vpow2.f32 %v2642_v30  ;;  %v2624_v49 = vmax.f32 %v2620_v14, %v2623_v4  ;;  %v2662_v11 = vmul.f32 1.442695, %v2636_v1  ;;  %v2666_v21 = vmul.f32 1.442695, %v2638_v59 }
0x124f   :  { %3364 = vpow2.f32 %v2646_v22  ;;  %v2670_v57 = vmul.f32 1.442695, %v2640_v38 }
0x1250   :  { %3366 = vpow2.f32 %v2650_v8  ;;  %v2625_v56 = vmax.f32 %v2622_v63, %v2624_v49 }
0x1251   :  { %3368 = vpow2.f32 %v2654_v32 }
0x1252   :  { %3370 = vpow2.f32 %v2658_v16  ;;  %v2627_v33 = vsub.f32 %v4708_v42, %v2625_v56  ;;  %v2629_v47 = vsub.f32 %v4710_v15, %v2625_v56  ;;  %v2631_v10 = vsub.f32 %v4712_v53, %v2625_v56 }
0x1253   :  { %3372 = vpow2.f32 %v2662_v11  ;;  %v2633_v36 = vsub.f32 %v4714_v29, %v2625_v56  ;;  %v2635_v51 = vsub.f32 %v4716_v45, %v2625_v56  ;;  %v2637_v15 = vsub.f32 %v4718_v48, %v2625_v56 }
0x1254   :  { %v4751_v27 = vpop.eup %3362  ;;  %3374 = vpow2.f32 %v2666_v21  ;;  %v2644_v53 = vmul.f32 1.442695, %v2627_v33  ;;  %v2648_v37 = vmul.f32 1.442695, %v2629_v47  ;;  %v2652_v34 = vmul.f32 1.442695, %v2631_v10 }
0x1255   :  { %v4754_v40 = vpop.eup %3364  ;;  %v2674_v41 = vsel %vm709_vm11, %v4751_v27, 0.0  ;;  %3376 = vpow2.f32 %v2670_v57  ;;  %v2656_v58 = vmul.f32 1.442695, %v2633_v36  ;;  %v2639_v26 = vsub.f32 %v4720_v2, %v2625_v56 }
0x1256   :  { %v4759_v61 = vpop.eup %3366  ;;  %v2675_v42 = vsel %vm709_vm11, %v4754_v40, 0.0  ;;  %3378 = vpow2.f32 %v2644_v53  ;;  %v2660_v20 = vmul.f32 1.442695, %v2635_v51  ;;  %v2641_v52 = vsub.f32 %v4744_v62, %v2625_v56 }
0x1257   :  { %v4764_v35 = vpop.eup %3368  ;;  %v2676_v29 = vadd.f32 %v2675_v42, %v2674_v41  ;;  %v2677_v18 = vsel %vm709_vm11, %v4759_v61, 0.0  ;;  %3380 = vpow2.f32 %v2648_v37  ;;  %v2664_v0 = vmul.f32 1.442695, %v2637_v15 }
0x1258   :  { %v4768_v45 = vpop.eup %3370  ;;  %v2679_v43 = vsel %vm709_vm11, %v4764_v35, 0.0  ;;  %3382 = vpow2.f32 %v2652_v34  ;;  %v2668_v39 = vmul.f32 1.442695, %v2639_v26  ;;  %v2672_v28 = vmul.f32 1.442695, %v2641_v52 }
0x1259   :  { %v2678_v25 = vadd.f32 %v2677_v18, %v2676_v29  ;;  %v4771_v48 = vpop.eup %3372  ;;  %3384 = vpow2.f32 %v2656_v58  ;;  %v2681_v7 = vsel %vm709_vm11, %v4768_v45, 0.0 }
0x125a   :  { %v4775_v12 = vpop.eup %3374  ;;  %3386 = vpow2.f32 %v2660_v20  ;;  %v2683_v31 = vsel %vm709_vm11, %v4771_v48, 0.0 }
0x125b   :  { %v2680_v54 = vadd.f32 %v2679_v43, %v2678_v25  ;;  %v3377_v23 = vpop.eup %3376  ;;  %3388 = vpow2.f32 %v2664_v0  ;;  %v2685_v22 = vsel %vm709_vm11, %v4775_v12, 0.0 }
0x125c   :  { %v3379_v60 = vpop.eup %3378  ;;  %3390 = vpow2.f32 %v2668_v39  ;;  %v2687_v59 = vsel %vm709_vm11, %v3377_v23, 0.0 }
0x125d   :  { %v2682_v2 = vadd.f32 %v2681_v7, %v2680_v54  ;;  %v3381_v5 = vpop.eup %3380  ;;  %v2689_v1 = vsel %vm709_vm11, %v3379_v60, 0.0  ;;  %3392 = vpow2.f32 %v2672_v28 }
0x125e   :  { %v3383_v30 = vpop.eup %3382  ;;  %v2690_v8 = vsel %vm709_vm11, %v3381_v5, 0.0 }
0x125f   :  { %v2684_v24 = vadd.f32 %v2683_v31, %v2682_v2  ;;  %v3385_v62 = vpop.eup %3384  ;;  %v2691_v14 = vadd.f32 %v2690_v8, %v2689_v1  ;;  %v2692_v32 = vsel %vm709_vm11, %v3383_v30, 0.0 }
0x1260   :  { %v3387_v38 = vpop.eup %3386  ;;  %v2694_v16 = vsel %vm709_vm11, %v3385_v62, 0.0 }
0x1261   :  { %v2686_v46 = vadd.f32 %v2685_v22, %v2684_v24  ;;  %v2693_v63 = vadd.f32 %v2692_v32, %v2691_v14  ;;  %v3389_v49 = vpop.eup %3388  ;;  %v2696_v21 = vsel %vm709_vm11, %v3387_v38, 0.0  ;;  %v2734_v14 = vld [vmem:[#allocation5 + $0x30] sm:$0xff] }
0x1262   :  { %v3391_v56 = vpop.eup %3390  ;;  %v2698_v33 = vsel %vm709_vm11, %v3389_v49, 0.0 }
0x1263   :  { %v2688_v4 = vadd.f32 %v2687_v59, %v2686_v46  ;;  %v2695_v11 = vadd.f32 %v2694_v16, %v2693_v63  ;;  %v3393_v47 = vpop.eup %3392  ;;  %v2700_v36 = vsel %vm709_vm11, %v3391_v56, 0.0 }
0x1264   :  { %v2702_v15 = vsel %vm709_vm11, %v3393_v47, 0.0 }
0x1265   :  { %3394 = vrcp.f32 %v2688_v4  ;;  %v2697_v57 = vadd.f32 %v2696_v21, %v2695_v11 }
0x1267   :  { %v2699_v10 = vadd.f32 %v2698_v33, %v2697_v57  ;;  %v2742_v33 = vld [vmem:[#allocation5 + $0x70] sm:$0xff] }
0x1269   :  { %v2701_v51 = vadd.f32 %v2700_v36, %v2699_v10 }
0x126b   :  { %v3395_v41 = vpop.eup %3394  ;;  %v2703_v53 = vadd.f32 %v2702_v15, %v2701_v51 }
0x126c   :  { %v2706_v42 = vmul.f32 %v3395_v41, %v2688_v4  ;;  %v2736_v4 = vld [vmem:[#allocation5 + $0x40] sm:$0xff] }
0x126d   :  { %3396 = vrcp.f32 %v2703_v53 }
0x126e   :  { %v2708_v37 = vsub.f32 2.0, %v2706_v42 }
0x1270   :  { %v2710_v29 = vmul.f32 %v3395_v41, %v2708_v37 }
0x1272   :  { %v2716_v34 = vmul.f32 %v4759_v61, %v2710_v29  ;;  %v2714_v58 = vmul.f32 %v4754_v40, %v2710_v29  ;;  %v2712_v18 = vmul.f32 %v4751_v27, %v2710_v29  ;;  %v2726_v43 = vmul.f32 %v3377_v23, %v2710_v29 }
0x1273   :  { %v3397_v25 = vpop.eup %3396  ;;  %v2720_v54 = vmul.f32 %v4768_v45, %v2710_v29  ;;  %v2718_v52 = vmul.f32 %v4764_v35, %v2710_v29  ;;  %v2722_v61 = vmul.f32 %v4771_v48, %v2710_v29  ;;  %v2724_v27 = vmul.f32 %v4775_v12, %v2710_v29  ;;  %v2728_v12 = vld [vmem:[#allocation5] sm:$0xff]  ;;  %v2729_v29 = vld [vmem:[#allocation5 + $0x8] sm:$0xff] }
0x1274   :  { %2766 = vperm.xlu2 %3072, %v2716_v34   ;;  %2756 = vperm.xlu1 %3071, %v2714_v58   ;;  %v2707_v26 = vmul.f32 %v3397_v25, %v2703_v53 }
0x1275   :  { %2746 = vperm.xlu0 %3070, %v2712_v18  }
0x1276   :  { %v2709_v20 = vsub.f32 2.0, %v2707_v26 }
0x1278   :  { %v2711_v0 = vmul.f32 %v3397_v25, %v2709_v20  ;;  %v2733_v25 = vld [vmem:[#allocation5 + $0x28] sm:$0xff]  ;;  %v2731_v20 = vld [vmem:[#allocation5 + $0x18] sm:$0xff] }
0x127a   :  { %v2713_v40 = vmul.f32 %v3379_v60, %v2711_v0  ;;  %v2719_v7 = vmul.f32 %v3385_v62, %v2711_v0  ;;  %v2717_v2 = vmul.f32 %v3383_v30, %v2711_v0  ;;  %v2715_v39 = vmul.f32 %v3381_v5, %v2711_v0  ;;  %v2730_v60 = vld [vmem:[#allocation5 + $0x10] sm:$0xff]  ;;  %v2732_v5 = vld [vmem:[#allocation5 + $0x20] sm:$0xff] }
0x127b   :  { %v2723_v45 = vmul.f32 %v3389_v49, %v2711_v0  ;;  %v2725_v35 = vmul.f32 %v3391_v56, %v2711_v0  ;;  %v2721_v23 = vmul.f32 %v3387_v38, %v2711_v0  ;;  %v2727_v31 = vmul.f32 %v3393_v47, %v2711_v0 }
0x127c   :  { %2816 = vperm.xlu2 %3072, %v2726_v43   ;;  %2786 = vperm.xlu1 %3071, %v2720_v54  }
0x127d   :  { %2776 = vperm.xlu0 %3070, %v2718_v52  }
0x1284   :  { %2796 = vperm.xlu1 %3071, %v2722_v61   ;;  %2751 = vperm.xlu2 %3072, %v2713_v40  }
0x1285   :  { %2806 = vperm.xlu0 %3070, %v2724_v27  }
0x128c   :  { %2781 = vperm.xlu1 %3071, %v2719_v7   ;;  %2771 = vperm.xlu2 %3072, %v2717_v2  }
0x128d   :  { %2761 = vperm.xlu0 %3070, %v2715_v39  }
0x1294   :  { %2801 = vperm.xlu1 %3071, %v2723_v45   ;;  %2811 = vperm.xlu2 %3072, %v2725_v35  }
0x1295   :  { %2791 = vperm.xlu0 %3070, %v2721_v23  }
0x129d   :  { %2821 = vperm.xlu0 %3070, %v2727_v31  }
0x12ce   :  { %v2767_v48 = vpop.permute.xlu2 %2766 }
0x12cf   :  { %v2828_v46 = vmul.f32 %v2767_v48, %v2732_v5 }
0x12d1   :  { %v2843_v16 = vsel %vm137_vm0, %v2828_v46, 0.0 }
0x12d6   :  { %v2817_v30 = vpop.permute.xlu2 %2816 }
0x12d7   :  { %v2838_v15 = vmul.f32 %v2817_v30, %v2742_v33 }
0x12d9   :  { %v2853_v18 = vsel %vm137_vm0, %v2838_v15, 0.0 }
0x12de   :  { %v2752_v21 = vpop.permute.xlu2 %2751 }
0x12df   :  { %v2825_v43 = vmul.f32 %v2752_v21, %v2729_v29 }
0x12e1   :  { %v2855_v40 = vsel %vm137_vm0, %v2825_v43, 0.0 }
0x12e6   :  { %v2757_v24 = vpop.permute.xlu1 %2756  ;;  %v2772_v26 = vpop.permute.xlu2 %2771 }
0x12e7   :  { %v2826_v28 = vmul.f32 %v2757_v24, %v2730_v60  ;;  %v2747_v1 = vpop.permute.xlu0 %2746  ;;  %v2829_v0 = vmul.f32 %v2772_v26, %v2733_v25 }
0x12e8   :  { %v2824_v22 = vmul.f32 %v2747_v1, %v2728_v12 }
0x12e9   :  { %v2841_v8 = vsel %vm137_vm0, %v2826_v28, 0.0  ;;  %v2858_v2 = vsel %vm137_vm0, %v2829_v0, 0.0 }
0x12ea   :  { %v2840_v62 = vsel %vm137_vm0, %v2824_v22, 0.0 }
0x12eb   :  { %v2842_v59 = vadd.f32 %v2841_v8, %v2840_v62 }
0x12ed   :  { %v2844_v49 = vadd.f32 %v2843_v16, %v2842_v59 }
0x12ee   :  { %v2787_v32 = vpop.permute.xlu1 %2786  ;;  %v2812_v12 = vpop.permute.xlu2 %2811 }
0x12ef   :  { %v2777_v38 = vpop.permute.xlu0 %2776  ;;  %v2832_v56 = vmul.f32 %v2787_v32, %v2736_v4  ;;  %v2837_v22 = vmul.f32 %v2812_v12, %v4627_v3 }
0x12f0   :  { %v2830_v63 = vmul.f32 %v2777_v38, %v2734_v14 }
0x12f1   :  { %v2847_v10 = vsel %vm137_vm0, %v2832_v56, 0.0  ;;  %v2866_v62 = vsel %vm137_vm0, %v2837_v22, 0.0 }
0x12f2   :  { %v2845_v11 = vsel %vm137_vm0, %v2830_v63, 0.0 }
0x12f3   :  { %v2846_v57 = vadd.f32 %v2845_v11, %v2844_v49 }
0x12f5   :  { %v2848_v51 = vadd.f32 %v2847_v10, %v2846_v57 }
0x12f6   :  { %v2797_v47 = vpop.permute.xlu1 %2796 }
0x12f7   :  { %v2834_v36 = vmul.f32 %v2797_v47, %v4598_v17  ;;  %v2807_v41 = vpop.permute.xlu0 %2806 }
0x12f8   :  { %v2836_v42 = vmul.f32 %v2807_v41, %v4596_v9  ;;  %v2735_v9 = vld [vmem:[#allocation5 + $0x38] sm:$0xff] }
0x12f9   :  { %v2849_v53 = vsel %vm137_vm0, %v2834_v36, 0.0 }
0x12fa   :  { %v2850_v37 = vadd.f32 %v2849_v53, %v2848_v51  ;;  %v2851_v34 = vsel %vm137_vm0, %v2836_v42, 0.0 }
0x12fc   :  { %v2852_v58 = vadd.f32 %v2851_v34, %v2850_v37 }
0x12fe   :  { %v2854_v54 = vadd.f32 %v2853_v18, %v2852_v58  ;;  %v2782_v17 = vpop.permute.xlu1 %2781 }
0x12ff   :  { %v2762_v52 = vpop.permute.xlu0 %2761  ;;  %v2831_v39 = vmul.f32 %v2782_v17, %v2735_v9 }
0x1300   :  { %v2827_v61 = vmul.f32 %v2762_v52, %v2731_v20  ;;  %3049 = vmatmul.msk.f32.vlgmr.msra.gmra.mxu2 %vm137_vm0, %v2854_v54 }
0x1301   :  { %v2860_v31 = vsel %vm137_vm0, %v2831_v39, 0.0 }
0x1302   :  { %v2856_v27 = vsel %vm137_vm0, %v2827_v61, 0.0 }
0x1303   :  { %v2857_v7 = vadd.f32 %v2856_v27, %v2855_v40 }
0x1305   :  { %v2859_v45 = vadd.f32 %v2858_v2, %v2857_v7 }
0x1306   :  { %v2802_v35 = vpop.permute.xlu1 %2801 }
0x1307   :  { %v2792_v23 = vpop.permute.xlu0 %2791  ;;  %v2835_v48 = vmul.f32 %v2802_v35, %v4625_v55  ;;  %v2861_v24 = vadd.f32 %v2860_v31, %v2859_v45 }
0x1308   :  { %v2833_v60 = vmul.f32 %v2792_v23, %v4616_v6 }
0x1309   :  { %v2864_v30 = vsel %vm137_vm0, %v2835_v48, 0.0 }
0x130a   :  { %v2862_v28 = vsel %vm137_vm0, %v2833_v60, 0.0 }
0x130b   :  { %v2863_v1 = vadd.f32 %v2862_v28, %v2861_v24 }
0x130d   :  { %v2865_v5 = vadd.f32 %v2864_v30, %v2863_v1 }
0x130f   :  { %v2822_v8 = vpop.permute.xlu0 %2821  ;;  %v2867_v14 = vadd.f32 %v2866_v62, %v2865_v5 }
0x1310   :  { %v2839_v46 = vmul.f32 %v2822_v8, %v4630_v50 }
0x1312   :  { %v2868_v55 = vsel %vm137_vm0, %v2839_v46, 0.0 }
0x1313   :  { %v2869_v59 = vadd.f32 %v2868_v55, %v2867_v14 }
0x1315   :  { %3050 = vmatmul.msk.f32.gmra.mxu2 %vm137_vm0, %v2869_v59 }
0x1383   :  { %v2893_v6 = vpop.f32.mrf.mxu2 }
0x1384   :  { %v2894_v32 = vadd.f32 %v4648_v13, %v2893_v6 }
0x1386   :  { %2902 = vperm.xlu1 %3071, %v2894_v32  }
0x1398   :  { %v2896_v38 = vpop.f32.mrf.mxu2 }
0x1399   :  { %v2897_v3 = vadd.f32 %v4648_v13, %v2896_v38 }
0x139b   :  { %2905 = vperm.xlu2 %3072, %v2897_v3  }
0x13f5   :  { %v2906_v4 = vpop.permute.xlu2 %2905 }
0x13f6   :  { %v2908_v63 = vperm.slane %v2906_v4, %v4143_v44 }
0x13f8   :  { %v2903_v50 = vpop.permute.xlu1 %2902 }
0x13f9   :  { %v2907_v16 = vperm.slane %v2903_v50, %v4140_v19 }
0x13fb   :  { %v2909_v49 = vsel %vm1029_vm12, %v2908_v63, %v2907_v16 }
0x13fc   :  { %2911 = vst.msk [vmem:[#allocation13 + $0x3] sm:$0x1] %vm1032_vm13, %v2909_v49 }
0x13fd   :  { %2922 = dma.vmem_to_hbm [thread:$0]  %s2918_s7, 64, %s2920_s16, [#allocation7]  }
0x13fe   :  { %3543 = dma.done.wait [#allocation7], 64  }
0x13ff   :  { %3544 = vsyncadd [#allocation7], 4294967232 }
0x1400   :  { %2927 = vsyncpa [#allocation6], 1 }
0x1401   :  { %2928 = vsyncpa [#allocation9], 1 }
0x1402   :  { %2929 = vsyncpa [#allocation12], 1 }
0x1403   :  { %2930 = vsyncpa [#allocation7], 1 }

</bundles_post_ra>
